<compile_context>
chip_gen: v6e
topology: v6e:2x2x1
jax: 0.10.0
libtpu: 0.0.40
codegen_flags: <defaults>
</compile_context>

<pallas_src>
import functools

import jax
import jax.numpy as jnp
from jax.experimental import pallas as pl
from jax.experimental.pallas import tpu as pltpu

_EPS = 1e-5


def _round_up(x, m):
    return ((x + m - 1) // m) * m


def _pick_row_tile(h_out, bytes_per_row, budget_bytes=6 << 20):
    """Largest divisor of h_out whose per-block footprint fits the budget."""
    best = 1
    for t in range(1, h_out + 1):
        if h_out % t == 0 and t * bytes_per_row <= budget_bytes:
            best = t
    return best


# --------------------------------------------------------------------------
# conv1: (1, k, k) spatial conv, row-tiled, merged-tap matmul, fused BN1 stats
# --------------------------------------------------------------------------
def _conv_spatial_kernel(x_ref, w_ref, y_ref, psum_ref, psq_ref, *,
                         strd, ktaps, merge):
    # x_ref : (1, Hp, Wp, Cinp) bf16  whole spatially-padded frame (resident per b)
    # w_ref : (k*k*Cinp, Cp) bf16 if merge else (k, k, Cin, Cp) bf16
    # y_ref : (1, TH, Wo, Cp) bf16    output row-tile
    # psum/psq : (1, 1, 1, Cp) f32    BN1 partial sums per (frame, row-tile)
    r = pl.program_id(1)
    th, wo, cp = y_ref.shape[1], y_ref.shape[2], y_ref.shape[3]
    cin = x_ref.shape[-1]
    row0 = r * (th * strd)

    def window(i, j):
        if strd == 1:
            return x_ref[0, pl.ds(row0 + i, th), j:j + wo, :]
        # TODO(synk): stride-2 layers would benefit from an even/odd W-phase
        # split at the boundary instead of in-kernel strided slices.
        return x_ref[0, pl.ds(row0 + i, th, stride=strd),
                     pl.ds(j, wo, stride=strd), :]

    if merge:
        # Single deep-K matmul: LHS = concat of the k*k shifted windows along
        # the (128-aligned) channel axis, built once per output block.
        wins = [window(i, j) for i in range(ktaps) for j in range(ktaps)]
        lhs = jnp.concatenate(wins, axis=-1).reshape(th * wo, ktaps * ktaps * cin)
        acc = jnp.dot(lhs, w_ref[...], preferred_element_type=jnp.float32)
    else:
        acc = jnp.zeros((th * wo, cp), jnp.float32)
        for i in range(ktaps):
            for j in range(ktaps):
                acc = acc + jnp.dot(window(i, j).reshape(th * wo, cin),
                                    w_ref[i, j],
                                    preferred_element_type=jnp.float32)

    y_ref[0] = acc.reshape(th, wo, cp).astype(y_ref.dtype)
    psum_ref[0, 0] = jnp.sum(acc, axis=0, keepdims=True)
    psq_ref[0, 0] = jnp.sum(acc * acc, axis=0, keepdims=True)


def conv_spatial_bn_stats(x_pad, w_mat, *, h_out, w_out, strd, ktaps, merge):
    """x_pad: (NF, Hp, Wp, Cinp) bf16; w_mat: (k*k*Cinp, Cp) or (k,k,Cin,Cp) bf16."""
    NF, Hp, Wp, Cin = x_pad.shape
    Cp = w_mat.shape[-1]
    kdepth = w_mat.shape[0] if merge else ktaps * ktaps * Cin
    # acc f32 + double-buffered bf16 output + (merged) bf16 LHS, per output row.
    bytes_per_row = w_out * (Cp * 8 + (2 * kdepth if merge else 2 * Cin))
    th = _pick_row_tile(h_out, bytes_per_row)
    nrt = h_out // th

    if merge:
        w_spec = pl.BlockSpec(w_mat.shape, lambda b, r: (0, 0))
    else:
        w_spec = pl.BlockSpec(w_mat.shape, lambda b, r: (0, 0, 0, 0))

    kernel = functools.partial(_conv_spatial_kernel, strd=strd, ktaps=ktaps,
                               merge=merge)
    return pl.pallas_call(
        kernel,
        out_shape=(jax.ShapeDtypeStruct((NF, h_out, w_out, Cp), jnp.bfloat16),
                   jax.ShapeDtypeStruct((NF, nrt, 1, Cp), jnp.float32),
                   jax.ShapeDtypeStruct((NF, nrt, 1, Cp), jnp.float32)),
        grid_spec=pltpu.PrefetchScalarGridSpec(
            num_scalar_prefetch=0,
            grid=(NF, nrt),
            in_specs=[
                pl.BlockSpec((1, Hp, Wp, Cin), lambda b, r: (b, 0, 0, 0)),
                w_spec,
            ],
            out_specs=(
                pl.BlockSpec((1, th, w_out, Cp), lambda b, r: (b, r, 0, 0)),
                pl.BlockSpec((1, 1, 1, Cp), lambda b, r: (b, r, 0, 0)),
                pl.BlockSpec((1, 1, 1, Cp), lambda b, r: (b, r, 0, 0)),
            )),
        compiler_params=pltpu.CompilerParams(
            dimension_semantics=("parallel", "parallel")),
    )(x_pad, w_mat)


# --------------------------------------------------------------------------
# conv2: (k, 1, 1) temporal conv, row-tiled, tap axis on the grid.
# Fuses BN1 scale/shift + ReLU on the input tile and BN2 partial stats out.
# --------------------------------------------------------------------------
def _conv_temporal_kernel(x_ref, w_ref, scale_ref, shift_ref,
                          y_ref, psum_ref, psq_ref, acc_ref, *,
                          depth, tstride, pad):
    # grid = (N, Do, NHT, k); tap axis innermost ("arbitrary"), f32 VMEM acc.
    # x_ref    : (1, TH, Wo, Cp) bf16  raw conv1 output row-tile (BN1 unapplied)
    # w_ref    : (k, Cp, Cp) bf16      all taps resident (constant index map)
    # scale/shift : (1, Cp) f32        folded BN1 scale / shift
    # y_ref    : (1, TH, Wo, Cp) bf16  raw conv2 output row-tile
    # psum/psq : (1, 1, 1, Cp) f32     BN2 partial sums per (frame, row-tile)
    do = pl.program_id(1)
    i = pl.program_id(3)
    ntaps = pl.num_programs(3)
    th, wo, cp = y_ref.shape[1], y_ref.shape[2], y_ref.shape[3]
    d_in = do * tstride + i - pad          # input depth index of this tap

    @pl.when(i == 0)
    def _():
        acc_ref[...] = jnp.zeros_like(acc_ref)

    # taps falling into the zero padding contribute nothing (no padded HBM copy)
    @pl.when(jnp.logical_and(d_in >= 0, d_in < depth))
    def _():
        a = x_ref[0].reshape(th * wo, cp).astype(jnp.float32)
        # fused BN1 scale/shift + ReLU (removes a full HBM round trip)
        a = jnp.maximum(a * scale_ref[...] + shift_ref[...], 0.0)
        acc_ref[...] += jnp.dot(a.astype(jnp.bfloat16), w_ref[i],
                                preferred_element_type=jnp.float32)

    @pl.when(i == ntaps - 1)
    def _():
        acc = acc_ref[...]
        y_ref[0] = acc.reshape(th, wo, cp).astype(y_ref.dtype)
        psum_ref[0, 0] = jnp.sum(acc, axis=0, keepdims=True)
        psq_ref[0, 0] = jnp.sum(acc * acc, axis=0, keepdims=True)


def conv_temporal_bn_stats(y_in, w_mat, scale1, shift1, *,
                           n_batch, depth, d_out, tstride, pad):
    """y_in: (N*D, Ho, Wo, Cp) bf16; w_mat: (k, Cp, Cp) bf16; scale/shift: (1, Cp)."""
    _, Ho, Wo, Cp = y_in.shape
    k = w_mat.shape[0]
    # acc f32 + f32 temp + double-buffered bf16 in/out, per output row.
    th = _pick_row_tile(Ho, Wo * Cp * 16)
    nht = Ho // th

    kernel = functools.partial(_conv_temporal_kernel, depth=depth,
                               tstride=tstride, pad=pad)

    def x_map(n, do, ht, i):
        d = jnp.clip(do * tstride + i - pad, 0, depth - 1)   # invalid taps masked in-kernel
        return (n * depth + d, ht, 0, 0)

    return pl.pallas_call(
        kernel,
        out_shape=(jax.ShapeDtypeStruct((n_batch * d_out, Ho, Wo, Cp), jnp.bfloat16),
                   jax.ShapeDtypeStruct((n_batch * d_out, nht, 1, Cp), jnp.float32),
                   jax.ShapeDtypeStruct((n_batch * d_out, nht, 1, Cp), jnp.float32)),
        grid_spec=pltpu.PrefetchScalarGridSpec(
            num_scalar_prefetch=0,
            grid=(n_batch, d_out, nht, k),
            in_specs=[
                pl.BlockSpec((1, th, Wo, Cp), x_map),
                pl.BlockSpec((k, Cp, Cp), lambda n, do, ht, i: (0, 0, 0)),
                pl.BlockSpec((1, Cp), lambda n, do, ht, i: (0, 0)),
                pl.BlockSpec((1, Cp), lambda n, do, ht, i: (0, 0)),
            ],
            out_specs=(
                pl.BlockSpec((1, th, Wo, Cp),
                             lambda n, do, ht, i: (n * d_out + do, ht, 0, 0)),
                pl.BlockSpec((1, 1, 1, Cp),
                             lambda n, do, ht, i: (n * d_out + do, ht, 0, 0)),
                pl.BlockSpec((1, 1, 1, Cp),
                             lambda n, do, ht, i: (n * d_out + do, ht, 0, 0)),
            ),
            scratch_shapes=[pltpu.VMEM((th * Wo, Cp), jnp.float32)]),
        compiler_params=pltpu.CompilerParams(
            dimension_semantics=("parallel", "parallel", "parallel", "arbitrary")),
    )(y_in, w_mat, scale1, shift1)


# --------------------------------------------------------------------------
# BN2 normalize + ReLU: tiled, lane-dense, precomputed per-channel scale/shift
# --------------------------------------------------------------------------
def _bn_relu_kernel(y_ref, scale_ref, shift_ref, o_ref):
    y = y_ref[...].astype(jnp.float32)
    o_ref[...] = jnp.maximum(y * scale_ref[...] + shift_ref[...],
                             0.0).astype(o_ref.dtype)


def bn_relu_apply(y2d, scale, shift, out_dtype):
    """y2d: (M, Cp) bf16; scale/shift: (1, Cp) f32 -> max(y*scale+shift, 0)."""
    M, Cp = y2d.shape
    # ~2 MB bf16 input blocks (op is HBM-bound); pad M so the grid is exact.
    tm = max(8, min(M, (2 << 20) // (Cp * 2)))
    tm = (tm // 8) * 8
    grid_m = -(-M // tm)
    Mp = grid_m * tm
    if Mp != M:
        y2d = jnp.pad(y2d, ((0, Mp - M), (0, 0)))
    out = pl.pallas_call(
        _bn_relu_kernel,
        out_shape=jax.ShapeDtypeStruct((Mp, Cp), out_dtype),
        grid_spec=pltpu.PrefetchScalarGridSpec(
            num_scalar_prefetch=0,
            grid=(grid_m,),
            in_specs=[
                pl.BlockSpec((tm, Cp), lambda i: (i, 0)),
                pl.BlockSpec((1, Cp), lambda i: (0, 0)),
                pl.BlockSpec((1, Cp), lambda i: (0, 0)),
            ],
            out_specs=pl.BlockSpec((tm, Cp), lambda i: (i, 0))),
        compiler_params=pltpu.CompilerParams(
            dimension_semantics=("parallel",)),
    )(y2d, scale, shift)
    return out[:M] if Mp != M else out


# --------------------------------------------------------------------------
# Full STConv3d forward (NCDHW in / NCDHW out)
# --------------------------------------------------------------------------
@functools.partial(jax.jit, static_argnames=("stride", "padding"))
def st_conv3d(x, w1, w2, gamma1, beta1, gamma2, beta2, *, stride, padding):
    if isinstance(stride, tuple):
        t_stride, s_stride = stride[0], stride[-1]
    else:
        t_stride = s_stride = stride
    p = padding

    N, Cin, D, H, W = x.shape
    Cout, ksz = w1.shape[0], w1.shape[-1]
    Cp = _round_up(max(Cout, 128), 128)        # lane-dense output channels
    padc = Cp - Cout

    Ho = (H + 2 * p - ksz) // s_stride + 1
    Wo = (W + 2 * p - ksz) // s_stride + 1
    Do = (D + 2 * p - ksz) // t_stride + 1

    # Merge the k*k taps into one deep-K matmul only when Cin is small; pad Cin
    # to 128 so the in-kernel lane-dim concatenation is tile-aligned.
    merge = Cin < 128
    Cinp = _round_up(Cin, 128) if merge else Cin

    # boundary: NCDHW -> channels-last bf16 frames, spatial zero-pad once.
    x_cl = jnp.transpose(x, (0, 2, 3, 4, 1)).astype(jnp.bfloat16)
    x_pad = jnp.pad(x_cl, ((0, 0), (0, 0), (p, p), (p, p), (0, Cinp - Cin)))
    x_pad = x_pad.reshape(N * D, H + 2 * p, W + 2 * p, Cinp)

    # weights -> matmul layout, output (and merged input) channels zero-padded.
    w1_mat = jnp.transpose(w1[:, :, 0], (2, 3, 1, 0))          # (k, k, Cin, Cout)
    w1_mat = jnp.pad(w1_mat,
                     ((0, 0), (0, 0), (0, Cinp - Cin), (0, padc))).astype(jnp.bfloat16)
    if merge:
        w1_mat = w1_mat.reshape(ksz * ksz * Cinp, Cp)          # K = k*k*Cinp
    w2_mat = jnp.transpose(w2[:, :, :, 0, 0], (2, 1, 0))       # (k, Cin2, Cout)
    w2_mat = jnp.pad(w2_mat, ((0, 0), (0, padc), (0, padc))).astype(jnp.bfloat16)

    # padded BN params (gamma=1, beta=0) keep the extra channels identically zero.
    g1 = jnp.pad(gamma1.astype(jnp.float32), (0, padc), constant_values=1.0)
    b1 = jnp.pad(beta1.astype(jnp.float32), (0, padc))
    g2 = jnp.pad(gamma2.astype(jnp.float32), (0, padc), constant_values=1.0)
    b2 = jnp.pad(beta2.astype(jnp.float32), (0, padc))

    def fold_bn(psum, psq, m_rows, gamma, beta):
        s = jnp.sum(psum, axis=(0, 1, 2)).reshape(1, Cp)
        q = jnp.sum(psq, axis=(0, 1, 2)).reshape(1, Cp)
        mean = s / m_rows
        var = jnp.maximum(q / m_rows - mean * mean, 0.0)       # biased (PyTorch norm)
        scale = gamma.reshape(1, Cp) * jax.lax.rsqrt(var + _EPS)
        shift = beta.reshape(1, Cp) - mean * scale
        return scale, shift

    # conv1 (1,k,k): row-tiled, merged-tap matmul, fused BN1 partial statistics.
    y1, ps1, pq1 = conv_spatial_bn_stats(x_pad, w1_mat, h_out=Ho, w_out=Wo,
                                         strd=s_stride, ktaps=ksz, merge=merge)
    scale1, shift1 = fold_bn(ps1, pq1, N * D * Ho * Wo, g1, b1)

    # conv2 (k,1,1): BN1 scale/shift + ReLU fused on the input tile, resident
    # tap weights, fused BN2 partial statistics out.
    y2, ps2, pq2 = conv_temporal_bn_stats(y1, w2_mat, scale1, shift1,
                                          n_batch=N, depth=D, d_out=Do,
                                          tstride=t_stride, pad=p)
    M2 = N * Do * Ho * Wo
    scale2, shift2 = fold_bn(ps2, pq2, M2, g2, b2)
    out = bn_relu_apply(y2.reshape(M2, Cp), scale2, shift2, jnp.float32)

    # boundary only: back to NCDHW, drop channel padding.
    # TODO(synk): BatchNorm running_mean/running_var state updates are not
    # reproduced (forward uses training-mode batch statistics, as the module does).
    out = out.reshape(N, Do, Ho, Wo, Cp)[..., :Cout]
    return jnp.transpose(out, (0, 4, 1, 2, 3))


# --------------------------------------------------------------------------
if __name__ == "__main__":
    key = jax.random.PRNGKey(0)
    kx, kw1, kw2 = jax.random.split(key, 3)

    # Small shapes consistent with STConv3d(in_planes=4, out_planes=8,
    # kernel_size=3, stride=1, padding=1).
    N, Cin, Cout = 2, 4, 8
    D = H = W = 8
    ksz, stride, padding = 3, 1, 1

    x = jax.random.normal(kx, (N, Cin, D, H, W), dtype=jnp.float32)
    # conv weights ~ N(0, 0.01); bn weight=1, bias=0 (as in the module init)
    w1 = 0.01 * jax.random.normal(kw1, (Cout, Cin, 1, ksz, ksz), dtype=jnp.float32)
    w2 = 0.01 * jax.random.normal(kw2, (Cout, Cout, ksz, 1, 1), dtype=jnp.float32)
    gamma1 = jnp.ones((Cout,), jnp.float32)
    beta1 = jnp.zeros((Cout,), jnp.float32)
    gamma2 = jnp.ones((Cout,), jnp.float32)
    beta2 = jnp.zeros((Cout,), jnp.float32)

    out = st_conv3d(x, w1, w2, gamma1, beta1, gamma2, beta2,
                    stride=stride, padding=padding)
    out = jax.block_until_ready(out)

    # -------- pure-JAX reference (mirrors the bf16 matmul / storage precision)
    t_stride = stride[0] if isinstance(stride, tuple) else stride
    s_stride = stride[-1] if isinstance(stride, tuple) else stride

    def ref_bn_relu(c, gamma, beta):
        m = c.mean(axis=(0, 2, 3, 4), keepdims=True)
        v = c.var(axis=(0, 2, 3, 4), keepdims=True)        # biased, as PyTorch normalizes
        scale = gamma.reshape(1, -1, 1, 1, 1) * jax.lax.rsqrt(v + _EPS)
        shift = beta.reshape(1, -1, 1, 1, 1) - m * scale
        return jnp.maximum(c.astype(jnp.bfloat16).astype(jnp.float32) * scale + shift, 0.0)

    c1 = jax.lax.conv_general_dilated(
        x.astype(jnp.bfloat16), w1.astype(jnp.bfloat16),
        window_strides=(1, s_stride, s_stride),
        padding=[(0, 0), (padding, padding), (padding, padding)],
        dimension_numbers=("NCDHW", "OIDHW", "NCDHW"),
        preferred_element_type=jnp.float32)
    y1_ref = ref_bn_relu(c1, gamma1, beta1)
    c2 = jax.lax.conv_general_dilated(
        y1_ref.astype(jnp.bfloat16), w2.astype(jnp.bfloat16),
        window_strides=(t_stride, 1, 1),
        padding=[(padding, padding), (0, 0), (0, 0)],
        dimension_numbers=("NCDHW", "OIDHW", "NCDHW"),
        preferred_element_type=jnp.float32)
    ref = ref_bn_relu(c2, gamma2, beta2)

    assert out.shape == ref.shape == (N, Cout, D, H, W), out.shape
    max_err = float(jnp.max(jnp.abs(out - ref)))
    assert jnp.allclose(out, ref, atol=1e-2, rtol=1e-2), f"mismatch, max_err={max_err}"

    print("KERNEL_OK")
</pallas_src>

<mosaic_0001>
module attributes {stable_mosaic.version = 11 : i64} {
  func.func @_conv_spatial_kernel(%arg0: i32, %arg1: i32, %arg2: memref<1x10x10x128xbf16, #tpu.memory_space<vmem>>, %arg3: memref<1152x128xbf16, #tpu.memory_space<vmem>>, %arg4: memref<1x8x8x128xbf16, #tpu.memory_space<vmem>>, %arg5: memref<1x1x1x128xf32, #tpu.memory_space<vmem>>, %arg6: memref<1x1x1x128xf32, #tpu.memory_space<vmem>>) attributes {dimension_semantics = [#tpu.dimension_semantics<parallel>, #tpu.dimension_semantics<parallel>], iteration_bounds = array<i64: 16, 1>, scalar_prefetch = 0 : i64, scratch_operands = 0 : i64, tpu.core_type = #tpu.core_type<tc>, window_params = [{transform_indices = @transform_0, window_bounds = array<i64: 1, 10, 10, 128>}, {pipeline_mode = #tpu.pipeline_mode<synchronous>, transform_indices = @transform_1, window_bounds = array<i64: 1152, 128>}, {transform_indices = @transform_2, window_bounds = array<i64: 1, 8, 8, 128>}, {transform_indices = @transform_3, window_bounds = array<i64: 1, 1, 1, 128>}, {transform_indices = @transform_4, window_bounds = array<i64: 1, 1, 1, 128>}]} {
    %c8_i32 = arith.constant 8 : i32
    %0 = arith.muli %arg1, %c8_i32 : i32
    %c0_i32 = arith.constant 0 : i32
    %1 = arith.addi %0, %c0_i32 : i32
    %c0 = arith.constant 0 : index
    %2 = arith.index_cast %1 : i32 to index
    %c0_0 = arith.constant 0 : index
    %c0_1 = arith.constant 0 : index
    %3 = vector.load %arg2[%c0, %2, %c0_0, %c0_1] : memref<1x10x10x128xbf16, #tpu.memory_space<vmem>>, vector<1x8x8x128xbf16>
    %4 = vector.shape_cast %3 : vector<1x8x8x128xbf16> to vector<8x8x128xbf16>
    %c0_i32_2 = arith.constant 0 : i32
    %5 = arith.addi %0, %c0_i32_2 : i32
    %c0_3 = arith.constant 0 : index
    %6 = arith.index_cast %5 : i32 to index
    %c1 = arith.constant 1 : index
    %c0_4 = arith.constant 0 : index
    %7 = vector.load %arg2[%c0_3, %6, %c1, %c0_4] : memref<1x10x10x128xbf16, #tpu.memory_space<vmem>>, vector<1x8x8x128xbf16>
    %8 = vector.shape_cast %7 : vector<1x8x8x128xbf16> to vector<8x8x128xbf16>
    %c0_i32_5 = arith.constant 0 : i32
    %9 = arith.addi %0, %c0_i32_5 : i32
    %c0_6 = arith.constant 0 : index
    %10 = arith.index_cast %9 : i32 to index
    %c2 = arith.constant 2 : index
    %c0_7 = arith.constant 0 : index
    %11 = vector.load %arg2[%c0_6, %10, %c2, %c0_7] : memref<1x10x10x128xbf16, #tpu.memory_space<vmem>>, vector<1x8x8x128xbf16>
    %12 = vector.shape_cast %11 : vector<1x8x8x128xbf16> to vector<8x8x128xbf16>
    %c1_i32 = arith.constant 1 : i32
    %13 = arith.addi %0, %c1_i32 : i32
    %c0_8 = arith.constant 0 : index
    %14 = arith.index_cast %13 : i32 to index
    %c0_9 = arith.constant 0 : index
    %c0_10 = arith.constant 0 : index
    %15 = vector.load %arg2[%c0_8, %14, %c0_9, %c0_10] : memref<1x10x10x128xbf16, #tpu.memory_space<vmem>>, vector<1x8x8x128xbf16>
    %16 = vector.shape_cast %15 : vector<1x8x8x128xbf16> to vector<8x8x128xbf16>
    %c1_i32_11 = arith.constant 1 : i32
    %17 = arith.addi %0, %c1_i32_11 : i32
    %c0_12 = arith.constant 0 : index
    %18 = arith.index_cast %17 : i32 to index
    %c1_13 = arith.constant 1 : index
    %c0_14 = arith.constant 0 : index
    %19 = vector.load %arg2[%c0_12, %18, %c1_13, %c0_14] : memref<1x10x10x128xbf16, #tpu.memory_space<vmem>>, vector<1x8x8x128xbf16>
    %20 = vector.shape_cast %19 : vector<1x8x8x128xbf16> to vector<8x8x128xbf16>
    %c1_i32_15 = arith.constant 1 : i32
    %21 = arith.addi %0, %c1_i32_15 : i32
    %c0_16 = arith.constant 0 : index
    %22 = arith.index_cast %21 : i32 to index
    %c2_17 = arith.constant 2 : index
    %c0_18 = arith.constant 0 : index
    %23 = vector.load %arg2[%c0_16, %22, %c2_17, %c0_18] : memref<1x10x10x128xbf16, #tpu.memory_space<vmem>>, vector<1x8x8x128xbf16>
    %24 = vector.shape_cast %23 : vector<1x8x8x128xbf16> to vector<8x8x128xbf16>
    %c2_i32 = arith.constant 2 : i32
    %25 = arith.addi %0, %c2_i32 : i32
    %c0_19 = arith.constant 0 : index
    %26 = arith.index_cast %25 : i32 to index
    %c0_20 = arith.constant 0 : index
    %c0_21 = arith.constant 0 : index
    %27 = vector.load %arg2[%c0_19, %26, %c0_20, %c0_21] : memref<1x10x10x128xbf16, #tpu.memory_space<vmem>>, vector<1x8x8x128xbf16>
    %28 = vector.shape_cast %27 : vector<1x8x8x128xbf16> to vector<8x8x128xbf16>
    %c2_i32_22 = arith.constant 2 : i32
    %29 = arith.addi %0, %c2_i32_22 : i32
    %c0_23 = arith.constant 0 : index
    %30 = arith.index_cast %29 : i32 to index
    %c1_24 = arith.constant 1 : index
    %c0_25 = arith.constant 0 : index
    %31 = vector.load %arg2[%c0_23, %30, %c1_24, %c0_25] : memref<1x10x10x128xbf16, #tpu.memory_space<vmem>>, vector<1x8x8x128xbf16>
    %32 = vector.shape_cast %31 : vector<1x8x8x128xbf16> to vector<8x8x128xbf16>
    %c2_i32_26 = arith.constant 2 : i32
    %33 = arith.addi %0, %c2_i32_26 : i32
    %c0_27 = arith.constant 0 : index
    %34 = arith.index_cast %33 : i32 to index
    %c2_28 = arith.constant 2 : index
    %c0_29 = arith.constant 0 : index
    %35 = vector.load %arg2[%c0_27, %34, %c2_28, %c0_29] : memref<1x10x10x128xbf16, #tpu.memory_space<vmem>>, vector<1x8x8x128xbf16>
    %36 = vector.shape_cast %35 : vector<1x8x8x128xbf16> to vector<8x8x128xbf16>
    %37 = tpu.concatenate %4, %8, %12, %16, %20, %24, %28, %32, %36 in 2 : vector<8x8x128xbf16>, vector<8x8x128xbf16>, vector<8x8x128xbf16>, vector<8x8x128xbf16>, vector<8x8x128xbf16>, vector<8x8x128xbf16>, vector<8x8x128xbf16>, vector<8x8x128xbf16>, vector<8x8x128xbf16> -> vector<8x8x1152xbf16>
    %38 = vector.shape_cast %37 : vector<8x8x1152xbf16> to vector<64x1152xbf16>
    %c0_30 = arith.constant 0 : index
    %c0_31 = arith.constant 0 : index
    %39 = vector.load %arg3[%c0_30, %c0_31] : memref<1152x128xbf16, #tpu.memory_space<vmem>>, vector<1152x128xbf16>
    %cst = arith.constant dense<0.000000e+00> : vector<64x128xf32>
    %40 = tpu.matmul %38, %39, %cst {dimension_numbers = #tpu.dot_dimension_numbers<[1], [0], [0], [1], [0, 0, 1, 1], [], []>} : vector<64x1152xbf16>, vector<1152x128xbf16>, vector<64x128xf32> -> vector<64x128xf32>
    %41 = vector.shape_cast %40 : vector<64x128xf32> to vector<8x8x128xf32>
    %42 = arith.truncf %41 : vector<8x8x128xf32> to vector<8x8x128xbf16>
    %c0_32 = arith.constant 0 : index
    %c0_33 = arith.constant 0 : index
    %c0_34 = arith.constant 0 : index
    %c0_35 = arith.constant 0 : index
    %43 = vector.load %arg4[%c0_32, %c0_33, %c0_34, %c0_35] : memref<1x8x8x128xbf16, #tpu.memory_space<vmem>>, vector<1x8x8x128xbf16>
    %44 = vector.shape_cast %43 : vector<1x8x8x128xbf16> to vector<8x8x128xbf16>
    %45 = vector.shape_cast %42 : vector<8x8x128xbf16> to vector<1x8x8x128xbf16>
    tpu.vector_store %arg4[%c0_32, %c0_33, %c0_34, %c0_35], %45 {strides = array<i32>} : memref<1x8x8x128xbf16, #tpu.memory_space<vmem>>, vector<1x8x8x128xbf16>,
    %cst_36 = arith.constant dense<0.000000e+00> : vector<128xf32>
    %46 = vector.multi_reduction <add>, %40, %cst_36 [0] : vector<64x128xf32> to vector<128xf32>
    %47 = vector.shape_cast %46 : vector<128xf32> to vector<1x128xf32>
    %c0_37 = arith.constant 0 : index
    %c0_38 = arith.constant 0 : index
    %c0_39 = arith.constant 0 : index
    %c0_40 = arith.constant 0 : index
    %48 = vector.load %arg5[%c0_37, %c0_38, %c0_39, %c0_40] : memref<1x1x1x128xf32, #tpu.memory_space<vmem>>, vector<1x1x1x128xf32>
    %49 = vector.shape_cast %48 : vector<1x1x1x128xf32> to vector<1x128xf32>
    %50 = vector.shape_cast %47 : vector<1x128xf32> to vector<1x1x1x128xf32>
    tpu.vector_store %arg5[%c0_37, %c0_38, %c0_39, %c0_40], %50 {strides = array<i32>} : memref<1x1x1x128xf32, #tpu.memory_space<vmem>>, vector<1x1x1x128xf32>,
    %51 = arith.mulf %40, %40 : vector<64x128xf32>
    %cst_41 = arith.constant dense<0.000000e+00> : vector<128xf32>
    %52 = vector.multi_reduction <add>, %51, %cst_41 [0] : vector<64x128xf32> to vector<128xf32>
    %53 = vector.shape_cast %52 : vector<128xf32> to vector<1x128xf32>
    %c0_42 = arith.constant 0 : index
    %c0_43 = arith.constant 0 : index
    %c0_44 = arith.constant 0 : index
    %c0_45 = arith.constant 0 : index
    %54 = vector.load %arg6[%c0_42, %c0_43, %c0_44, %c0_45] : memref<1x1x1x128xf32, #tpu.memory_space<vmem>>, vector<1x1x1x128xf32>
    %55 = vector.shape_cast %54 : vector<1x1x1x128xf32> to vector<1x128xf32>
    %56 = vector.shape_cast %53 : vector<1x128xf32> to vector<1x1x1x128xf32>
    tpu.vector_store %arg6[%c0_42, %c0_43, %c0_44, %c0_45], %56 {strides = array<i32>} : memref<1x1x1x128xf32, #tpu.memory_space<vmem>>, vector<1x1x1x128xf32>,
    return
  }
  func.func @transform_0(%arg0: i32, %arg1: i32) -> (i32, i32, i32, i32) {
    %c0_i32 = arith.constant 0 : i32
    %c0_i32_0 = arith.constant 0 : i32
    %c0_i32_1 = arith.constant 0 : i32
    %c0_i32_2 = arith.constant 0 : i32
    return %arg0, %c0_i32, %c0_i32_0, %c0_i32_1 : i32, i32, i32, i32
  }
  func.func @transform_1(%arg0: i32, %arg1: i32) -> (i32, i32) {
    %c0_i32 = arith.constant 0 : i32
    %c0_i32_0 = arith.constant 0 : i32
    %c0_i32_1 = arith.constant 0 : i32
    return %c0_i32, %c0_i32_0 : i32, i32
  }
  func.func @transform_2(%arg0: i32, %arg1: i32) -> (i32, i32, i32, i32) {
    %c0_i32 = arith.constant 0 : i32
    %c0_i32_0 = arith.constant 0 : i32
    %c0_i32_1 = arith.constant 0 : i32
    return %arg0, %arg1, %c0_i32, %c0_i32_0 : i32, i32, i32, i32
  }
  func.func @transform_3(%arg0: i32, %arg1: i32) -> (i32, i32, i32, i32) {
    %c0_i32 = arith.constant 0 : i32
    %c0_i32_0 = arith.constant 0 : i32
    %c0_i32_1 = arith.constant 0 : i32
    return %arg0, %arg1, %c0_i32, %c0_i32_0 : i32, i32, i32, i32
  }
  func.func @transform_4(%arg0: i32, %arg1: i32) -> (i32, i32, i32, i32) {
    %c0_i32 = arith.constant 0 : i32
    %c0_i32_0 = arith.constant 0 : i32
    %c0_i32_1 = arith.constant 0 : i32
    return %arg0, %arg1, %c0_i32, %c0_i32_0 : i32, i32, i32, i32
  }
}

module attributes {stable_mosaic.version = 11 : i64} {
  func.func @_bn_relu_kernel(%arg0: i32, %arg1: memref<1024x128xbf16, #tpu.memory_space<vmem>>, %arg2: memref<1x128xf32, #tpu.memory_space<vmem>>, %arg3: memref<1x128xf32, #tpu.memory_space<vmem>>, %arg4: memref<1024x128xf32, #tpu.memory_space<vmem>>) attributes {dimension_semantics = [#tpu.dimension_semantics<parallel>], iteration_bounds = array<i64: 1>, scalar_prefetch = 0 : i64, scratch_operands = 0 : i64, tpu.core_type = #tpu.core_type<tc>, window_params = [{transform_indices = @transform_0, window_bounds = array<i64: 1024, 128>}, {pipeline_mode = #tpu.pipeline_mode<synchronous>, transform_indices = @transform_1, window_bounds = array<i64: 1, 128>}, {pipeline_mode = #tpu.pipeline_mode<synchronous>, transform_indices = @transform_2, window_bounds = array<i64: 1, 128>}, {transform_indices = @transform_3, window_bounds = array<i64: 1024, 128>}]} {
    %c0 = arith.constant 0 : index
    %c0_0 = arith.constant 0 : index
    %0 = vector.load %arg1[%c0, %c0_0] : memref<1024x128xbf16, #tpu.memory_space<vmem>>, vector<1024x128xbf16>
    %1 = arith.extf %0 : vector<1024x128xbf16> to vector<1024x128xf32>
    %c0_1 = arith.constant 0 : index
    %c0_2 = arith.constant 0 : index
    %2 = vector.load %arg2[%c0_1, %c0_2] : memref<1x128xf32, #tpu.memory_space<vmem>>, vector<1x128xf32>
    %3 = vector.broadcast %2 : vector<1x128xf32> to vector<1024x128xf32>
    %4 = arith.mulf %1, %3 : vector<1024x128xf32>
    %c0_3 = arith.constant 0 : index
    %c0_4 = arith.constant 0 : index
    %5 = vector.load %arg3[%c0_3, %c0_4] : memref<1x128xf32, #tpu.memory_space<vmem>>, vector<1x128xf32>
    %6 = vector.broadcast %5 : vector<1x128xf32> to vector<1024x128xf32>
    %7 = arith.addf %4, %6 : vector<1024x128xf32>
    %cst = arith.constant 0.000000e+00 : f32
    %8 = vector.broadcast %cst : f32 to vector<1024x128xf32>
    %9 = arith.maximumf %7, %8 : vector<1024x128xf32>
    %c0_5 = arith.constant 0 : index
    %c0_6 = arith.constant 0 : index
    %10 = vector.load %arg4[%c0_5, %c0_6] : memref<1024x128xf32, #tpu.memory_space<vmem>>, vector<1024x128xf32>
    tpu.vector_store %arg4[%c0_5, %c0_6], %9 {strides = array<i32>} : memref<1024x128xf32, #tpu.memory_space<vmem>>, vector<1024x128xf32>,
    return
  }
  func.func @transform_0(%arg0: i32) -> (i32, i32) {
    %c0_i32 = arith.constant 0 : i32
    %c0_i32_0 = arith.constant 0 : i32
    return %arg0, %c0_i32 : i32, i32
  }
  func.func @transform_1(%arg0: i32) -> (i32, i32) {
    %c0_i32 = arith.constant 0 : i32
    %c0_i32_0 = arith.constant 0 : i32
    %c0_i32_1 = arith.constant 0 : i32
    return %c0_i32, %c0_i32_0 : i32, i32
  }
  func.func @transform_2(%arg0: i32) -> (i32, i32) {
    %c0_i32 = arith.constant 0 : i32
    %c0_i32_0 = arith.constant 0 : i32
    %c0_i32_1 = arith.constant 0 : i32
    return %c0_i32, %c0_i32_0 : i32, i32
  }
  func.func @transform_3(%arg0: i32) -> (i32, i32) {
    %c0_i32 = arith.constant 0 : i32
    %c0_i32_0 = arith.constant 0 : i32
    return %arg0, %c0_i32 : i32, i32
  }
}

module attributes {stable_mosaic.version = 11 : i64} {
  func.func @_conv_temporal_kernel(%arg0: i32, %arg1: i32, %arg2: i32, %arg3: i32, %arg4: memref<1x8x8x128xbf16, #tpu.memory_space<vmem>>, %arg5: memref<3x128x128xbf16, #tpu.memory_space<vmem>>, %arg6: memref<1x128xf32, #tpu.memory_space<vmem>>, %arg7: memref<1x128xf32, #tpu.memory_space<vmem>>, %arg8: memref<1x8x8x128xbf16, #tpu.memory_space<vmem>>, %arg9: memref<1x1x1x128xf32, #tpu.memory_space<vmem>>, %arg10: memref<1x1x1x128xf32, #tpu.memory_space<vmem>>, %arg11: memref<64x128xf32, #tpu.memory_space<vmem>>) attributes {dimension_semantics = [#tpu.dimension_semantics<parallel>, #tpu.dimension_semantics<parallel>, #tpu.dimension_semantics<parallel>, #tpu.dimension_semantics<arbitrary>], iteration_bounds = array<i64: 2, 8, 1, 3>, scalar_prefetch = 0 : i64, scratch_operands = 1 : i64, tpu.core_type = #tpu.core_type<tc>, window_params = [{transform_indices = @transform_0, window_bounds = array<i64: 1, 8, 8, 128>}, {pipeline_mode = #tpu.pipeline_mode<synchronous>, transform_indices = @transform_1, window_bounds = array<i64: 3, 128, 128>}, {pipeline_mode = #tpu.pipeline_mode<synchronous>, transform_indices = @transform_2, window_bounds = array<i64: 1, 128>}, {pipeline_mode = #tpu.pipeline_mode<synchronous>, transform_indices = @transform_3, window_bounds = array<i64: 1, 128>}, {transform_indices = @transform_4, window_bounds = array<i64: 1, 8, 8, 128>}, {transform_indices = @transform_5, window_bounds = array<i64: 1, 1, 1, 128>}, {transform_indices = @transform_6, window_bounds = array<i64: 1, 1, 1, 128>}]} {
    %c1_i32 = arith.constant 1 : i32
    %0 = arith.muli %arg1, %c1_i32 : i32
    %1 = arith.addi %0, %arg3 : i32
    %c1_i32_0 = arith.constant 1 : i32
    %2 = arith.subi %1, %c1_i32_0 : i32
    %c0_i32 = arith.constant 0 : i32
    %3 = arith.cmpi eq, %arg3, %c0_i32 : i32
    %4 = arith.extui %3 : i1 to i32
    %c0_i32_1 = arith.constant 0 : i32
    %5 = arith.cmpi ne, %4, %c0_i32_1 : i32
    scf.if %5 {
      %cst = arith.constant 0.000000e+00 : f32
      %14 = vector.broadcast %cst : f32 to vector<64x128xf32>
      %c0 = arith.constant 0 : index
      %c0_5 = arith.constant 0 : index
      %15 = vector.load %arg11[%c0, %c0_5] : memref<64x128xf32, #tpu.memory_space<vmem>>, vector<64x128xf32>
      tpu.vector_store %arg11[%c0, %c0_5], %14 {strides = array<i32>} : memref<64x128xf32, #tpu.memory_space<vmem>>, vector<64x128xf32>,
    } else {
    }
    %c0_i32_2 = arith.constant 0 : i32
    %6 = arith.cmpi sge, %2, %c0_i32_2 : i32
    %c8_i32 = arith.constant 8 : i32
    %7 = arith.cmpi slt, %2, %c8_i32 : i32
    %8 = arith.andi %6, %7 : i1
    %9 = arith.extui %8 : i1 to i32
    %c0_i32_3 = arith.constant 0 : i32
    %10 = arith.cmpi ne, %9, %c0_i32_3 : i32
    scf.if %10 {
      %c0 = arith.constant 0 : index
      %c0_5 = arith.constant 0 : index
      %c0_6 = arith.constant 0 : index
      %c0_7 = arith.constant 0 : index
      %14 = vector.load %arg4[%c0, %c0_5, %c0_6, %c0_7] : memref<1x8x8x128xbf16, #tpu.memory_space<vmem>>, vector<1x8x8x128xbf16>
      %15 = vector.shape_cast %14 : vector<1x8x8x128xbf16> to vector<8x8x128xbf16>
      %16 = vector.shape_cast %15 : vector<8x8x128xbf16> to vector<64x128xbf16>
      %17 = arith.extf %16 : vector<64x128xbf16> to vector<64x128xf32>
      %c0_8 = arith.constant 0 : index
      %c0_9 = arith.constant 0 : index
      %18 = vector.load %arg6[%c0_8, %c0_9] : memref<1x128xf32, #tpu.memory_space<vmem>>, vector<1x128xf32>
      %19 = vector.broadcast %18 : vector<1x128xf32> to vector<64x128xf32>
      %20 = arith.mulf %17, %19 : vector<64x128xf32>
      %c0_10 = arith.constant 0 : index
      %c0_11 = arith.constant 0 : index
      %21 = vector.load %arg7[%c0_10, %c0_11] : memref<1x128xf32, #tpu.memory_space<vmem>>, vector<1x128xf32>
      %22 = vector.broadcast %21 : vector<1x128xf32> to vector<64x128xf32>
      %23 = arith.addf %20, %22 : vector<64x128xf32>
      %cst = arith.constant 0.000000e+00 : f32
      %24 = vector.broadcast %cst : f32 to vector<64x128xf32>
      %25 = arith.maximumf %23, %24 : vector<64x128xf32>
      %c0_12 = arith.constant 0 : index
      %c0_13 = arith.constant 0 : index
      %26 = vector.load %arg11[%c0_12, %c0_13] : memref<64x128xf32, #tpu.memory_space<vmem>>, vector<64x128xf32>
      %27 = arith.truncf %25 : vector<64x128xf32> to vector<64x128xbf16>
      %28 = arith.index_cast %arg3 : i32 to index
      %c0_14 = arith.constant 0 : index
      %c0_15 = arith.constant 0 : index
      %29 = vector.load %arg5[%28, %c0_14, %c0_15] : memref<3x128x128xbf16, #tpu.memory_space<vmem>>, vector<1x128x128xbf16>
      %30 = vector.shape_cast %29 : vector<1x128x128xbf16> to vector<128x128xbf16>
      %cst_16 = arith.constant dense<0.000000e+00> : vector<64x128xf32>
      %31 = tpu.matmul %27, %30, %cst_16 {dimension_numbers = #tpu.dot_dimension_numbers<[1], [0], [0], [1], [0, 0, 1, 1], [], []>} : vector<64x128xbf16>, vector<128x128xbf16>, vector<64x128xf32> -> vector<64x128xf32>
      %32 = arith.addf %26, %31 : vector<64x128xf32>
      %c0_17 = arith.constant 0 : index
      %c0_18 = arith.constant 0 : index
      %33 = vector.load %arg11[%c0_17, %c0_18] : memref<64x128xf32, #tpu.memory_space<vmem>>, vector<64x128xf32>
      tpu.vector_store %arg11[%c0_17, %c0_18], %32 {strides = array<i32>} : memref<64x128xf32, #tpu.memory_space<vmem>>, vector<64x128xf32>,
    } else {
    }
    %c2_i32 = arith.constant 2 : i32
    %11 = arith.cmpi eq, %arg3, %c2_i32 : i32
    %12 = arith.extui %11 : i1 to i32
    %c0_i32_4 = arith.constant 0 : i32
    %13 = arith.cmpi ne, %12, %c0_i32_4 : i32
    scf.if %13 {
      %c0 = arith.constant 0 : index
      %c0_5 = arith.constant 0 : index
      %14 = vector.load %arg11[%c0, %c0_5] : memref<64x128xf32, #tpu.memory_space<vmem>>, vector<64x128xf32>
      %15 = vector.shape_cast %14 : vector<64x128xf32> to vector<8x8x128xf32>
      %16 = arith.truncf %15 : vector<8x8x128xf32> to vector<8x8x128xbf16>
      %c0_6 = arith.constant 0 : index
      %c0_7 = arith.constant 0 : index
      %c0_8 = arith.constant 0 : index
      %c0_9 = arith.constant 0 : index
      %17 = vector.load %arg8[%c0_6, %c0_7, %c0_8, %c0_9] : memref<1x8x8x128xbf16, #tpu.memory_space<vmem>>, vector<1x8x8x128xbf16>
      %18 = vector.shape_cast %17 : vector<1x8x8x128xbf16> to vector<8x8x128xbf16>
      %19 = vector.shape_cast %16 : vector<8x8x128xbf16> to vector<1x8x8x128xbf16>
      tpu.vector_store %arg8[%c0_6, %c0_7, %c0_8, %c0_9], %19 {strides = array<i32>} : memref<1x8x8x128xbf16, #tpu.memory_space<vmem>>, vector<1x8x8x128xbf16>,
      %cst = arith.constant dense<0.000000e+00> : vector<128xf32>
      %20 = vector.multi_reduction <add>, %14, %cst [0] : vector<64x128xf32> to vector<128xf32>
      %21 = vector.shape_cast %20 : vector<128xf32> to vector<1x128xf32>
      %c0_10 = arith.constant 0 : index
      %c0_11 = arith.constant 0 : index
      %c0_12 = arith.constant 0 : index
      %c0_13 = arith.constant 0 : index
      %22 = vector.load %arg9[%c0_10, %c0_11, %c0_12, %c0_13] : memref<1x1x1x128xf32, #tpu.memory_space<vmem>>, vector<1x1x1x128xf32>
      %23 = vector.shape_cast %22 : vector<1x1x1x128xf32> to vector<1x128xf32>
      %24 = vector.shape_cast %21 : vector<1x128xf32> to vector<1x1x1x128xf32>
      tpu.vector_store %arg9[%c0_10, %c0_11, %c0_12, %c0_13], %24 {strides = array<i32>} : memref<1x1x1x128xf32, #tpu.memory_space<vmem>>, vector<1x1x1x128xf32>,
      %25 = arith.mulf %14, %14 : vector<64x128xf32>
      %cst_14 = arith.constant dense<0.000000e+00> : vector<128xf32>
      %26 = vector.multi_reduction <add>, %25, %cst_14 [0] : vector<64x128xf32> to vector<128xf32>
      %27 = vector.shape_cast %26 : vector<128xf32> to vector<1x128xf32>
      %c0_15 = arith.constant 0 : index
      %c0_16 = arith.constant 0 : index
      %c0_17 = arith.constant 0 : index
      %c0_18 = arith.constant 0 : index
      %28 = vector.load %arg10[%c0_15, %c0_16, %c0_17, %c0_18] : memref<1x1x1x128xf32, #tpu.memory_space<vmem>>, vector<1x1x1x128xf32>
      %29 = vector.shape_cast %28 : vector<1x1x1x128xf32> to vector<1x128xf32>
      %30 = vector.shape_cast %27 : vector<1x128xf32> to vector<1x1x1x128xf32>
      tpu.vector_store %arg10[%c0_15, %c0_16, %c0_17, %c0_18], %30 {strides = array<i32>} : memref<1x1x1x128xf32, #tpu.memory_space<vmem>>, vector<1x1x1x128xf32>,
    } else {
    }
    return
  }
  func.func @transform_0(%arg0: i32, %arg1: i32, %arg2: i32, %arg3: i32) -> (i32, i32, i32, i32) {
    %c1_i32 = arith.constant 1 : i32
    %0 = arith.muli %arg1, %c1_i32 : i32
    %1 = arith.addi %0, %arg3 : i32
    %c1_i32_0 = arith.constant 1 : i32
    %2 = arith.subi %1, %c1_i32_0 : i32
    %c0_i32 = arith.constant 0 : i32
    %c7_i32 = arith.constant 7 : i32
    %3 = arith.maxsi %c0_i32, %2 : i32
    %4 = arith.minsi %c7_i32, %3 : i32
    %c8_i32 = arith.constant 8 : i32
    %5 = arith.muli %arg0, %c8_i32 : i32
    %6 = arith.addi %5, %4 : i32
    %c0_i32_1 = arith.constant 0 : i32
    %c0_i32_2 = arith.constant 0 : i32
    %c0_i32_3 = arith.constant 0 : i32
    return %6, %arg2, %c0_i32_1, %c0_i32_2 : i32, i32, i32, i32
  }
  func.func @transform_1(%arg0: i32, %arg1: i32, %arg2: i32, %arg3: i32) -> (i32, i32, i32) {
    %c0_i32 = arith.constant 0 : i32
    %c0_i32_0 = arith.constant 0 : i32
    %c0_i32_1 = arith.constant 0 : i32
    %c0_i32_2 = arith.constant 0 : i32
    return %c0_i32, %c0_i32_0, %c0_i32_1 : i32, i32, i32
  }
  func.func @transform_2(%arg0: i32, %arg1: i32, %arg2: i32, %arg3: i32) -> (i32, i32) {
    %c0_i32 = arith.constant 0 : i32
    %c0_i32_0 = arith.constant 0 : i32
    %c0_i32_1 = arith.constant 0 : i32
    return %c0_i32, %c0_i32_0 : i32, i32
  }
  func.func @transform_3(%arg0: i32, %arg1: i32, %arg2: i32, %arg3: i32) -> (i32, i32) {
    %c0_i32 = arith.constant 0 : i32
    %c0_i32_0 = arith.constant 0 : i32
    %c0_i32_1 = arith.constant 0 : i32
    return %c0_i32, %c0_i32_0 : i32, i32
  }
  func.func @transform_4(%arg0: i32, %arg1: i32, %arg2: i32, %arg3: i32) -> (i32, i32, i32, i32) {
    %c8_i32 = arith.constant 8 : i32
    %0 = arith.muli %arg0, %c8_i32 : i32
    %1 = arith.addi %0, %arg1 : i32
    %c0_i32 = arith.constant 0 : i32
    %c0_i32_0 = arith.constant 0 : i32
    %c0_i32_1 = arith.constant 0 : i32
    return %1, %arg2, %c0_i32, %c0_i32_0 : i32, i32, i32, i32
  }
  func.func @transform_5(%arg0: i32, %arg1: i32, %arg2: i32, %arg3: i32) -> (i32, i32, i32, i32) {
    %c8_i32 = arith.constant 8 : i32
    %0 = arith.muli %arg0, %c8_i32 : i32
    %1 = arith.addi %0, %arg1 : i32
    %c0_i32 = arith.constant 0 : i32
    %c0_i32_0 = arith.constant 0 : i32
    %c0_i32_1 = arith.constant 0 : i32
    return %1, %arg2, %c0_i32, %c0_i32_0 : i32, i32, i32, i32
  }
  func.func @transform_6(%arg0: i32, %arg1: i32, %arg2: i32, %arg3: i32) -> (i32, i32, i32, i32) {
    %c8_i32 = arith.constant 8 : i32
    %0 = arith.muli %arg0, %c8_i32 : i32
    %1 = arith.addi %0, %arg1 : i32
    %c0_i32 = arith.constant 0 : i32
    %c0_i32_0 = arith.constant 0 : i32
    %c0_i32_1 = arith.constant 0 : i32
    return %1, %arg2, %c0_i32, %c0_i32_0 : i32, i32, i32, i32
  }
}

</mosaic_0001>

<bundles_post_ra>
// kernel: st_conv3d.4
= control target key start
LH: loop header
LB: loop body
LE: loop exit
PB: predicated region body
PF: predicated region fallthrough
CT: control target
= control target key end

     0   :  { %s1228_s21 = smov 0   ;;  %s1230_s22 = smov 0   ;;  %s1365_s0 = inlined_call_operand.vmem [shape: bf16[16,8,8,128], index: 0, kind: input, shape index: {}]   ;;  %s1366_s1 = inlined_call_operand.vmem [shape: bf16[3,128,128], index: 1, kind: input, shape index: {}]   ;;  %s1367_s2 = inlined_call_operand.vmem [shape: f32[1,128], index: 2, kind: input, shape index: {}]   ;;  %s1368_s3 = inlined_call_operand.vmem [shape: f32[1,128], index: 3, kind: input, shape index: {}]   ;;  %s1369_s4 = inlined_call_operand.vmem [shape: bf16[16,8,8,128], index: 4, kind: output, shape index: {0}]   ;;  %s1370_s5 = inlined_call_operand.vmem [shape: f32[16,1,1,128], index: 5, kind: output, shape index: {1}]   ;;  %s1371_s6 = inlined_call_operand.vmem [shape: f32[16,1,1,128], index: 6, kind: output, shape index: {2}]  }
   0x1   :  { %s1232_s23 = smov 0   ;;  %s1234_s24 = smov 0  }
   0x2   :  { %s1236_s25 = smov 0   ;;  %s1238_s26 = smov 0  }
   0x3   :  { %s1240_s27 = smov 0  }
   0x4 LB: > { %s32_s28 = sadd.s32 1, %s1178_s24  ;;  %s39_s29 = sadd.s32 1, %s1182_s25  ;;  %s1190_s27 = sphi %s1240_s27, %s17_s27   ;;  %s1186_s26 = sphi %s1238_s26, %s1383_s26   ;;  %s1182_s25 = sphi %s1236_s25, %s1382_s25   ;;  %s1178_s24 = sphi %s1234_s24, %s1381_s24   ;;  %s1174_s23 = sphi %s1232_s23, %s1380_s23   ;;  %s1170_s22 = sphi %s1230_s22, %s1379_s22   ;;  %s1166_s21 = sphi %s1228_s21, %s1378_s21  }
   0x5   : > { %p33_p0 = scmp.ge.s32.totalorder %s32_s28, 3  ;;  %p936_p1 = scmp.ge.s32.totalorder %s1190_s27, 1 }
   0x6   : > { %p300_p2 = scmp.lt.s32.totalorder %s1190_s27, 49  ;;  %s43_s30 = sadd.s32 1, %s1186_s26 }
   0x7   : > { %s1385_s28 = smov (%p33_p0, %s32_s28), 0  ;;  %s1387_s29 = smov (!%p33_p0, %s39_s29), %s1182_s25 }
   0x8   : > { %1372 = sst [smem:[#allocation3_spill]] %s1385_s28  ;;  %p301_p3 = pnand %p936_p1, %p300_p2 }
   0x9   : > { %p41_p4 = scmp.ge.s32.totalorder %s1387_s29, 8  ;;  %s364_s7 = sadd.s32 (!%p301_p3), %s1166_s21, %s1170_s22 }
   0xa   : > { %s943_s8 = sshll.u32 (!%p301_p3), %s1174_s23, 3  ;;  %s1276_s9 = sadd.s32 (!%p301_p3), 4294967295, %s364_s7 }
   0xb   : > { %s1389_s29 = smov (%p41_p4, %s1387_s29), 0  ;;  %s1391_s30 = smov (!%p41_p4, %s43_s30), %s1186_s26 }
   0xc   : > { %1373 = sst [smem:[#allocation4_spill]] %s1389_s29  ;;  %p45_p5 = scmp.ge.s32.totalorder %s1391_s30, 2 }
   0xd   : > { %304 = sbr.rel (%p301_p3) target bundleno = 314 (0x13a), region = 36  ;;  %s391_s10 = sadd.s32 (!%p301_p3), %s1170_s22, %s943_s8 }
   0xe   : > { %s1393_s30 = smov (%p45_p5, %s1391_s30), 0  ;;  %p366_p6 = scmp.gt.s32.totalorder (!%p301_p3), %s1276_s9, 0 }
   0xf   : > { %1374 = sst [smem:[#allocation5_spill]] %s1393_s30  ;;  %p938_p7 = scmp.lt.s32.totalorder (!%p301_p3), %s1276_s9, 7 }
  0x10   : > { %p393_p8 = scmp.lt.s32.totalorder (!%p301_p3), %s391_s10, 15  ;;  %p952_p10 = scmp.ne.s32.totalorder (!%p301_p3), %s1166_s21, 0 }
  0x12   : > { %s367_s11 = scalar_select %p366_p6, %s1276_s9, 0 }
  0x13   : > { %s1395_s10 = smov (!%p393_p8, %s391_s10), 15 }
  0x14   : > { %s1397_s11 = smov (!%p938_p7, %s367_s11), 7  ;;  %s975_s12 = sshll.u32 %s1395_s10, 5 }
  0x15   : > { %s411_s15 = scalar_lea.vmem %s1370_s5, %s1395_s10  ;;  %s371_s16 = sadd.s32 %s1397_s11, %s943_s8 }
  0x16   : > { %s1291_s19 = scalar_lea.vmem %s1369_s4, %s975_s12  ;;  %p373_p9 = scmp.lt.s32.totalorder %s371_s16, 15 }
  0x17   : > { %s421_s23 = scalar_lea.vmem %s1371_s6, %s1395_s10  ;;  %430 = sbr.rel (%p952_p10) target bundleno = 33 (0x21), region = 40 }
  0x18   : > { %s1399_s16 = smov (!%p373_p9, %s371_s16), 15 }
  0x19   : > { %s974_s7 = sshll.u32 %s1399_s16, 5 }
  0x1a   : > { %s1300_s28 = scalar_lea.vmem %s1365_s0, %s974_s7 }
  0x1c   : > { %v1192_v0 = vmov 0.0  }
  0x1d   : > { %431 = vst [vmem:[#allocation2 + $0x30] sm:$0xff] %v1192_v0  ;;  %432 = vst [vmem:[#allocation2] sm:$0xff] %v1192_v0 }
  0x1e   : > { %433 = vst [vmem:[#allocation2 + $0x18] sm:$0xff] %v1192_v0  ;;  %434 = vst [vmem:[#allocation2 + $0x10] sm:$0xff] %v1192_v0 }
  0x1f   : > { %435 = vst [vmem:[#allocation2 + $0x8] sm:$0xff] %v1192_v0  ;;  %436 = vst [vmem:[#allocation2 + $0x20] sm:$0xff] %v1192_v0 }
  0x20   : > { %437 = vst [vmem:[#allocation2 + $0x28] sm:$0xff] %v1192_v0  ;;  %438 = vst [vmem:[#allocation2 + $0x38] sm:$0xff] %v1192_v0 }
  0x21 PF: > { %p439_p11 = scmp.ge.s32.totalorder %s1276_s9, 0  ;;  %p440_p12 = scmp.lt.s32.totalorder %s1276_s9, 8 }
  0x23   : > { %p441_p13 = pnand %p440_p12, %p439_p11 }
  0x24   : > { %s976_s29 = sshll.u32 (!%p441_p13), %s1166_s21, 6 }
  0x25   : > { %444 = sbr.rel (%p441_p13) target bundleno = 277 (0x115), region = 44  ;;  %s1313_s13 = scalar_lea.vmem (!%p441_p13), %s1366_s1, %s976_s29 }
  0x2a   : > { %v978_v1 = vld [vmem:[%s1300_s28] sm:$0xff]   ;;  %v1014_v6 = vld [vmem:[%s1300_s28 + $0x10] sm:$0xff]   ;;  %v1128_v7 = vld [vmem:[%s1313_s13 + $0x38] sm:$0xff]  }
  0x2b   : > { %v953_v2 = vld [vmem:[%s1367_s2] ss:$0 sm:$0xff]  ;;  %v979_v3 = vunpack.c.l.bf16 %v978_v1  ;;  %v980_v4 = vunpack.c.h.bf16 %v978_v1  ;;  %v987_v8 = vunpack.c.l.bf16 %v1014_v6  ;;  %v988_v9 = vunpack.c.h.bf16 %v1014_v6  ;;  %v1129_v10 = vld [vmem:[%s1313_s13 + $0x30] sm:$0xff]   ;;  %1031 = vmatprep.subr.bf16.mxu0 %v1128_v7  ;;  %1055 = vmatprep.subr.bf16.mxu1 %v1128_v7  ;;  %v1130_v17 = vld [vmem:[%s1313_s13 + $0x28] sm:$0xff]  }
  0x2c   : > { %v954_v5 = vld [vmem:[%s1368_s3] ss:$0 sm:$0xff]  ;;  %1032 = vmatpush3.bf16.msra.mxu0 %v1128_v7  ;;  %1063 = vmatpush3.bf16.msra.mxu1 %v1128_v7  ;;  %v1013_v27 = vld [vmem:[%s1300_s28 + $0x8] sm:$0xff]   ;;  %v1015_v28 = vld [vmem:[%s1300_s28 + $0x18] sm:$0xff]  }
  0x2d   : > { %v468_v11 = vmul.f32 %v979_v3, %v953_v2  ;;  %v469_v12 = vmul.f32 %v980_v4, %v953_v2  ;;  %v472_v13 = vmul.f32 %v987_v8, %v953_v2  ;;  %v473_v14 = vmul.f32 %v988_v9, %v953_v2  ;;  %1033 = vmatprep.subr.bf16.mxu0 %v1129_v10  ;;  %v1131_v23 = vld [vmem:[%s1313_s13 + $0x20] sm:$0xff]   ;;  %v1132_v29 = vld [vmem:[%s1313_s13 + $0x18] sm:$0xff]   ;;  %v1133_v34 = vld [vmem:[%s1313_s13 + $0x10] sm:$0xff]  }
  0x2e   : > { %1056 = vmatprep.subr.bf16.mxu1 %v1129_v10  ;;  %v983_v30 = vunpack.c.l.bf16 %v1013_v27  ;;  %v984_v31 = vunpack.c.h.bf16 %v1013_v27  ;;  %v991_v32 = vunpack.c.l.bf16 %v1015_v28  ;;  %v992_v33 = vunpack.c.h.bf16 %v1015_v28  ;;  %v1134_v39 = vld [vmem:[%s1313_s13 + $0x8] sm:$0xff]   ;;  %v1135_v44 = vld [vmem:[%s1313_s13] sm:$0xff]   ;;  %v501_v51 = vld [vmem:[#allocation2 + $0x18] sm:$0xff] }
  0x2f   : > { %v483_v15 = vadd.f32 %v954_v5, %v468_v11  ;;  %v484_v16 = vadd.f32 %v954_v5, %v469_v12  ;;  %v487_v18 = vadd.f32 %v954_v5, %v472_v13  ;;  %v488_v19 = vadd.f32 %v954_v5, %v473_v14  ;;  %v505_v52 = vld [vmem:[#allocation2 + $0x28] sm:$0xff]  ;;  %v499_v55 = vld [vmem:[#allocation2 + $0x30] sm:$0xff]  ;;  %v506_v62 = vld [vmem:[#allocation2 + $0x38] sm:$0xff] }
  0x30   : > { %1034 = vmatpush3.bf16.msra.mxu0 %v1129_v10  ;;  %1064 = vmatpush3.bf16.msra.mxu1 %v1129_v10  ;;  %v470_v35 = vmul.f32 %v983_v30, %v953_v2  ;;  %v471_v36 = vmul.f32 %v984_v31, %v953_v2  ;;  %v474_v37 = vmul.f32 %v991_v32, %v953_v2  ;;  %v503_v56 = vld [vmem:[#allocation2 + $0x8] sm:$0xff]  ;;  %v502_v61 = vld [vmem:[#allocation2 + $0x10] sm:$0xff]  ;;  %v500_v3 = vld [vmem:[#allocation2] sm:$0xff] }
  0x31   : > { %v491_v20 = vmax.f32 %v483_v15, 0.0  ;;  %v492_v21 = vmax.f32 %v484_v16, 0.0  ;;  %v495_v22 = vmax.f32 %v487_v18, 0.0  ;;  %1035 = vmatprep.subr.bf16.mxu0 %v1130_v17  ;;  %1057 = vmatprep.subr.bf16.mxu1 %v1130_v17  ;;  %v496_v25 = vmax.f32 %v488_v19, 0.0  ;;  %v504_v4 = vld [vmem:[#allocation2 + $0x20] sm:$0xff] }
  0x32   : > { %v475_v38 = vmul.f32 %v992_v33, %v953_v2  ;;  %v485_v40 = vadd.f32 %v954_v5, %v470_v35  ;;  %v486_v41 = vadd.f32 %v954_v5, %v471_v36  ;;  %v489_v42 = vadd.f32 %v954_v5, %v474_v37 }
  0x33   : > { %v507_v24 = vpack.c.bf16 %v492_v21, %v491_v20  ;;  %v509_v26 = vpack.c.bf16 %v496_v25, %v495_v22 }
  0x34   : > { %1036 = vmatpush3.bf16.msra.mxu0 %v1130_v17  ;;  %1065 = vmatpush3.bf16.msra.mxu1 %v1130_v17  ;;  %v490_v43 = vadd.f32 %v954_v5, %v475_v38  ;;  %v493_v45 = vmax.f32 %v485_v40, 0.0  ;;  %v494_v46 = vmax.f32 %v486_v41, 0.0  ;;  %v497_v47 = vmax.f32 %v489_v42, 0.0 }
  0x35   : > { %1047 = vmatprep.mubr.bf16.mxu0 %v507_v24  ;;  %1037 = vmatprep.subr.bf16.mxu0 %v1131_v23 }
  0x36   : > { %1058 = vmatprep.subr.bf16.mxu1 %v1131_v23  ;;  %1051 = vmatprep.mubr.bf16.mxu1 %v509_v26  ;;  %v498_v48 = vmax.f32 %v490_v43, 0.0  ;;  %v508_v49 = vpack.c.bf16 %v494_v46, %v493_v45 }
  0x38   : > { %1038 = vmatpush3.bf16.msra.mxu0 %v1131_v23  ;;  %1066 = vmatpush3.bf16.msra.mxu1 %v1131_v23  ;;  %v510_v50 = vpack.c.bf16 %v498_v48, %v497_v47 }
  0x39   : > { %1039 = vmatprep.subr.bf16.mxu0 %v1132_v29  ;;  %1059 = vmatprep.subr.bf16.mxu1 %v1132_v29 }
  0x3c   : > { %1040 = vmatpush3.bf16.msra.mxu0 %v1132_v29  ;;  %1067 = vmatpush3.bf16.msra.mxu1 %v1132_v29 }
  0x3d   : > { %1041 = vmatprep.subr.bf16.mxu0 %v1133_v34  ;;  %1060 = vmatprep.subr.bf16.mxu1 %v1133_v34 }
  0x40   : > { %1042 = vmatpush3.bf16.msra.mxu0 %v1133_v34  ;;  %1068 = vmatpush3.bf16.msra.mxu1 %v1133_v34 }
  0x41   : > { %1043 = vmatprep.subr.bf16.mxu0 %v1134_v39  ;;  %1061 = vmatprep.subr.bf16.mxu1 %v1134_v39 }
  0x44   : > { %1044 = vmatpush3.bf16.msra.mxu0 %v1134_v39  ;;  %1069 = vmatpush3.bf16.msra.mxu1 %v1134_v39 }
  0x45   : > { %1045 = vmatprep.subr.bf16.mxu0 %v1135_v44  ;;  %1062 = vmatprep.subr.bf16.mxu1 %v1135_v44 }
  0x48   : > { %1046 = vmatpush3.bf16.msra.mxu0 %v1135_v44  ;;  %1070 = vmatpush3.bf16.msra.mxu1 %v1135_v44 }
  0x4b   : > { %1048 = vmatmul.mubr.bf16.vlgmr.msra.gmra.mxu0 %v508_v49  ;;  %1052 = vmatmul.mubr.bf16.vlgmr.msra.gmra.mxu1 %v510_v50 }
 0x10b   : > { %v1049_v53 = vpop.f32.mrf.mxu0  ;;  %v1053_v54 = vpop.f32.mrf.mxu1 }
 0x10c   : > { %v645_v57 = vadd.f32 %v1049_v53, %v501_v51  ;;  %v649_v58 = vadd.f32 %v1053_v54, %v505_v52 }
 0x10d   : > { %v612_v59 = vpop.f32.mrf.mxu0  ;;  %v628_v60 = vpop.f32.mrf.mxu1 }
 0x10e   : > { %653 = vst [vmem:[#allocation2 + $0x18] sm:$0xff] %v645_v57  ;;  %657 = vst [vmem:[#allocation2 + $0x28] sm:$0xff] %v649_v58  ;;  %v643_v63 = vadd.f32 %v612_v59, %v499_v55  ;;  %v647_v0 = vadd.f32 %v628_v60, %v503_v56 }
 0x10f   : > { %v1050_v1 = vpop.f32.mrf.mxu0  ;;  %v1054_v2 = vpop.f32.mrf.mxu1 }
 0x110   : > { %651 = vst [vmem:[#allocation2 + $0x30] sm:$0xff] %v643_v63  ;;  %655 = vst [vmem:[#allocation2 + $0x8] sm:$0xff] %v647_v0  ;;  %v646_v5 = vadd.f32 %v1050_v1, %v502_v61  ;;  %v650_v6 = vadd.f32 %v1054_v2, %v506_v62 }
 0x111   : > { %v615_v7 = vpop.f32.mrf.mxu0  ;;  %v631_v8 = vpop.f32.mrf.mxu1 }
 0x112   : > { %654 = vst [vmem:[#allocation2 + $0x10] sm:$0xff] %v646_v5  ;;  %658 = vst [vmem:[#allocation2 + $0x38] sm:$0xff] %v650_v6  ;;  %v644_v9 = vadd.f32 %v615_v7, %v500_v3  ;;  %v648_v10 = vadd.f32 %v631_v8, %v504_v4 }
 0x114   : > { %652 = vst [vmem:[#allocation2] sm:$0xff] %v644_v9  ;;  %656 = vst [vmem:[#allocation2 + $0x20] sm:$0xff] %v648_v10 }
 0x115 PF: > { %p965_p0 = scmp.ne.s32.totalorder %s1166_s21, 2 }
 0x117   : > { %662 = sbr.rel (%p965_p0) target bundleno = 314 (0x13a), region = 48 }
 0x11c   : > { %v663_v11 = vld [vmem:[#allocation2 + $0x30] sm:$0xff]  ;;  %v664_v12 = vld [vmem:[#allocation2] sm:$0xff]  ;;  %v665_v13 = vld [vmem:[#allocation2 + $0x18] sm:$0xff] }
 0x11d   : > { %v996_v14 = vpack.c.bf16 %v664_v12, %v663_v11  ;;  %v687_v15 = vadd.f32 %v664_v12, %v663_v11  ;;  %v701_v16 = vmul.f32 %v663_v11, %v663_v11  ;;  %v702_v17 = vmul.f32 %v664_v12, %v664_v12  ;;  %v666_v18 = vld [vmem:[#allocation2 + $0x10] sm:$0xff]  ;;  %v667_v19 = vld [vmem:[#allocation2 + $0x8] sm:$0xff]  ;;  %v668_v20 = vld [vmem:[#allocation2 + $0x20] sm:$0xff] }
 0x11e   : > { %v1001_v21 = vpack.c.bf16 %v666_v18, %v665_v13  ;;  %v703_v22 = vmul.f32 %v665_v13, %v665_v13  ;;  %v1006_v23 = vpack.c.bf16 %v668_v20, %v667_v19  ;;  %v704_v26 = vmul.f32 %v666_v18, %v666_v18  ;;  %v669_v27 = vld [vmem:[#allocation2 + $0x28] sm:$0xff]  ;;  %v670_v28 = vld [vmem:[#allocation2 + $0x38] sm:$0xff] }
 0x11f   : > { %997 = vst [vmem:[%s1291_s19] sm:$0xff] %v996_v14   ;;  %v709_v24 = vadd.f32 %v702_v17, %v701_v16  ;;  %v688_v25 = vadd.f32 %v687_v15, %v665_v13  ;;  %v1011_v29 = vpack.c.bf16 %v670_v28, %v669_v27  ;;  %v705_v32 = vmul.f32 %v667_v19, %v667_v19 }
 0x120   : > { %1016 = vst [vmem:[%s1291_s19 + $0x8] sm:$0xff] %v1001_v21   ;;  %1017 = vst [vmem:[%s1291_s19 + $0x10] sm:$0xff] %v1006_v23   ;;  %v706_v35 = vmul.f32 %v668_v20, %v668_v20  ;;  %v707_v38 = vmul.f32 %v669_v27, %v669_v27  ;;  %v708_v41 = vmul.f32 %v670_v28, %v670_v28 }
 0x121   : > { %v689_v30 = vadd.f32 %v688_v25, %v666_v18  ;;  %v710_v31 = vadd.f32 %v709_v24, %v703_v22  ;;  %1018 = vst [vmem:[%s1291_s19 + $0x18] sm:$0xff] %v1011_v29  }
 0x123   : > { %v711_v33 = vadd.f32 %v710_v31, %v704_v26  ;;  %v690_v34 = vadd.f32 %v689_v30, %v667_v19 }
 0x125   : > { %v691_v36 = vadd.f32 %v690_v34, %v668_v20  ;;  %v712_v37 = vadd.f32 %v711_v33, %v705_v32 }
 0x127   : > { %v713_v39 = vadd.f32 %v712_v37, %v706_v35  ;;  %v692_v40 = vadd.f32 %v691_v36, %v669_v27 }
 0x129   : > { %v693_v42 = vadd.f32 %v692_v40, %v670_v28  ;;  %v714_v43 = vadd.f32 %v713_v39, %v707_v38 }
 0x12b   : > { %v694_v44 = vrot.slane %v693_v42, 4  ;;  %v715_v45 = vadd.f32 %v714_v43, %v708_v41 }
 0x12d   : > { %v695_v46 = vadd.f32 %v694_v44, %v693_v42  ;;  %v716_v47 = vrot.slane %v715_v45, 4 }
 0x12f   : > { %v696_v48 = vrot.slane %v695_v46, 2  ;;  %v717_v49 = vadd.f32 %v716_v47, %v715_v45 }
 0x131   : > { %v697_v50 = vadd.f32 %v696_v48, %v695_v46  ;;  %v718_v51 = vrot.slane %v717_v49, 2 }
 0x133   : > { %v698_v52 = vrot.slane %v697_v50, 1  ;;  %v719_v53 = vadd.f32 %v718_v51, %v717_v49 }
 0x135   : > { %v699_v54 = vadd.f32 %v698_v52, %v697_v50  ;;  %v720_v55 = vrot.slane %v719_v53, 1 }
 0x137   : > { %700 = vst [vmem:[%s411_s15] sm:$0x1] %v699_v54  ;;  %v721_v56 = vadd.f32 %v720_v55, %v719_v53 }
 0x139   : > { %722 = vst [vmem:[%s421_s23] sm:$0x1] %v721_v56 }
 0x13a PF: > { %s17_s27 = sadd.s32 1, %s1190_s27   ;;  %s1375_s18 = sld [smem:[#allocation3_spill]] }
 0x13b   : > { %p14_p1 = scmp.ge.s32.totalorder %s17_s27, 50   ;;  %s1376_s19 = sld [smem:[#allocation4_spill]] }
 0x13c   : > { %s1377_s20 = sld [smem:[#allocation5_spill]]  ;;  %s1378_s21 = smov %s1178_s24 }
 0x13d   : > { %s1379_s22 = smov %s1182_s25  ;;  %s1380_s23 = smov %s1186_s26 }
 0x13e   :  { %16 = sbr.rel (!%p14_p1) target bundleno = 4 (0x4), region = 103 }
 0x140   : > { %s1381_s24 = smov %s1375_s18 }
 0x141   : > { %s1382_s25 = smov %s1376_s19 }
 0x142   : > { %s1383_s26 = smov %s1377_s20 }

// kernel: st_conv3d.5
= control target key start
LH: loop header
LB: loop body
LE: loop exit
PB: predicated region body
PF: predicated region fallthrough
CT: control target
= control target key end

     0   :  { %s1995_s0 = inlined_call_operand.vmem [shape: bf16[1024,128], index: 0, kind: input, shape index: {}]   ;;  %s1996_s1 = inlined_call_operand.vmem [shape: f32[1,128], index: 1, kind: input, shape index: {}]   ;;  %s1997_s2 = inlined_call_operand.vmem [shape: f32[1,128], index: 2, kind: input, shape index: {}]   ;;  %s1998_s3 = inlined_call_operand.vmem [shape: f32[1024,128], index: 3, kind: output, shape index: {}]  }
   0x1   :  { %v803_v0 = vld [vmem:[%s1995_s0] sm:$0xff]   ;;  %v1058_v4 = vld [vmem:[%s1995_s0 + $0x8] sm:$0xff]   ;;  %v1059_v5 = vld [vmem:[%s1995_s0 + $0x10] sm:$0xff]  }
   0x2   :  { %v1149_v1 = vld [vmem:[%s1996_s1] ss:$0 sm:$0xff]  ;;  %v804_v2 = vunpack.c.l.bf16 %v803_v0  ;;  %v805_v3 = vunpack.c.h.bf16 %v803_v0  ;;  %v1060_v6 = vld [vmem:[%s1995_s0 + $0x18] sm:$0xff]   ;;  %v808_v8 = vunpack.c.l.bf16 %v1058_v4  ;;  %v809_v9 = vunpack.c.h.bf16 %v1058_v4  ;;  %v1062_v33 = vld [vmem:[%s1995_s0 + $0x28] sm:$0xff]  }
   0x3   :  { %v1163_v7 = vld [vmem:[%s1997_s2] ss:$0 sm:$0xff]  ;;  %v812_v10 = vunpack.c.l.bf16 %v1059_v5  ;;  %v813_v11 = vunpack.c.h.bf16 %v1059_v5  ;;  %v816_v14 = vunpack.c.l.bf16 %v1060_v6  ;;  %v817_v15 = vunpack.c.h.bf16 %v1060_v6  ;;  %v1063_v34 = vld [vmem:[%s1995_s0 + $0x30] sm:$0xff]   ;;  %v1064_v39 = vld [vmem:[%s1995_s0 + $0x38] sm:$0xff]  }
   0x4   :  { %v277_v12 = vmul.f32 %v804_v2, %v1149_v1  ;;  %v278_v13 = vmul.f32 %v805_v3, %v1149_v1  ;;  %v279_v16 = vmul.f32 %v808_v8, %v1149_v1  ;;  %v280_v17 = vmul.f32 %v809_v9, %v1149_v1  ;;  %v1061_v28 = vld [vmem:[%s1995_s0 + $0x20] sm:$0xff]   ;;  %v1066_v6 = vld [vmem:[%s1995_s0 + $0x48] sm:$0xff]   ;;  %v1067_v8 = vld [vmem:[%s1995_s0 + $0x50] sm:$0xff]  }
   0x5   :  { %v281_v18 = vmul.f32 %v812_v10, %v1149_v1  ;;  %v282_v19 = vmul.f32 %v813_v11, %v1149_v1  ;;  %v283_v22 = vmul.f32 %v816_v14, %v1149_v1  ;;  %v284_v23 = vmul.f32 %v817_v15, %v1149_v1  ;;  %v1065_v0 = vld [vmem:[%s1995_s0 + $0x40] sm:$0xff]  }
   0x6   :  { %v412_v20 = vadd.f32 %v1163_v7, %v277_v12  ;;  %v413_v21 = vadd.f32 %v1163_v7, %v278_v13  ;;  %v414_v24 = vadd.f32 %v1163_v7, %v279_v16  ;;  %v415_v25 = vadd.f32 %v1163_v7, %v280_v17  ;;  %v1068_v13 = vld [vmem:[%s1995_s0 + $0x58] sm:$0xff]  }
   0x7   :  { %v416_v26 = vadd.f32 %v1163_v7, %v281_v18  ;;  %v417_v27 = vadd.f32 %v1163_v7, %v282_v19  ;;  %v418_v31 = vadd.f32 %v1163_v7, %v283_v22  ;;  %v419_v32 = vadd.f32 %v1163_v7, %v284_v23 }
   0x8   :  { %v540_v29 = vmax.f32 %v412_v20, 0.0  ;;  %v541_v30 = vmax.f32 %v413_v21, 0.0  ;;  %v542_v35 = vmax.f32 %v414_v24, 0.0  ;;  %v543_v36 = vmax.f32 %v415_v25, 0.0 }
   0x9   :  { %v544_v37 = vmax.f32 %v416_v26, 0.0  ;;  %v545_v38 = vmax.f32 %v417_v27, 0.0  ;;  %v546_v40 = vmax.f32 %v418_v31, 0.0  ;;  %v547_v41 = vmax.f32 %v419_v32, 0.0 }
   0xa   :  { %668 = vst [vmem:[%s1998_s3] sm:$0xff] %v540_v29  ;;  %669 = vst [vmem:[%s1998_s3 + $0x8] sm:$0xff] %v541_v30  ;;  %v820_v42 = vunpack.c.l.bf16 %v1061_v28  ;;  %v821_v43 = vunpack.c.h.bf16 %v1061_v28  ;;  %v824_v44 = vunpack.c.l.bf16 %v1062_v33  ;;  %v825_v45 = vunpack.c.h.bf16 %v1062_v33 }
   0xb   :  { %670 = vst [vmem:[%s1998_s3 + $0x10] sm:$0xff] %v542_v35  ;;  %671 = vst [vmem:[%s1998_s3 + $0x18] sm:$0xff] %v543_v36  ;;  %v828_v46 = vunpack.c.l.bf16 %v1063_v34  ;;  %v829_v47 = vunpack.c.h.bf16 %v1063_v34  ;;  %v832_v50 = vunpack.c.l.bf16 %v1064_v39  ;;  %v833_v51 = vunpack.c.h.bf16 %v1064_v39 }
   0xc   :  { %672 = vst [vmem:[%s1998_s3 + $0x20] sm:$0xff] %v544_v37  ;;  %673 = vst [vmem:[%s1998_s3 + $0x28] sm:$0xff] %v545_v38  ;;  %v285_v48 = vmul.f32 %v820_v42, %v1149_v1  ;;  %v286_v49 = vmul.f32 %v821_v43, %v1149_v1  ;;  %v287_v52 = vmul.f32 %v824_v44, %v1149_v1  ;;  %v836_v16 = vunpack.c.l.bf16 %v1065_v0  ;;  %v1069_v38 = vld [vmem:[%s1995_s0 + $0x60] sm:$0xff]   ;;  %v1070_v43 = vld [vmem:[%s1995_s0 + $0x68] sm:$0xff]  }
   0xd   :  { %674 = vst [vmem:[%s1998_s3 + $0x30] sm:$0xff] %v546_v40  ;;  %675 = vst [vmem:[%s1998_s3 + $0x38] sm:$0xff] %v547_v41  ;;  %v288_v53 = vmul.f32 %v825_v45, %v1149_v1  ;;  %v289_v54 = vmul.f32 %v828_v46, %v1149_v1  ;;  %v290_v55 = vmul.f32 %v829_v47, %v1149_v1  ;;  %v837_v17 = vunpack.c.h.bf16 %v1065_v0  ;;  %v1071_v44 = vld [vmem:[%s1995_s0 + $0x70] sm:$0xff]  }
   0xe   :  { %v420_v56 = vadd.f32 %v1163_v7, %v285_v48  ;;  %v421_v57 = vadd.f32 %v1163_v7, %v286_v49  ;;  %v291_v58 = vmul.f32 %v832_v50, %v1149_v1  ;;  %v292_v59 = vmul.f32 %v833_v51, %v1149_v1  ;;  %v1072_v49 = vld [vmem:[%s1995_s0 + $0x78] sm:$0xff]  }
   0xf   :  { %v422_v60 = vadd.f32 %v1163_v7, %v287_v52  ;;  %v423_v61 = vadd.f32 %v1163_v7, %v288_v53  ;;  %v424_v62 = vadd.f32 %v1163_v7, %v289_v54  ;;  %v425_v63 = vadd.f32 %v1163_v7, %v290_v55 }
  0x10   :  { %v548_v2 = vmax.f32 %v420_v56, 0.0  ;;  %v549_v3 = vmax.f32 %v421_v57, 0.0  ;;  %v426_v4 = vadd.f32 %v1163_v7, %v291_v58  ;;  %v427_v5 = vadd.f32 %v1163_v7, %v292_v59 }
  0x11   :  { %v550_v9 = vmax.f32 %v422_v60, 0.0  ;;  %v551_v10 = vmax.f32 %v423_v61, 0.0  ;;  %v552_v11 = vmax.f32 %v424_v62, 0.0  ;;  %v553_v12 = vmax.f32 %v425_v63, 0.0 }
  0x12   :  { %676 = vst [vmem:[%s1998_s3 + $0x40] sm:$0xff] %v548_v2  ;;  %677 = vst [vmem:[%s1998_s3 + $0x48] sm:$0xff] %v549_v3  ;;  %v554_v14 = vmax.f32 %v426_v4, 0.0  ;;  %v555_v15 = vmax.f32 %v427_v5, 0.0  ;;  %v840_v18 = vunpack.c.l.bf16 %v1066_v6  ;;  %v841_v19 = vunpack.c.h.bf16 %v1066_v6 }
  0x13   :  { %678 = vst [vmem:[%s1998_s3 + $0x50] sm:$0xff] %v550_v9  ;;  %679 = vst [vmem:[%s1998_s3 + $0x58] sm:$0xff] %v551_v10  ;;  %v844_v20 = vunpack.c.l.bf16 %v1067_v8  ;;  %v845_v21 = vunpack.c.h.bf16 %v1067_v8  ;;  %v293_v22 = vmul.f32 %v836_v16, %v1149_v1  ;;  %v294_v23 = vmul.f32 %v837_v17, %v1149_v1  ;;  %v1074_v17 = vld [vmem:[%s1995_s0 + $0x88] sm:$0xff]  }
  0x14   :  { %680 = vst [vmem:[%s1998_s3 + $0x60] sm:$0xff] %v552_v11  ;;  %681 = vst [vmem:[%s1998_s3 + $0x68] sm:$0xff] %v553_v12  ;;  %v848_v24 = vunpack.c.l.bf16 %v1068_v13  ;;  %v849_v25 = vunpack.c.h.bf16 %v1068_v13  ;;  %v295_v26 = vmul.f32 %v840_v18, %v1149_v1  ;;  %v296_v27 = vmul.f32 %v841_v19, %v1149_v1  ;;  %v1073_v12 = vld [vmem:[%s1995_s0 + $0x80] sm:$0xff]   ;;  %v1075_v18 = vld [vmem:[%s1995_s0 + $0x90] sm:$0xff]  }
  0x15   :  { %682 = vst [vmem:[%s1998_s3 + $0x70] sm:$0xff] %v554_v14  ;;  %683 = vst [vmem:[%s1998_s3 + $0x78] sm:$0xff] %v555_v15  ;;  %v297_v28 = vmul.f32 %v844_v20, %v1149_v1  ;;  %v298_v29 = vmul.f32 %v845_v21, %v1149_v1  ;;  %v428_v30 = vadd.f32 %v1163_v7, %v293_v22  ;;  %v852_v52 = vunpack.c.l.bf16 %v1069_v38 }
  0x16   :  { %v429_v31 = vadd.f32 %v1163_v7, %v294_v23  ;;  %v299_v32 = vmul.f32 %v848_v24, %v1149_v1  ;;  %v300_v33 = vmul.f32 %v849_v25, %v1149_v1  ;;  %v430_v34 = vadd.f32 %v1163_v7, %v295_v26  ;;  %v1076_v23 = vld [vmem:[%s1995_s0 + $0x98] sm:$0xff]  }
  0x17   :  { %v431_v35 = vadd.f32 %v1163_v7, %v296_v27  ;;  %v432_v36 = vadd.f32 %v1163_v7, %v297_v28  ;;  %v433_v37 = vadd.f32 %v1163_v7, %v298_v29  ;;  %v556_v39 = vmax.f32 %v428_v30, 0.0 }
  0x18   :  { %v557_v40 = vmax.f32 %v429_v31, 0.0  ;;  %v434_v41 = vadd.f32 %v1163_v7, %v299_v32  ;;  %v435_v42 = vadd.f32 %v1163_v7, %v300_v33  ;;  %v558_v45 = vmax.f32 %v430_v34, 0.0 }
  0x19   :  { %v559_v46 = vmax.f32 %v431_v35, 0.0  ;;  %v560_v47 = vmax.f32 %v432_v36, 0.0  ;;  %v561_v48 = vmax.f32 %v433_v37, 0.0  ;;  %684 = vst [vmem:[%s1998_s3 + $0x80] sm:$0xff] %v556_v39  ;;  %v853_v53 = vunpack.c.h.bf16 %v1069_v38 }
  0x1a   :  { %685 = vst [vmem:[%s1998_s3 + $0x88] sm:$0xff] %v557_v40  ;;  %v562_v50 = vmax.f32 %v434_v41, 0.0  ;;  %v563_v51 = vmax.f32 %v435_v42, 0.0  ;;  %686 = vst [vmem:[%s1998_s3 + $0x90] sm:$0xff] %v558_v45  ;;  %v856_v54 = vunpack.c.l.bf16 %v1070_v43  ;;  %v857_v55 = vunpack.c.h.bf16 %v1070_v43 }
  0x1b   :  { %687 = vst [vmem:[%s1998_s3 + $0x98] sm:$0xff] %v559_v46  ;;  %688 = vst [vmem:[%s1998_s3 + $0xa0] sm:$0xff] %v560_v47  ;;  %v860_v56 = vunpack.c.l.bf16 %v1071_v44  ;;  %v861_v57 = vunpack.c.h.bf16 %v1071_v44  ;;  %v301_v58 = vmul.f32 %v852_v52, %v1149_v1  ;;  %v302_v59 = vmul.f32 %v853_v53, %v1149_v1  ;;  %v1078_v53 = vld [vmem:[%s1995_s0 + $0xa8] sm:$0xff]  }
  0x1c   :  { %689 = vst [vmem:[%s1998_s3 + $0xa8] sm:$0xff] %v561_v48  ;;  %690 = vst [vmem:[%s1998_s3 + $0xb0] sm:$0xff] %v562_v50  ;;  %v864_v60 = vunpack.c.l.bf16 %v1072_v49  ;;  %v865_v61 = vunpack.c.h.bf16 %v1072_v49  ;;  %v303_v62 = vmul.f32 %v856_v54, %v1149_v1  ;;  %v304_v63 = vmul.f32 %v857_v55, %v1149_v1  ;;  %v1077_v48 = vld [vmem:[%s1995_s0 + $0xa0] sm:$0xff]   ;;  %v1079_v54 = vld [vmem:[%s1995_s0 + $0xb0] sm:$0xff]  }
  0x1d   :  { %691 = vst [vmem:[%s1998_s3 + $0xb8] sm:$0xff] %v563_v51  ;;  %v305_v0 = vmul.f32 %v860_v56, %v1149_v1  ;;  %v306_v2 = vmul.f32 %v861_v57, %v1149_v1  ;;  %v436_v3 = vadd.f32 %v1163_v7, %v301_v58  ;;  %v437_v4 = vadd.f32 %v1163_v7, %v302_v59  ;;  %v1080_v59 = vld [vmem:[%s1995_s0 + $0xb8] sm:$0xff]  }
  0x1e   :  { %v307_v5 = vmul.f32 %v864_v60, %v1149_v1  ;;  %v308_v6 = vmul.f32 %v865_v61, %v1149_v1  ;;  %v438_v8 = vadd.f32 %v1163_v7, %v303_v62  ;;  %v439_v9 = vadd.f32 %v1163_v7, %v304_v63 }
  0x1f   :  { %v440_v10 = vadd.f32 %v1163_v7, %v305_v0  ;;  %v441_v11 = vadd.f32 %v1163_v7, %v306_v2  ;;  %v564_v13 = vmax.f32 %v436_v3, 0.0  ;;  %v565_v14 = vmax.f32 %v437_v4, 0.0 }
  0x20   :  { %v442_v15 = vadd.f32 %v1163_v7, %v307_v5  ;;  %v443_v16 = vadd.f32 %v1163_v7, %v308_v6  ;;  %v566_v19 = vmax.f32 %v438_v8, 0.0  ;;  %v567_v20 = vmax.f32 %v439_v9, 0.0 }
  0x21   :  { %v568_v21 = vmax.f32 %v440_v10, 0.0  ;;  %v569_v22 = vmax.f32 %v441_v11, 0.0  ;;  %692 = vst [vmem:[%s1998_s3 + $0xc0] sm:$0xff] %v564_v13  ;;  %693 = vst [vmem:[%s1998_s3 + $0xc8] sm:$0xff] %v565_v14  ;;  %v868_v26 = vunpack.c.l.bf16 %v1073_v12  ;;  %v869_v27 = vunpack.c.h.bf16 %v1073_v12 }
  0x22   :  { %v570_v24 = vmax.f32 %v442_v15, 0.0  ;;  %v571_v25 = vmax.f32 %v443_v16, 0.0  ;;  %694 = vst [vmem:[%s1998_s3 + $0xd0] sm:$0xff] %v566_v19  ;;  %695 = vst [vmem:[%s1998_s3 + $0xd8] sm:$0xff] %v567_v20  ;;  %v872_v28 = vunpack.c.l.bf16 %v1074_v17  ;;  %v873_v29 = vunpack.c.h.bf16 %v1074_v17 }
  0x23   :  { %696 = vst [vmem:[%s1998_s3 + $0xe0] sm:$0xff] %v568_v21  ;;  %697 = vst [vmem:[%s1998_s3 + $0xe8] sm:$0xff] %v569_v22  ;;  %v876_v30 = vunpack.c.l.bf16 %v1075_v18  ;;  %v877_v31 = vunpack.c.h.bf16 %v1075_v18  ;;  %v309_v32 = vmul.f32 %v868_v26, %v1149_v1  ;;  %v310_v33 = vmul.f32 %v869_v27, %v1149_v1  ;;  %v1081_v22 = vld [vmem:[%s1995_s0 + $0xc0] sm:$0xff]   ;;  %v1082_v27 = vld [vmem:[%s1995_s0 + $0xc8] sm:$0xff]  }
  0x24   :  { %698 = vst [vmem:[%s1998_s3 + $0xf0] sm:$0xff] %v570_v24  ;;  %699 = vst [vmem:[%s1998_s3 + $0xf8] sm:$0xff] %v571_v25  ;;  %v880_v34 = vunpack.c.l.bf16 %v1076_v23  ;;  %v881_v35 = vunpack.c.h.bf16 %v1076_v23  ;;  %v311_v36 = vmul.f32 %v872_v28, %v1149_v1  ;;  %v312_v37 = vmul.f32 %v873_v29, %v1149_v1  ;;  %v1083_v28 = vld [vmem:[%s1995_s0 + $0xd0] sm:$0xff]  }
  0x25   :  { %v313_v38 = vmul.f32 %v876_v30, %v1149_v1  ;;  %v314_v39 = vmul.f32 %v877_v31, %v1149_v1  ;;  %v444_v40 = vadd.f32 %v1163_v7, %v309_v32  ;;  %v445_v41 = vadd.f32 %v1163_v7, %v310_v33  ;;  %v1084_v33 = vld [vmem:[%s1995_s0 + $0xd8] sm:$0xff]  }
  0x26   :  { %v315_v42 = vmul.f32 %v880_v34, %v1149_v1  ;;  %v316_v43 = vmul.f32 %v881_v35, %v1149_v1  ;;  %v446_v44 = vadd.f32 %v1163_v7, %v311_v36  ;;  %v447_v45 = vadd.f32 %v1163_v7, %v312_v37 }
  0x27   :  { %v448_v46 = vadd.f32 %v1163_v7, %v313_v38  ;;  %v449_v47 = vadd.f32 %v1163_v7, %v314_v39  ;;  %v572_v49 = vmax.f32 %v444_v40, 0.0  ;;  %v573_v50 = vmax.f32 %v445_v41, 0.0 }
  0x28   :  { %v450_v51 = vadd.f32 %v1163_v7, %v315_v42  ;;  %v451_v52 = vadd.f32 %v1163_v7, %v316_v43  ;;  %v574_v55 = vmax.f32 %v446_v44, 0.0  ;;  %v575_v56 = vmax.f32 %v447_v45, 0.0 }
  0x29   :  { %v576_v57 = vmax.f32 %v448_v46, 0.0  ;;  %v577_v58 = vmax.f32 %v449_v47, 0.0  ;;  %700 = vst [vmem:[%s1998_s3 + $0x100] sm:$0xff] %v572_v49  ;;  %701 = vst [vmem:[%s1998_s3 + $0x108] sm:$0xff] %v573_v50  ;;  %v884_v62 = vunpack.c.l.bf16 %v1077_v48  ;;  %v885_v63 = vunpack.c.h.bf16 %v1077_v48 }
  0x2a   :  { %v578_v60 = vmax.f32 %v450_v51, 0.0  ;;  %v579_v61 = vmax.f32 %v451_v52, 0.0  ;;  %702 = vst [vmem:[%s1998_s3 + $0x110] sm:$0xff] %v574_v55  ;;  %703 = vst [vmem:[%s1998_s3 + $0x118] sm:$0xff] %v575_v56  ;;  %v888_v0 = vunpack.c.l.bf16 %v1078_v53  ;;  %v889_v2 = vunpack.c.h.bf16 %v1078_v53 }
  0x2b   :  { %704 = vst [vmem:[%s1998_s3 + $0x120] sm:$0xff] %v576_v57  ;;  %705 = vst [vmem:[%s1998_s3 + $0x128] sm:$0xff] %v577_v58  ;;  %v892_v3 = vunpack.c.l.bf16 %v1079_v54  ;;  %v893_v4 = vunpack.c.h.bf16 %v1079_v54  ;;  %v317_v5 = vmul.f32 %v884_v62, %v1149_v1  ;;  %v318_v6 = vmul.f32 %v885_v63, %v1149_v1  ;;  %v1085_v58 = vld [vmem:[%s1995_s0 + $0xe0] sm:$0xff]   ;;  %v1086_v63 = vld [vmem:[%s1995_s0 + $0xe8] sm:$0xff]  }
  0x2c   :  { %706 = vst [vmem:[%s1998_s3 + $0x130] sm:$0xff] %v578_v60  ;;  %707 = vst [vmem:[%s1998_s3 + $0x138] sm:$0xff] %v579_v61  ;;  %v896_v8 = vunpack.c.l.bf16 %v1080_v59  ;;  %v897_v9 = vunpack.c.h.bf16 %v1080_v59  ;;  %v319_v10 = vmul.f32 %v888_v0, %v1149_v1  ;;  %v320_v11 = vmul.f32 %v889_v2, %v1149_v1  ;;  %v1087_v0 = vld [vmem:[%s1995_s0 + $0xf0] sm:$0xff]  }
  0x2d   :  { %v321_v12 = vmul.f32 %v892_v3, %v1149_v1  ;;  %v322_v13 = vmul.f32 %v893_v4, %v1149_v1  ;;  %v452_v14 = vadd.f32 %v1163_v7, %v317_v5  ;;  %v453_v15 = vadd.f32 %v1163_v7, %v318_v6  ;;  %v1088_v6 = vld [vmem:[%s1995_s0 + $0xf8] sm:$0xff]  }
  0x2e   :  { %v323_v16 = vmul.f32 %v896_v8, %v1149_v1  ;;  %v324_v17 = vmul.f32 %v897_v9, %v1149_v1  ;;  %v454_v18 = vadd.f32 %v1163_v7, %v319_v10  ;;  %v455_v19 = vadd.f32 %v1163_v7, %v320_v11 }
  0x2f   :  { %v456_v20 = vadd.f32 %v1163_v7, %v321_v12  ;;  %v457_v21 = vadd.f32 %v1163_v7, %v322_v13  ;;  %v580_v23 = vmax.f32 %v452_v14, 0.0  ;;  %v581_v24 = vmax.f32 %v453_v15, 0.0 }
  0x30   :  { %v458_v25 = vadd.f32 %v1163_v7, %v323_v16  ;;  %v459_v26 = vadd.f32 %v1163_v7, %v324_v17  ;;  %v582_v29 = vmax.f32 %v454_v18, 0.0  ;;  %v583_v30 = vmax.f32 %v455_v19, 0.0 }
  0x31   :  { %v584_v31 = vmax.f32 %v456_v20, 0.0  ;;  %v585_v32 = vmax.f32 %v457_v21, 0.0  ;;  %708 = vst [vmem:[%s1998_s3 + $0x140] sm:$0xff] %v580_v23  ;;  %709 = vst [vmem:[%s1998_s3 + $0x148] sm:$0xff] %v581_v24  ;;  %v900_v36 = vunpack.c.l.bf16 %v1081_v22  ;;  %v901_v37 = vunpack.c.h.bf16 %v1081_v22 }
  0x32   :  { %v586_v34 = vmax.f32 %v458_v25, 0.0  ;;  %v587_v35 = vmax.f32 %v459_v26, 0.0  ;;  %710 = vst [vmem:[%s1998_s3 + $0x150] sm:$0xff] %v582_v29  ;;  %711 = vst [vmem:[%s1998_s3 + $0x158] sm:$0xff] %v583_v30  ;;  %v904_v38 = vunpack.c.l.bf16 %v1082_v27  ;;  %v905_v39 = vunpack.c.h.bf16 %v1082_v27 }
  0x33   :  { %712 = vst [vmem:[%s1998_s3 + $0x160] sm:$0xff] %v584_v31  ;;  %713 = vst [vmem:[%s1998_s3 + $0x168] sm:$0xff] %v585_v32  ;;  %v908_v40 = vunpack.c.l.bf16 %v1083_v28  ;;  %v909_v41 = vunpack.c.h.bf16 %v1083_v28  ;;  %v325_v42 = vmul.f32 %v900_v36, %v1149_v1  ;;  %v326_v43 = vmul.f32 %v901_v37, %v1149_v1  ;;  %v1089_v32 = vld [vmem:[%s1995_s0 + $0x100] sm:$0xff]   ;;  %v1090_v37 = vld [vmem:[%s1995_s0 + $0x108] sm:$0xff]  }
  0x34   :  { %714 = vst [vmem:[%s1998_s3 + $0x170] sm:$0xff] %v586_v34  ;;  %715 = vst [vmem:[%s1998_s3 + $0x178] sm:$0xff] %v587_v35  ;;  %v912_v44 = vunpack.c.l.bf16 %v1084_v33  ;;  %v913_v45 = vunpack.c.h.bf16 %v1084_v33  ;;  %v327_v46 = vmul.f32 %v904_v38, %v1149_v1  ;;  %v328_v47 = vmul.f32 %v905_v39, %v1149_v1  ;;  %v1091_v38 = vld [vmem:[%s1995_s0 + $0x110] sm:$0xff]  }
  0x35   :  { %v329_v48 = vmul.f32 %v908_v40, %v1149_v1  ;;  %v330_v49 = vmul.f32 %v909_v41, %v1149_v1  ;;  %v460_v50 = vadd.f32 %v1163_v7, %v325_v42  ;;  %v461_v51 = vadd.f32 %v1163_v7, %v326_v43  ;;  %v1092_v43 = vld [vmem:[%s1995_s0 + $0x118] sm:$0xff]  }
  0x36   :  { %v331_v52 = vmul.f32 %v912_v44, %v1149_v1  ;;  %v332_v53 = vmul.f32 %v913_v45, %v1149_v1  ;;  %v462_v54 = vadd.f32 %v1163_v7, %v327_v46  ;;  %v463_v55 = vadd.f32 %v1163_v7, %v328_v47 }
  0x37   :  { %v464_v56 = vadd.f32 %v1163_v7, %v329_v48  ;;  %v465_v57 = vadd.f32 %v1163_v7, %v330_v49  ;;  %v588_v59 = vmax.f32 %v460_v50, 0.0  ;;  %v589_v60 = vmax.f32 %v461_v51, 0.0 }
  0x38   :  { %v466_v61 = vadd.f32 %v1163_v7, %v331_v52  ;;  %v467_v62 = vadd.f32 %v1163_v7, %v332_v53  ;;  %v590_v2 = vmax.f32 %v462_v54, 0.0  ;;  %v591_v3 = vmax.f32 %v463_v55, 0.0 }
  0x39   :  { %v592_v4 = vmax.f32 %v464_v56, 0.0  ;;  %v593_v5 = vmax.f32 %v465_v57, 0.0  ;;  %716 = vst [vmem:[%s1998_s3 + $0x180] sm:$0xff] %v588_v59  ;;  %717 = vst [vmem:[%s1998_s3 + $0x188] sm:$0xff] %v589_v60  ;;  %v916_v10 = vunpack.c.l.bf16 %v1085_v58  ;;  %v917_v11 = vunpack.c.h.bf16 %v1085_v58 }
  0x3a   :  { %v594_v8 = vmax.f32 %v466_v61, 0.0  ;;  %v595_v9 = vmax.f32 %v467_v62, 0.0  ;;  %718 = vst [vmem:[%s1998_s3 + $0x190] sm:$0xff] %v590_v2  ;;  %719 = vst [vmem:[%s1998_s3 + $0x198] sm:$0xff] %v591_v3  ;;  %v920_v12 = vunpack.c.l.bf16 %v1086_v63  ;;  %v921_v13 = vunpack.c.h.bf16 %v1086_v63 }
  0x3b   :  { %720 = vst [vmem:[%s1998_s3 + $0x1a0] sm:$0xff] %v592_v4  ;;  %721 = vst [vmem:[%s1998_s3 + $0x1a8] sm:$0xff] %v593_v5  ;;  %v924_v14 = vunpack.c.l.bf16 %v1087_v0  ;;  %v925_v15 = vunpack.c.h.bf16 %v1087_v0  ;;  %v333_v16 = vmul.f32 %v916_v10, %v1149_v1  ;;  %v334_v17 = vmul.f32 %v917_v11, %v1149_v1  ;;  %v1093_v5 = vld [vmem:[%s1995_s0 + $0x120] sm:$0xff]   ;;  %v1094_v11 = vld [vmem:[%s1995_s0 + $0x128] sm:$0xff]  }
  0x3c   :  { %722 = vst [vmem:[%s1998_s3 + $0x1b0] sm:$0xff] %v594_v8  ;;  %723 = vst [vmem:[%s1998_s3 + $0x1b8] sm:$0xff] %v595_v9  ;;  %v928_v18 = vunpack.c.l.bf16 %v1088_v6  ;;  %v929_v19 = vunpack.c.h.bf16 %v1088_v6  ;;  %v335_v20 = vmul.f32 %v920_v12, %v1149_v1  ;;  %v336_v21 = vmul.f32 %v921_v13, %v1149_v1  ;;  %v1095_v12 = vld [vmem:[%s1995_s0 + $0x130] sm:$0xff]  }
  0x3d   :  { %v337_v22 = vmul.f32 %v924_v14, %v1149_v1  ;;  %v338_v23 = vmul.f32 %v925_v15, %v1149_v1  ;;  %v468_v24 = vadd.f32 %v1163_v7, %v333_v16  ;;  %v469_v25 = vadd.f32 %v1163_v7, %v334_v17  ;;  %v1096_v17 = vld [vmem:[%s1995_s0 + $0x138] sm:$0xff]  }
  0x3e   :  { %v339_v26 = vmul.f32 %v928_v18, %v1149_v1  ;;  %v340_v27 = vmul.f32 %v929_v19, %v1149_v1  ;;  %v470_v28 = vadd.f32 %v1163_v7, %v335_v20  ;;  %v471_v29 = vadd.f32 %v1163_v7, %v336_v21 }
  0x3f   :  { %v472_v30 = vadd.f32 %v1163_v7, %v337_v22  ;;  %v473_v31 = vadd.f32 %v1163_v7, %v338_v23  ;;  %v596_v33 = vmax.f32 %v468_v24, 0.0  ;;  %v597_v34 = vmax.f32 %v469_v25, 0.0 }
  0x40   :  { %v474_v35 = vadd.f32 %v1163_v7, %v339_v26  ;;  %v475_v36 = vadd.f32 %v1163_v7, %v340_v27  ;;  %v598_v39 = vmax.f32 %v470_v28, 0.0  ;;  %v599_v40 = vmax.f32 %v471_v29, 0.0 }
  0x41   :  { %v600_v41 = vmax.f32 %v472_v30, 0.0  ;;  %v601_v42 = vmax.f32 %v473_v31, 0.0  ;;  %724 = vst [vmem:[%s1998_s3 + $0x1c0] sm:$0xff] %v596_v33  ;;  %725 = vst [vmem:[%s1998_s3 + $0x1c8] sm:$0xff] %v597_v34  ;;  %v932_v46 = vunpack.c.l.bf16 %v1089_v32  ;;  %v933_v47 = vunpack.c.h.bf16 %v1089_v32 }
  0x42   :  { %v602_v44 = vmax.f32 %v474_v35, 0.0  ;;  %v603_v45 = vmax.f32 %v475_v36, 0.0  ;;  %726 = vst [vmem:[%s1998_s3 + $0x1d0] sm:$0xff] %v598_v39  ;;  %727 = vst [vmem:[%s1998_s3 + $0x1d8] sm:$0xff] %v599_v40  ;;  %v936_v48 = vunpack.c.l.bf16 %v1090_v37  ;;  %v937_v49 = vunpack.c.h.bf16 %v1090_v37 }
  0x43   :  { %728 = vst [vmem:[%s1998_s3 + $0x1e0] sm:$0xff] %v600_v41  ;;  %729 = vst [vmem:[%s1998_s3 + $0x1e8] sm:$0xff] %v601_v42  ;;  %v940_v50 = vunpack.c.l.bf16 %v1091_v38  ;;  %v941_v51 = vunpack.c.h.bf16 %v1091_v38  ;;  %v341_v52 = vmul.f32 %v932_v46, %v1149_v1  ;;  %v342_v53 = vmul.f32 %v933_v47, %v1149_v1  ;;  %v1097_v42 = vld [vmem:[%s1995_s0 + $0x140] sm:$0xff]   ;;  %v1098_v47 = vld [vmem:[%s1995_s0 + $0x148] sm:$0xff]  }
  0x44   :  { %730 = vst [vmem:[%s1998_s3 + $0x1f0] sm:$0xff] %v602_v44  ;;  %731 = vst [vmem:[%s1998_s3 + $0x1f8] sm:$0xff] %v603_v45  ;;  %v944_v54 = vunpack.c.l.bf16 %v1092_v43  ;;  %v945_v55 = vunpack.c.h.bf16 %v1092_v43  ;;  %v343_v56 = vmul.f32 %v936_v48, %v1149_v1  ;;  %v344_v57 = vmul.f32 %v937_v49, %v1149_v1  ;;  %v1099_v48 = vld [vmem:[%s1995_s0 + $0x150] sm:$0xff]  }
  0x45   :  { %v345_v58 = vmul.f32 %v940_v50, %v1149_v1  ;;  %v346_v59 = vmul.f32 %v941_v51, %v1149_v1  ;;  %v476_v60 = vadd.f32 %v1163_v7, %v341_v52  ;;  %v477_v61 = vadd.f32 %v1163_v7, %v342_v53  ;;  %v1100_v53 = vld [vmem:[%s1995_s0 + $0x158] sm:$0xff]  }
  0x46   :  { %v347_v62 = vmul.f32 %v944_v54, %v1149_v1  ;;  %v348_v63 = vmul.f32 %v945_v55, %v1149_v1  ;;  %v478_v0 = vadd.f32 %v1163_v7, %v343_v56  ;;  %v479_v2 = vadd.f32 %v1163_v7, %v344_v57 }
  0x47   :  { %v480_v3 = vadd.f32 %v1163_v7, %v345_v58  ;;  %v481_v4 = vadd.f32 %v1163_v7, %v346_v59  ;;  %v604_v6 = vmax.f32 %v476_v60, 0.0  ;;  %v605_v8 = vmax.f32 %v477_v61, 0.0 }
  0x48   :  { %v482_v9 = vadd.f32 %v1163_v7, %v347_v62  ;;  %v483_v10 = vadd.f32 %v1163_v7, %v348_v63  ;;  %v606_v13 = vmax.f32 %v478_v0, 0.0  ;;  %v607_v14 = vmax.f32 %v479_v2, 0.0 }
  0x49   :  { %v608_v15 = vmax.f32 %v480_v3, 0.0  ;;  %v609_v16 = vmax.f32 %v481_v4, 0.0  ;;  %732 = vst [vmem:[%s1998_s3 + $0x200] sm:$0xff] %v604_v6  ;;  %733 = vst [vmem:[%s1998_s3 + $0x208] sm:$0xff] %v605_v8  ;;  %v948_v20 = vunpack.c.l.bf16 %v1093_v5  ;;  %v949_v21 = vunpack.c.h.bf16 %v1093_v5 }
  0x4a   :  { %v610_v18 = vmax.f32 %v482_v9, 0.0  ;;  %v611_v19 = vmax.f32 %v483_v10, 0.0  ;;  %734 = vst [vmem:[%s1998_s3 + $0x210] sm:$0xff] %v606_v13  ;;  %735 = vst [vmem:[%s1998_s3 + $0x218] sm:$0xff] %v607_v14  ;;  %v952_v22 = vunpack.c.l.bf16 %v1094_v11  ;;  %v953_v23 = vunpack.c.h.bf16 %v1094_v11 }
  0x4b   :  { %736 = vst [vmem:[%s1998_s3 + $0x220] sm:$0xff] %v608_v15  ;;  %737 = vst [vmem:[%s1998_s3 + $0x228] sm:$0xff] %v609_v16  ;;  %v956_v24 = vunpack.c.l.bf16 %v1095_v12  ;;  %v957_v25 = vunpack.c.h.bf16 %v1095_v12  ;;  %v349_v26 = vmul.f32 %v948_v20, %v1149_v1  ;;  %v350_v27 = vmul.f32 %v949_v21, %v1149_v1  ;;  %v1101_v16 = vld [vmem:[%s1995_s0 + $0x160] sm:$0xff]   ;;  %v1102_v21 = vld [vmem:[%s1995_s0 + $0x168] sm:$0xff]  }
  0x4c   :  { %738 = vst [vmem:[%s1998_s3 + $0x230] sm:$0xff] %v610_v18  ;;  %739 = vst [vmem:[%s1998_s3 + $0x238] sm:$0xff] %v611_v19  ;;  %v960_v28 = vunpack.c.l.bf16 %v1096_v17  ;;  %v961_v29 = vunpack.c.h.bf16 %v1096_v17  ;;  %v351_v30 = vmul.f32 %v952_v22, %v1149_v1  ;;  %v352_v31 = vmul.f32 %v953_v23, %v1149_v1  ;;  %v1103_v22 = vld [vmem:[%s1995_s0 + $0x170] sm:$0xff]  }
  0x4d   :  { %v353_v32 = vmul.f32 %v956_v24, %v1149_v1  ;;  %v354_v33 = vmul.f32 %v957_v25, %v1149_v1  ;;  %v484_v34 = vadd.f32 %v1163_v7, %v349_v26  ;;  %v485_v35 = vadd.f32 %v1163_v7, %v350_v27  ;;  %v1104_v27 = vld [vmem:[%s1995_s0 + $0x178] sm:$0xff]  }
  0x4e   :  { %v355_v36 = vmul.f32 %v960_v28, %v1149_v1  ;;  %v356_v37 = vmul.f32 %v961_v29, %v1149_v1  ;;  %v486_v38 = vadd.f32 %v1163_v7, %v351_v30  ;;  %v487_v39 = vadd.f32 %v1163_v7, %v352_v31 }
  0x4f   :  { %v488_v40 = vadd.f32 %v1163_v7, %v353_v32  ;;  %v489_v41 = vadd.f32 %v1163_v7, %v354_v33  ;;  %v612_v43 = vmax.f32 %v484_v34, 0.0  ;;  %v613_v44 = vmax.f32 %v485_v35, 0.0 }
  0x50   :  { %v490_v45 = vadd.f32 %v1163_v7, %v355_v36  ;;  %v491_v46 = vadd.f32 %v1163_v7, %v356_v37  ;;  %v614_v49 = vmax.f32 %v486_v38, 0.0  ;;  %v615_v50 = vmax.f32 %v487_v39, 0.0 }
  0x51   :  { %v616_v51 = vmax.f32 %v488_v40, 0.0  ;;  %v617_v52 = vmax.f32 %v489_v41, 0.0  ;;  %740 = vst [vmem:[%s1998_s3 + $0x240] sm:$0xff] %v612_v43  ;;  %741 = vst [vmem:[%s1998_s3 + $0x248] sm:$0xff] %v613_v44  ;;  %v964_v56 = vunpack.c.l.bf16 %v1097_v42  ;;  %v965_v57 = vunpack.c.h.bf16 %v1097_v42 }
  0x52   :  { %v618_v54 = vmax.f32 %v490_v45, 0.0  ;;  %v619_v55 = vmax.f32 %v491_v46, 0.0  ;;  %742 = vst [vmem:[%s1998_s3 + $0x250] sm:$0xff] %v614_v49  ;;  %743 = vst [vmem:[%s1998_s3 + $0x258] sm:$0xff] %v615_v50  ;;  %v968_v58 = vunpack.c.l.bf16 %v1098_v47  ;;  %v969_v59 = vunpack.c.h.bf16 %v1098_v47 }
  0x53   :  { %744 = vst [vmem:[%s1998_s3 + $0x260] sm:$0xff] %v616_v51  ;;  %745 = vst [vmem:[%s1998_s3 + $0x268] sm:$0xff] %v617_v52  ;;  %v972_v60 = vunpack.c.l.bf16 %v1099_v48  ;;  %v973_v61 = vunpack.c.h.bf16 %v1099_v48  ;;  %v357_v62 = vmul.f32 %v964_v56, %v1149_v1  ;;  %v358_v63 = vmul.f32 %v965_v57, %v1149_v1  ;;  %v1105_v52 = vld [vmem:[%s1995_s0 + $0x180] sm:$0xff]   ;;  %v1107_v57 = vld [vmem:[%s1995_s0 + $0x190] sm:$0xff]  }
  0x54   :  { %746 = vst [vmem:[%s1998_s3 + $0x270] sm:$0xff] %v618_v54  ;;  %747 = vst [vmem:[%s1998_s3 + $0x278] sm:$0xff] %v619_v55  ;;  %v976_v0 = vunpack.c.l.bf16 %v1100_v53  ;;  %v977_v2 = vunpack.c.h.bf16 %v1100_v53  ;;  %v359_v3 = vmul.f32 %v968_v58, %v1149_v1  ;;  %v360_v4 = vmul.f32 %v969_v59, %v1149_v1 }
  0x55   :  { %v361_v5 = vmul.f32 %v972_v60, %v1149_v1  ;;  %v362_v6 = vmul.f32 %v973_v61, %v1149_v1  ;;  %v492_v8 = vadd.f32 %v1163_v7, %v357_v62  ;;  %v493_v9 = vadd.f32 %v1163_v7, %v358_v63  ;;  %v1108_v62 = vld [vmem:[%s1995_s0 + $0x198] sm:$0xff]  }
  0x56   :  { %v363_v10 = vmul.f32 %v976_v0, %v1149_v1  ;;  %v364_v11 = vmul.f32 %v977_v2, %v1149_v1  ;;  %v494_v12 = vadd.f32 %v1163_v7, %v359_v3  ;;  %v495_v13 = vadd.f32 %v1163_v7, %v360_v4 }
  0x57   :  { %v496_v14 = vadd.f32 %v1163_v7, %v361_v5  ;;  %v497_v15 = vadd.f32 %v1163_v7, %v362_v6  ;;  %v620_v17 = vmax.f32 %v492_v8, 0.0  ;;  %v621_v18 = vmax.f32 %v493_v9, 0.0  ;;  %v1792_v8 = vld [vmem:[%s1996_s1] ss:$0 sm:$0xff] }
  0x58   :  { %v498_v19 = vadd.f32 %v1163_v7, %v363_v10  ;;  %v499_v20 = vadd.f32 %v1163_v7, %v364_v11  ;;  %v622_v23 = vmax.f32 %v494_v12, 0.0  ;;  %v623_v24 = vmax.f32 %v495_v13, 0.0 }
  0x59   :  { %v624_v25 = vmax.f32 %v496_v14, 0.0  ;;  %v625_v26 = vmax.f32 %v497_v15, 0.0  ;;  %748 = vst [vmem:[%s1998_s3 + $0x280] sm:$0xff] %v620_v17  ;;  %749 = vst [vmem:[%s1998_s3 + $0x288] sm:$0xff] %v621_v18  ;;  %v980_v30 = vunpack.c.l.bf16 %v1101_v16  ;;  %v981_v31 = vunpack.c.h.bf16 %v1101_v16  ;;  %v1803_v17 = vld [vmem:[%s1997_s2] ss:$0 sm:$0xff] }
  0x5a   :  { %v626_v28 = vmax.f32 %v498_v19, 0.0  ;;  %v627_v29 = vmax.f32 %v499_v20, 0.0  ;;  %750 = vst [vmem:[%s1998_s3 + $0x290] sm:$0xff] %v622_v23  ;;  %751 = vst [vmem:[%s1998_s3 + $0x298] sm:$0xff] %v623_v24  ;;  %v984_v32 = vunpack.c.l.bf16 %v1102_v21  ;;  %v985_v33 = vunpack.c.h.bf16 %v1102_v21 }
  0x5b   :  { %752 = vst [vmem:[%s1998_s3 + $0x2a0] sm:$0xff] %v624_v25  ;;  %753 = vst [vmem:[%s1998_s3 + $0x2a8] sm:$0xff] %v625_v26  ;;  %v988_v34 = vunpack.c.l.bf16 %v1103_v22  ;;  %v989_v35 = vunpack.c.h.bf16 %v1103_v22  ;;  %v365_v36 = vmul.f32 %v980_v30, %v1149_v1  ;;  %v366_v37 = vmul.f32 %v981_v31, %v1149_v1  ;;  %v1109_v26 = vld [vmem:[%s1995_s0 + $0x1a0] sm:$0xff]   ;;  %v1110_v31 = vld [vmem:[%s1995_s0 + $0x1a8] sm:$0xff]  }
  0x5c   :  { %754 = vst [vmem:[%s1998_s3 + $0x2b0] sm:$0xff] %v626_v28  ;;  %755 = vst [vmem:[%s1998_s3 + $0x2b8] sm:$0xff] %v627_v29  ;;  %v992_v38 = vunpack.c.l.bf16 %v1104_v27  ;;  %v993_v39 = vunpack.c.h.bf16 %v1104_v27  ;;  %v367_v40 = vmul.f32 %v984_v32, %v1149_v1  ;;  %v368_v41 = vmul.f32 %v985_v33, %v1149_v1  ;;  %v1111_v32 = vld [vmem:[%s1995_s0 + $0x1b0] sm:$0xff]  }
  0x5d   :  { %v369_v42 = vmul.f32 %v988_v34, %v1149_v1  ;;  %v370_v43 = vmul.f32 %v989_v35, %v1149_v1  ;;  %v500_v44 = vadd.f32 %v1163_v7, %v365_v36  ;;  %v501_v45 = vadd.f32 %v1163_v7, %v366_v37  ;;  %v1112_v37 = vld [vmem:[%s1995_s0 + $0x1b8] sm:$0xff]  }
  0x5e   :  { %v371_v46 = vmul.f32 %v992_v38, %v1149_v1  ;;  %v372_v47 = vmul.f32 %v993_v39, %v1149_v1  ;;  %v502_v48 = vadd.f32 %v1163_v7, %v367_v40  ;;  %v503_v49 = vadd.f32 %v1163_v7, %v368_v41  ;;  %v1106_v1 = vld [vmem:[%s1995_s0 + $0x188] sm:$0xff]  }
  0x5f   :  { %v504_v50 = vadd.f32 %v1163_v7, %v369_v42  ;;  %v505_v51 = vadd.f32 %v1163_v7, %v370_v43  ;;  %v628_v53 = vmax.f32 %v500_v44, 0.0  ;;  %v629_v54 = vmax.f32 %v501_v45, 0.0 }
  0x60   :  { %v506_v55 = vadd.f32 %v1163_v7, %v371_v46  ;;  %v507_v56 = vadd.f32 %v1163_v7, %v372_v47  ;;  %v630_v58 = vmax.f32 %v502_v48, 0.0  ;;  %v631_v59 = vmax.f32 %v503_v49, 0.0 }
  0x61   :  { %v632_v60 = vmax.f32 %v504_v50, 0.0  ;;  %v633_v61 = vmax.f32 %v505_v51, 0.0  ;;  %756 = vst [vmem:[%s1998_s3 + $0x2c0] sm:$0xff] %v628_v53  ;;  %757 = vst [vmem:[%s1998_s3 + $0x2c8] sm:$0xff] %v629_v54  ;;  %v996_v0 = vunpack.c.l.bf16 %v1105_v52  ;;  %v997_v2 = vunpack.c.h.bf16 %v1105_v52 }
  0x62   :  { %v634_v7 = vmax.f32 %v506_v55, 0.0  ;;  %v635_v63 = vmax.f32 %v507_v56, 0.0  ;;  %758 = vst [vmem:[%s1998_s3 + $0x2d0] sm:$0xff] %v630_v58  ;;  %759 = vst [vmem:[%s1998_s3 + $0x2d8] sm:$0xff] %v631_v59  ;;  %v1000_v3 = vunpack.c.l.bf16 %v1106_v1  ;;  %v1001_v4 = vunpack.c.h.bf16 %v1106_v1 }
  0x63   :  { %760 = vst [vmem:[%s1998_s3 + $0x2e0] sm:$0xff] %v632_v60  ;;  %761 = vst [vmem:[%s1998_s3 + $0x2e8] sm:$0xff] %v633_v61  ;;  %v1004_v5 = vunpack.c.l.bf16 %v1107_v57  ;;  %v1005_v6 = vunpack.c.h.bf16 %v1107_v57  ;;  %v373_v9 = vmul.f32 %v1792_v8, %v996_v0  ;;  %v374_v10 = vmul.f32 %v1792_v8, %v997_v2  ;;  %v1113_v61 = vld [vmem:[%s1995_s0 + $0x1c0] sm:$0xff]   ;;  %v1114_v2 = vld [vmem:[%s1995_s0 + $0x1c8] sm:$0xff]  }
  0x64   :  { %762 = vst [vmem:[%s1998_s3 + $0x2f0] sm:$0xff] %v634_v7  ;;  %763 = vst [vmem:[%s1998_s3 + $0x2f8] sm:$0xff] %v635_v63  ;;  %v1008_v11 = vunpack.c.l.bf16 %v1108_v62  ;;  %v1009_v12 = vunpack.c.h.bf16 %v1108_v62  ;;  %v375_v13 = vmul.f32 %v1792_v8, %v1000_v3  ;;  %v376_v14 = vmul.f32 %v1792_v8, %v1001_v4  ;;  %v1115_v3 = vld [vmem:[%s1995_s0 + $0x1d0] sm:$0xff]  }
  0x65   :  { %v377_v15 = vmul.f32 %v1792_v8, %v1004_v5  ;;  %v378_v16 = vmul.f32 %v1792_v8, %v1005_v6  ;;  %v508_v18 = vadd.f32 %v1803_v17, %v373_v9  ;;  %v509_v19 = vadd.f32 %v1803_v17, %v374_v10  ;;  %v1116_v10 = vld [vmem:[%s1995_s0 + $0x1d8] sm:$0xff]  }
  0x66   :  { %v379_v20 = vmul.f32 %v1792_v8, %v1008_v11  ;;  %v380_v21 = vmul.f32 %v1792_v8, %v1009_v12  ;;  %v510_v22 = vadd.f32 %v1803_v17, %v375_v13  ;;  %v511_v23 = vadd.f32 %v1803_v17, %v376_v14 }
  0x67   :  { %v512_v24 = vadd.f32 %v1803_v17, %v377_v15  ;;  %v513_v25 = vadd.f32 %v1803_v17, %v378_v16  ;;  %v636_v27 = vmax.f32 %v508_v18, 0.0  ;;  %v637_v28 = vmax.f32 %v509_v19, 0.0 }
  0x68   :  { %v514_v29 = vadd.f32 %v1803_v17, %v379_v20  ;;  %v515_v30 = vadd.f32 %v1803_v17, %v380_v21  ;;  %v638_v33 = vmax.f32 %v510_v22, 0.0  ;;  %v639_v34 = vmax.f32 %v511_v23, 0.0 }
  0x69   :  { %v640_v35 = vmax.f32 %v512_v24, 0.0  ;;  %v641_v36 = vmax.f32 %v513_v25, 0.0  ;;  %764 = vst [vmem:[%s1998_s3 + $0x300] sm:$0xff] %v636_v27  ;;  %765 = vst [vmem:[%s1998_s3 + $0x308] sm:$0xff] %v637_v28  ;;  %v1012_v40 = vunpack.c.l.bf16 %v1109_v26  ;;  %v1013_v41 = vunpack.c.h.bf16 %v1109_v26 }
  0x6a   :  { %v642_v38 = vmax.f32 %v514_v29, 0.0  ;;  %v643_v39 = vmax.f32 %v515_v30, 0.0  ;;  %766 = vst [vmem:[%s1998_s3 + $0x310] sm:$0xff] %v638_v33  ;;  %767 = vst [vmem:[%s1998_s3 + $0x318] sm:$0xff] %v639_v34  ;;  %v1016_v42 = vunpack.c.l.bf16 %v1110_v31  ;;  %v1017_v43 = vunpack.c.h.bf16 %v1110_v31 }
  0x6b   :  { %768 = vst [vmem:[%s1998_s3 + $0x320] sm:$0xff] %v640_v35  ;;  %769 = vst [vmem:[%s1998_s3 + $0x328] sm:$0xff] %v641_v36  ;;  %v1020_v44 = vunpack.c.l.bf16 %v1111_v32  ;;  %v1021_v45 = vunpack.c.h.bf16 %v1111_v32  ;;  %v381_v46 = vmul.f32 %v1792_v8, %v1012_v40  ;;  %v382_v47 = vmul.f32 %v1792_v8, %v1013_v41  ;;  %v1117_v36 = vld [vmem:[%s1995_s0 + $0x1e0] sm:$0xff]   ;;  %v1118_v41 = vld [vmem:[%s1995_s0 + $0x1e8] sm:$0xff]  }
  0x6c   :  { %770 = vst [vmem:[%s1998_s3 + $0x330] sm:$0xff] %v642_v38  ;;  %771 = vst [vmem:[%s1998_s3 + $0x338] sm:$0xff] %v643_v39  ;;  %v1024_v48 = vunpack.c.l.bf16 %v1112_v37  ;;  %v1025_v49 = vunpack.c.h.bf16 %v1112_v37  ;;  %v383_v50 = vmul.f32 %v1792_v8, %v1016_v42  ;;  %v384_v51 = vmul.f32 %v1792_v8, %v1017_v43  ;;  %v1119_v42 = vld [vmem:[%s1995_s0 + $0x1f0] sm:$0xff]  }
  0x6d   :  { %v385_v52 = vmul.f32 %v1792_v8, %v1020_v44  ;;  %v386_v53 = vmul.f32 %v1792_v8, %v1021_v45  ;;  %v516_v54 = vadd.f32 %v1803_v17, %v381_v46  ;;  %v517_v55 = vadd.f32 %v1803_v17, %v382_v47  ;;  %v1120_v47 = vld [vmem:[%s1995_s0 + $0x1f8] sm:$0xff]  }
  0x6e   :  { %v387_v56 = vmul.f32 %v1792_v8, %v1024_v48  ;;  %v388_v1 = vmul.f32 %v1792_v8, %v1025_v49  ;;  %v518_v57 = vadd.f32 %v1803_v17, %v383_v50  ;;  %v519_v58 = vadd.f32 %v1803_v17, %v384_v51 }
  0x6f   :  { %v520_v59 = vadd.f32 %v1803_v17, %v385_v52  ;;  %v521_v60 = vadd.f32 %v1803_v17, %v386_v53  ;;  %v644_v62 = vmax.f32 %v516_v54, 0.0  ;;  %v645_v7 = vmax.f32 %v517_v55, 0.0 }
  0x70   :  { %v522_v63 = vadd.f32 %v1803_v17, %v387_v56  ;;  %v523_v0 = vadd.f32 %v1803_v17, %v388_v1  ;;  %v646_v4 = vmax.f32 %v518_v57, 0.0  ;;  %v647_v5 = vmax.f32 %v519_v58, 0.0 }
  0x71   :  { %v648_v6 = vmax.f32 %v520_v59, 0.0  ;;  %v649_v9 = vmax.f32 %v521_v60, 0.0  ;;  %772 = vst [vmem:[%s1998_s3 + $0x340] sm:$0xff] %v644_v62  ;;  %773 = vst [vmem:[%s1998_s3 + $0x348] sm:$0xff] %v645_v7  ;;  %v1028_v13 = vunpack.c.l.bf16 %v1113_v61  ;;  %v1029_v14 = vunpack.c.h.bf16 %v1113_v61 }
  0x72   :  { %v650_v11 = vmax.f32 %v522_v63, 0.0  ;;  %v651_v12 = vmax.f32 %v523_v0, 0.0  ;;  %774 = vst [vmem:[%s1998_s3 + $0x350] sm:$0xff] %v646_v4  ;;  %775 = vst [vmem:[%s1998_s3 + $0x358] sm:$0xff] %v647_v5  ;;  %v1032_v15 = vunpack.c.l.bf16 %v1114_v2  ;;  %v1033_v16 = vunpack.c.h.bf16 %v1114_v2 }
  0x73   :  { %776 = vst [vmem:[%s1998_s3 + $0x360] sm:$0xff] %v648_v6  ;;  %777 = vst [vmem:[%s1998_s3 + $0x368] sm:$0xff] %v649_v9  ;;  %v1036_v18 = vunpack.c.l.bf16 %v1115_v3  ;;  %v1037_v19 = vunpack.c.h.bf16 %v1115_v3  ;;  %v389_v20 = vmul.f32 %v1792_v8, %v1028_v13  ;;  %v390_v21 = vmul.f32 %v1792_v8, %v1029_v14 }
  0x74   :  { %778 = vst [vmem:[%s1998_s3 + $0x370] sm:$0xff] %v650_v11  ;;  %779 = vst [vmem:[%s1998_s3 + $0x378] sm:$0xff] %v651_v12  ;;  %v1040_v22 = vunpack.c.l.bf16 %v1116_v10  ;;  %v1041_v23 = vunpack.c.h.bf16 %v1116_v10  ;;  %v391_v24 = vmul.f32 %v1792_v8, %v1032_v15  ;;  %v392_v25 = vmul.f32 %v1792_v8, %v1033_v16 }
  0x75   :  { %v393_v26 = vmul.f32 %v1792_v8, %v1036_v18  ;;  %v394_v27 = vmul.f32 %v1792_v8, %v1037_v19  ;;  %v524_v28 = vadd.f32 %v1803_v17, %v389_v20  ;;  %v525_v29 = vadd.f32 %v1803_v17, %v390_v21 }
  0x76   :  { %v395_v30 = vmul.f32 %v1792_v8, %v1040_v22  ;;  %v396_v31 = vmul.f32 %v1792_v8, %v1041_v23  ;;  %v526_v32 = vadd.f32 %v1803_v17, %v391_v24  ;;  %v527_v33 = vadd.f32 %v1803_v17, %v392_v25 }
  0x77   :  { %v528_v34 = vadd.f32 %v1803_v17, %v393_v26  ;;  %v529_v35 = vadd.f32 %v1803_v17, %v394_v27  ;;  %v652_v37 = vmax.f32 %v524_v28, 0.0  ;;  %v653_v38 = vmax.f32 %v525_v29, 0.0 }
  0x78   :  { %v530_v39 = vadd.f32 %v1803_v17, %v395_v30  ;;  %v531_v40 = vadd.f32 %v1803_v17, %v396_v31  ;;  %v654_v43 = vmax.f32 %v526_v32, 0.0  ;;  %v655_v44 = vmax.f32 %v527_v33, 0.0 }
  0x79   :  { %v656_v45 = vmax.f32 %v528_v34, 0.0  ;;  %v657_v46 = vmax.f32 %v529_v35, 0.0  ;;  %780 = vst [vmem:[%s1998_s3 + $0x380] sm:$0xff] %v652_v37  ;;  %781 = vst [vmem:[%s1998_s3 + $0x388] sm:$0xff] %v653_v38  ;;  %v1044_v50 = vunpack.c.l.bf16 %v1117_v36  ;;  %v1045_v51 = vunpack.c.h.bf16 %v1117_v36 }
  0x7a   :  { %v658_v48 = vmax.f32 %v530_v39, 0.0  ;;  %v659_v49 = vmax.f32 %v531_v40, 0.0  ;;  %782 = vst [vmem:[%s1998_s3 + $0x390] sm:$0xff] %v654_v43  ;;  %783 = vst [vmem:[%s1998_s3 + $0x398] sm:$0xff] %v655_v44  ;;  %v1048_v52 = vunpack.c.l.bf16 %v1118_v41  ;;  %v1049_v53 = vunpack.c.h.bf16 %v1118_v41 }
  0x7b   :  { %784 = vst [vmem:[%s1998_s3 + $0x3a0] sm:$0xff] %v656_v45  ;;  %785 = vst [vmem:[%s1998_s3 + $0x3a8] sm:$0xff] %v657_v46  ;;  %v1052_v54 = vunpack.c.l.bf16 %v1119_v42  ;;  %v1053_v55 = vunpack.c.h.bf16 %v1119_v42  ;;  %v397_v56 = vmul.f32 %v1792_v8, %v1044_v50  ;;  %v398_v1 = vmul.f32 %v1792_v8, %v1045_v51 }
  0x7c   :  { %786 = vst [vmem:[%s1998_s3 + $0x3b0] sm:$0xff] %v658_v48  ;;  %787 = vst [vmem:[%s1998_s3 + $0x3b8] sm:$0xff] %v659_v49  ;;  %v1056_v57 = vunpack.c.l.bf16 %v1120_v47  ;;  %v1057_v58 = vunpack.c.h.bf16 %v1120_v47  ;;  %v399_v59 = vmul.f32 %v1792_v8, %v1048_v52  ;;  %v400_v60 = vmul.f32 %v1792_v8, %v1049_v53 }
  0x7d   :  { %v401_v61 = vmul.f32 %v1792_v8, %v1052_v54  ;;  %v402_v62 = vmul.f32 %v1792_v8, %v1053_v55  ;;  %v532_v7 = vadd.f32 %v1803_v17, %v397_v56  ;;  %v533_v63 = vadd.f32 %v1803_v17, %v398_v1 }
  0x7e   :  { %v403_v0 = vmul.f32 %v1792_v8, %v1056_v57  ;;  %v404_v2 = vmul.f32 %v1792_v8, %v1057_v58  ;;  %v534_v3 = vadd.f32 %v1803_v17, %v399_v59  ;;  %v535_v4 = vadd.f32 %v1803_v17, %v400_v60 }
  0x7f   :  { %v536_v5 = vadd.f32 %v1803_v17, %v401_v61  ;;  %v537_v6 = vadd.f32 %v1803_v17, %v402_v62  ;;  %v660_v9 = vmax.f32 %v532_v7, 0.0  ;;  %v661_v10 = vmax.f32 %v533_v63, 0.0 }
  0x80   :  { %v538_v11 = vadd.f32 %v1803_v17, %v403_v0  ;;  %v539_v12 = vadd.f32 %v1803_v17, %v404_v2  ;;  %v662_v13 = vmax.f32 %v534_v3, 0.0  ;;  %v663_v14 = vmax.f32 %v535_v4, 0.0 }
  0x81   :  { %v664_v15 = vmax.f32 %v536_v5, 0.0  ;;  %v665_v16 = vmax.f32 %v537_v6, 0.0  ;;  %788 = vst [vmem:[%s1998_s3 + $0x3c0] sm:$0xff] %v660_v9  ;;  %789 = vst [vmem:[%s1998_s3 + $0x3c8] sm:$0xff] %v661_v10 }
  0x82   :  { %v666_v8 = vmax.f32 %v538_v11, 0.0  ;;  %v667_v18 = vmax.f32 %v539_v12, 0.0  ;;  %790 = vst [vmem:[%s1998_s3 + $0x3d0] sm:$0xff] %v662_v13  ;;  %791 = vst [vmem:[%s1998_s3 + $0x3d8] sm:$0xff] %v663_v14 }
  0x83   :  { %792 = vst [vmem:[%s1998_s3 + $0x3e0] sm:$0xff] %v664_v15  ;;  %793 = vst [vmem:[%s1998_s3 + $0x3e8] sm:$0xff] %v665_v16 }
  0x84   :  { %794 = vst [vmem:[%s1998_s3 + $0x3f0] sm:$0xff] %v666_v8  ;;  %795 = vst [vmem:[%s1998_s3 + $0x3f8] sm:$0xff] %v667_v18 }

// kernel: st_conv3d.3
= control target key start
LH: loop header
LB: loop body
LE: loop exit
PB: predicated region body
PF: predicated region fallthrough
CT: control target
= control target key end

     0   :  { %s2613_s15 = smov 0   ;;  %s2615_s16 = smov 0   ;;  %s3188_s0 = inlined_call_operand.vmem [shape: bf16[16,10,10,128], index: 0, kind: input, shape index: {}]   ;;  %s3189_s1 = inlined_call_operand.vmem [shape: bf16[1152,128], index: 1, kind: input, shape index: {}]   ;;  %s3190_s2 = inlined_call_operand.vmem [shape: bf16[16,8,8,128], index: 2, kind: output, shape index: {0}]   ;;  %s3191_s3 = inlined_call_operand.vmem [shape: f32[16,1,1,128], index: 3, kind: output, shape index: {1}]   ;;  %s3192_s4 = inlined_call_operand.vmem [shape: f32[16,1,1,128], index: 4, kind: output, shape index: {2}]  }
   0x1   :  { %s2617_s17 = smov 0  }
   0x2 LB: > { %s27_s18 = sadd.s32 1, %s2582_s16  ;;  %p1961_p0 = scmp.ge.s32.totalorder %s2586_s17, 1  ;;  %s2586_s17 = sphi %s2617_s17, %s15_s17   ;;  %s2582_s16 = sphi %s2615_s16, %s3202_s16   ;;  %s2578_s15 = sphi %s2613_s15, %s3201_s15  }
   0x3   : > { %p29_p1 = scmp.ge.s32.totalorder %s27_s18, 16  ;;  %p185_p2 = scmp.lt.s32.totalorder %s2586_s17, 17 }
   0x5   : > { %s3204_s18 = smov (%p29_p1, %s27_s18), 0  ;;  %p186_p3 = pnand %p1961_p0, %p185_p2 }
   0x7   : > { %189 = sbr.rel (%p186_p3) target bundleno = 340 (0x154), region = 28 }
   0xc   : > { %v2432_v0 = vld [vmem:[%s3189_s1 + $0x78] sm:$0xff]   ;;  %v2436_v4 = vld [vmem:[%s3189_s1 + $0x70] sm:$0xff]   ;;  %v2440_v8 = vld [vmem:[%s3189_s1 + $0x68] sm:$0xff]   ;;  %p227_p4 = scmp.lt.s32.totalorder %s2578_s15, 15 }
   0xd   : > { %v2433_v1 = vld [vmem:[%s3189_s1 + $0xf8] sm:$0xff]   ;;  %2195 = vmatprep.subr.bf16.mxu0 %v2432_v0  ;;  %v2437_v5 = vld [vmem:[%s3189_s1 + $0xf0] sm:$0xff]   ;;  %v2441_v9 = vld [vmem:[%s3189_s1 + $0xe8] sm:$0xff]  }
   0xe   : > { %v2434_v2 = vld [vmem:[%s3189_s1 + $0x38] sm:$0xff]   ;;  %2235 = vmatprep.subr.bf16.mxu1 %v2433_v1  ;;  %v2438_v6 = vld [vmem:[%s3189_s1 + $0x30] sm:$0xff]   ;;  %v2442_v10 = vld [vmem:[%s3189_s1 + $0x28] sm:$0xff]   ;;  %s3206_s15 = smov (!%p227_p4, %s2578_s15), 15 }
   0xf   : > { %v2435_v3 = vld [vmem:[%s3189_s1 + $0xb8] sm:$0xff]   ;;  %2196 = vmatpush3.bf16.msra.mxu0 %v2434_v2  ;;  %v2439_v7 = vld [vmem:[%s3189_s1 + $0xb0] sm:$0xff]   ;;  %v2443_v11 = vld [vmem:[%s3189_s1 + $0xa8] sm:$0xff]   ;;  %s2407_s27 = smul.u32 80, %s3206_s15  ;;  %s247_s22 = scalar_lea.vmem %s3191_s3, %s3206_s15 }
  0x10   : > { %2236 = vmatpush3.bf16.msra.mxu1 %v2435_v3  ;;  %2197 = vmatprep.subr.bf16.mxu0 %v2436_v4  ;;  %v2444_v12 = vld [vmem:[%s3189_s1 + $0x60] sm:$0xff]   ;;  %v2448_v16 = vld [vmem:[%s3189_s1 + $0x58] sm:$0xff]   ;;  %v2452_v20 = vld [vmem:[%s3189_s1 + $0x50] sm:$0xff]   ;;  %s253_s25 = scalar_lea.vmem %s3192_s4, %s3206_s15 }
  0x11   : > { %2237 = vmatprep.subr.bf16.mxu1 %v2437_v5  ;;  %v2445_v13 = vld [vmem:[%s3189_s1 + $0xe0] sm:$0xff]   ;;  %v2449_v17 = vld [vmem:[%s3189_s1 + $0xd8] sm:$0xff]   ;;  %v2453_v21 = vld [vmem:[%s3189_s1 + $0xd0] sm:$0xff]   ;;  %s2731_s12 = scalar_lea.vmem %s3188_s0, %s2407_s27 }
  0x12   : > { %v2446_v14 = vld [vmem:[%s3189_s1 + $0x20] sm:$0xff]   ;;  %v2450_v18 = vld [vmem:[%s3189_s1 + $0x18] sm:$0xff]   ;;  %v2454_v22 = vld [vmem:[%s3189_s1 + $0x10] sm:$0xff]  }
  0x13   : > { %2198 = vmatpush3.bf16.msra.mxu0 %v2438_v6  ;;  %v2447_v15 = vld [vmem:[%s3189_s1 + $0xa0] sm:$0xff]   ;;  %v2451_v19 = vld [vmem:[%s3189_s1 + $0x98] sm:$0xff]   ;;  %v2455_v23 = vld [vmem:[%s3189_s1 + $0x90] sm:$0xff]  }
  0x14   : > { %2238 = vmatpush3.bf16.msra.mxu1 %v2439_v7  ;;  %2199 = vmatprep.subr.bf16.mxu0 %v2440_v8  ;;  %v2456_v24 = vld [vmem:[%s3189_s1 + $0x48] sm:$0xff]   ;;  %v2460_v28 = vld [vmem:[%s3189_s1 + $0x40] sm:$0xff]   ;;  %v2747_v38 = vld [vmem:[%s2731_s12 + $0x10] sm:$0xf] }
  0x15   : > { %2239 = vmatprep.subr.bf16.mxu1 %v2441_v9  ;;  %v2457_v25 = vld [vmem:[%s3189_s1 + $0xc8] sm:$0xff]   ;;  %v2461_v29 = vld [vmem:[%s3189_s1 + $0xc0] sm:$0xff]   ;;  %v2474_v49 = vld [vmem:[%s3189_s1 + $0x178] sm:$0xff]  }
  0x16   : > { %v2458_v26 = vld [vmem:[%s3189_s1 + $0x8] sm:$0xff]   ;;  %v2462_v30 = vld [vmem:[%s3189_s1] sm:$0xff]   ;;  %v2475_v50 = vld [vmem:[%s3189_s1 + $0x1f8] sm:$0xff]  }
  0x17   : > { %2200 = vmatpush3.bf16.msra.mxu0 %v2442_v10  ;;  %v2459_v27 = vld [vmem:[%s3189_s1 + $0x88] sm:$0xff]   ;;  %v2463_v31 = vld [vmem:[%s3189_s1 + $0x80] sm:$0xff]   ;;  %v2476_v55 = vld [vmem:[%s3189_s1 + $0x138] sm:$0xff]  }
  0x18   : > { %2240 = vmatpush3.bf16.msra.mxu1 %v2443_v11  ;;  %2201 = vmatprep.subr.bf16.mxu0 %v2444_v12  ;;  %v259_v32 = vld [vmem:[%s2731_s12] sm:$0xf]  ;;  %v260_v33 = vld [vmem:[%s2731_s12 + $0x8] sm:$0xf]  ;;  %v267_v34 = vld [vmem:[%s2731_s12 + $0x4] sm:$0x1] }
  0x19   : > { %2241 = vmatprep.subr.bf16.mxu1 %v2445_v13  ;;  %v268_v35 = vld [vmem:[%s2731_s12 + $0xc] sm:$0x1]  ;;  %v2013_v36 = vcombine.low %v259_v32, %v267_v34  ;;  %v2744_v37 = vld [vmem:[%s2731_s12 + $0x8] sm:$0xf]  ;;  %v275_v43 = vld [vmem:[%s2731_s12] sm:$0xe]  ;;  %v2061_v57 = vcombine.low %v259_v32, %v260_v33 }
  0x1a   : > { %v2014_v39 = vcombine.low %v260_v33, %v268_v35  ;;  %v2064_v40 = vcombine.low %v2744_v37, %v2747_v38  ;;  %v276_v46 = vld [vmem:[%s2731_s12 + $0x8] sm:$0xe]  ;;  %v2021_v52 = vcombine.low %v275_v43, %v267_v34  ;;  %v2477_v56 = vld [vmem:[%s3189_s1 + $0x1b8] sm:$0xff]   ;;  %v2478_v61 = vld [vmem:[%s3189_s1 + $0x170] sm:$0xff]  }
  0x1b   : > { %2202 = vmatpush3.bf16.msra.mxu0 %v2446_v14  ;;  %v380_v41 = vshrl.u32 %v2013_v36, 16  ;;  %v382_v42 = vshll.u32 %v2013_v36, 16  ;;  %v2022_v53 = vcombine.low %v276_v46, %v268_v35  ;;  %v2479_v63 = vld [vmem:[%s3189_s1 + $0x1f0] sm:$0xff]   ;;  %v262_v3 = vld [vmem:[%s2731_s12 + $0x18] sm:$0xf]  ;;  %v2494_v36 = vld [vmem:[%s3189_s1 + $0x160] sm:$0xff]  }
  0x1c   : > { %2242 = vmatpush3.bf16.msra.mxu1 %v2447_v15  ;;  %2203 = vmatprep.subr.bf16.mxu0 %v2448_v16  ;;  %v387_v44 = vshrl.u32 %v2014_v39, 16  ;;  %v389_v45 = vshll.u32 %v2014_v39, 16  ;;  %v459_v58 = vrot.slane %v2021_v52, 1  ;;  %v2480_v0 = vld [vmem:[%s3189_s1 + $0x130] sm:$0xff]   ;;  %v270_v5 = vld [vmem:[%s2731_s12 + $0x1c] sm:$0x1] }
  0x1d   : > { %2243 = vmatprep.subr.bf16.mxu1 %v2449_v17  ;;  %1516 = vmatprep.mubr.bf16.mxu1 %v2064_v40  ;;  %v384_v47 = vrot.slane %v382_v42, 1  ;;  %v460_v59 = vrot.slane %v2022_v53, 1  ;;  %v2481_v1 = vld [vmem:[%s3189_s1 + $0x1b0] sm:$0xff]   ;;  %v2782_v7 = vld [vmem:[%s2731_s12 + $0x18] sm:$0xf]  ;;  %v2016_v9 = vcombine.low %v262_v3, %v270_v5  ;;  %v2496_v42 = vld [vmem:[%s3189_s1 + $0x120] sm:$0xff]  }
  0x1e   : > { %v391_v48 = vrot.slane %v389_v45, 1  ;;  %v261_v2 = vld [vmem:[%s2731_s12 + $0x10] sm:$0xf]  ;;  %v269_v4 = vld [vmem:[%s2731_s12 + $0x14] sm:$0x1]  ;;  %v2497_v43 = vld [vmem:[%s3189_s1 + $0x1a0] sm:$0xff]  }
  0x1f   : > { %2204 = vmatpush3.bf16.msra.mxu0 %v2450_v18  ;;  %v385_v51 = vor.u32 %v384_v47, %v380_v41  ;;  %v2063_v62 = vcombine.low %v459_v58, %v460_v59  ;;  %v2015_v6 = vcombine.low %v261_v2, %v269_v4  ;;  %v2785_v8 = vld [vmem:[%s2731_s12 + $0x20] sm:$0xf]  ;;  %v277_v11 = vld [vmem:[%s2731_s12 + $0x10] sm:$0xe]  ;;  %v2791_v12 = vld [vmem:[%s2731_s12 + $0xc] sm:$0x1]  ;;  %v2070_v35 = vcombine.low %v261_v2, %v262_v3 }
  0x20   : > { %2244 = vmatpush3.bf16.msra.mxu1 %v2451_v19  ;;  %2205 = vmatprep.subr.bf16.mxu0 %v2452_v20  ;;  %v392_v54 = vor.u32 %v391_v48, %v387_v44  ;;  %v2073_v10 = vcombine.low %v2782_v7, %v2785_v8  ;;  %v278_v15 = vld [vmem:[%s2731_s12 + $0x18] sm:$0xe]  ;;  %v401_v16 = vshrl.u32 %v2016_v9, 16  ;;  %v403_v17 = vshll.u32 %v2016_v9, 16  ;;  %v2490_v20 = vld [vmem:[%s3189_s1 + $0x168] sm:$0xff]  }
  0x21   : > { %2245 = vmatprep.subr.bf16.mxu1 %v2453_v21  ;;  %v394_v13 = vshrl.u32 %v2015_v6, 16  ;;  %v396_v14 = vshll.u32 %v2015_v6, 16  ;;  %v2023_v18 = vcombine.low %v277_v11, %v269_v4  ;;  %v2024_v19 = vcombine.low %v278_v15, %v270_v5  ;;  %v2491_v21 = vld [vmem:[%s3189_s1 + $0x1e8] sm:$0xff]   ;;  %v263_v44 = vld [vmem:[%s2731_s12 + $0x20] sm:$0xf]  ;;  %v2506_v5 = vld [vmem:[%s3189_s1 + $0x158] sm:$0xff]  }
  0x22   : > { %v2062_v60 = vcombine.low %v385_v51, %v392_v54  ;;  %v2811_v32 = vcombine.low %v2744_v37, %v2791_v12  ;;  %v2495_v37 = vld [vmem:[%s3189_s1 + $0x1e0] sm:$0xff]   ;;  %v264_v45 = vld [vmem:[%s2731_s12 + $0x28] sm:$0xf]  ;;  %v2841_v53 = vld [vmem:[%s2731_s12 + $0x1c] sm:$0x1] }
  0x23   : > { %2206 = vmatpush3.bf16.msra.mxu0 %v2454_v22  ;;  %v1974_v22 = vld [vmem:[%s2731_s12 + $0x14] sm:$0x1]  ;;  %v271_v48 = vld [vmem:[%s2731_s12 + $0x24] sm:$0x1]  ;;  %v279_v59 = vld [vmem:[%s2731_s12 + $0x20] sm:$0xe]  ;;  %v2865_v9 = vcombine.low %v2782_v7, %v2841_v53 }
  0x24   : > { %2246 = vmatpush3.bf16.msra.mxu1 %v2455_v23  ;;  %2207 = vmatprep.subr.bf16.mxu0 %v2456_v24  ;;  %v398_v23 = vrot.slane %v396_v14, 1  ;;  %v2492_v24 = vld [vmem:[%s3189_s1 + $0x128] sm:$0xff]   ;;  %v2817_v39 = vcombine.low %v2747_v38, %v1974_v22  ;;  %v508_v41 = vshrl.u32 %v2811_v32, 16  ;;  %v510_v38 = vshll.u32 %v2811_v32, 16  ;;  %v2507_v6 = vld [vmem:[%s3189_s1 + $0x1d8] sm:$0xff]  }
  0x25   : > { %2247 = vmatprep.subr.bf16.mxu1 %v2457_v25  ;;  %1451 = vmatprep.mubr.bf16.mxu0 %v2062_v60  ;;  %v405_v25 = vrot.slane %v403_v17, 1  ;;  %v2017_v54 = vcombine.low %v263_v44, %v271_v48  ;;  %v280_v60 = vld [vmem:[%s2731_s12 + $0x28] sm:$0xe]  ;;  %v2025_v3 = vcombine.low %v279_v59, %v271_v48  ;;  %v2508_v14 = vld [vmem:[%s3189_s1 + $0x118] sm:$0xff]  }
  0x26   : > { %v515_v51 = vshrl.u32 %v2817_v39, 16  ;;  %v517_v52 = vshll.u32 %v2817_v39, 16  ;;  %v2509_v15 = vld [vmem:[%s3189_s1 + $0x198] sm:$0xff]  }
  0x27   : > { %2208 = vmatpush3.bf16.msra.mxu0 %v2458_v26  ;;  %v461_v26 = vrot.slane %v2023_v18, 1  ;;  %v406_v33 = vor.u32 %v405_v25, %v401_v16  ;;  %v2877_v18 = vrot.slane %v510_v38, 1  ;;  %v2911_v38 = vld [vmem:[%s2731_s12 + $0x34] sm:$0x1]  ;;  %v2984_v32 = vld [vmem:[%s2731_s12 + $0x1c] sm:$0x1] }
  0x28   : > { %2248 = vmatpush3.bf16.msra.mxu1 %v2459_v27  ;;  %2209 = vmatprep.subr.bf16.mxu0 %v2460_v28  ;;  %v462_v27 = vrot.slane %v2024_v19, 1  ;;  %v2493_v28 = vld [vmem:[%s3189_s1 + $0x1a8] sm:$0xff]   ;;  %v2079_v19 = vcombine.low %v263_v44, %v264_v45  ;;  %v2889_v25 = vrot.slane %v517_v52, 1 }
  0x29   : > { %2249 = vmatprep.subr.bf16.mxu1 %v2461_v29  ;;  %v399_v29 = vor.u32 %v398_v23, %v394_v13  ;;  %v2884_v23 = vld [vmem:[%s2731_s12 + $0x2c] sm:$0x1] }
  0x2a   : > { %v2072_v34 = vcombine.low %v461_v26, %v462_v27  ;;  %v2512_v26 = vld [vmem:[%s3189_s1 + $0x110] sm:$0xff]  }
  0x2b   : > { %2210 = vmatpush3.bf16.msra.mxu0 %v2462_v30  ;;  %v1981_v30 = vld [vmem:[%s2731_s12 + $0x8] sm:$0xe]  ;;  %v2071_v40 = vcombine.low %v399_v29, %v406_v33  ;;  %v2899_v29 = vld [vmem:[%s2731_s12 + $0x30] sm:$0xf]  ;;  %v274_v33 = vld [vmem:[%s2731_s12 + $0x3c] sm:$0x1] }
  0x2c   : > { %2250 = vmatpush3.bf16.msra.mxu1 %v2463_v31  ;;  %2275 = vmatprep.subr.bf16.mxu0 %v2474_v49  ;;  %v1982_v31 = vld [vmem:[%s2731_s12 + $0x10] sm:$0xe]  ;;  %v2037_v46 = vcombine.low %v1981_v30, %v2791_v12  ;;  %v272_v49 = vld [vmem:[%s2731_s12 + $0x2c] sm:$0x1]  ;;  %v463_v12 = vrot.slane %v2025_v3, 1 }
  0x2d   : > { %2315 = vmatprep.subr.bf16.mxu1 %v2475_v50  ;;  %v2038_v47 = vcombine.low %v1982_v31, %v1974_v22  ;;  %v2836_v50 = vld [vmem:[%s2731_s12 + $0x28] sm:$0xf]  ;;  %v2026_v4 = vcombine.low %v280_v60, %v272_v49  ;;  %v524_v22 = vshll.u32 %v2865_v9, 16  ;;  %v266_v30 = vld [vmem:[%s2731_s12 + $0x38] sm:$0xf] }
  0x2e   : > { %1452 = vmatmul.mubr.bf16.vlgmr.msra.gmra.mxu0 %v2061_v57  ;;  %v2847_v57 = vld [vmem:[%s2731_s12 + $0x24] sm:$0x1]  ;;  %v273_v31 = vld [vmem:[%s2731_s12 + $0x34] sm:$0x1]  ;;  %v2935_v3 = vld [vmem:[%s2731_s12 + $0x3c] sm:$0x1] }
  0x2f   : > { %1517 = vmatmul.mubr.bf16.vlgmr.msra.gmra.mxu1 %v2063_v62  ;;  %2276 = vmatpush3.bf16.msra.mxu0 %v2476_v55  ;;  %v2018_v55 = vcombine.low %v264_v45, %v272_v49  ;;  %v410_v62 = vshll.u32 %v2017_v54, 16  ;;  %v2855_v2 = vrot.slane %v2038_v47, 1  ;;  %v464_v13 = vrot.slane %v2026_v4, 1  ;;  %v281_v45 = vld [vmem:[%s2731_s12 + $0x30] sm:$0xe] }
  0x30   : > { %2316 = vmatpush3.bf16.msra.mxu1 %v2477_v56  ;;  %2277 = vmatprep.subr.bf16.mxu0 %v2478_v61  ;;  %v2844_v56 = vld [vmem:[%s2731_s12 + $0x30] sm:$0xf]  ;;  %v408_v61 = vshrl.u32 %v2017_v54, 16  ;;  %v2875_v16 = vcombine.low %v2785_v8, %v2847_v57  ;;  %v2027_v54 = vcombine.low %v281_v45, %v273_v31  ;;  %v1984_v45 = vld [vmem:[%s2731_s12 + $0x20] sm:$0xe] }
  0x31   : > { %2317 = vmatprep.subr.bf16.mxu1 %v2479_v63  ;;  %1524 = vmatprep.mubr.bf16.mxu1 %v2073_v10  ;;  %v2082_v58 = vcombine.low %v2836_v50, %v2844_v56  ;;  %v415_v63 = vshrl.u32 %v2018_v55, 16  ;;  %v412_v10 = vrot.slane %v410_v62, 1  ;;  %v2523_v62 = vld [vmem:[%s3189_s1 + $0x1c8] sm:$0xff]  }
  0x32   : > { %1459 = vmatprep.mubr.bf16.mxu0 %v2071_v40  ;;  %v531_v27 = vshll.u32 %v2875_v16, 16  ;;  %v1972_v40 = vld [vmem:[%s2731_s12 + $0x40] sm:$0xf]  ;;  %v529_v59 = vshrl.u32 %v2875_v16, 16  ;;  %v465_v4 = vrot.slane %v2027_v54, 1  ;;  %v3042_v16 = vld [vmem:[%s3189_s1 + $0x228] sm:$0xff]  }
  0x33   : > { %2278 = vmatpush3.bf16.msra.mxu0 %v2480_v0  ;;  %v417_v0 = vshll.u32 %v2018_v55, 16  ;;  %v413_v7 = vor.u32 %v412_v10, %v408_v61  ;;  %v3010_v54 = vld [vmem:[%s2731_s12 + $0x28] sm:$0xf] }
  0x34   : > { %2318 = vmatpush3.bf16.msra.mxu1 %v2481_v1  ;;  %2279 = vmatprep.subr.bf16.mxu0 %v2490_v20  ;;  %v2853_v1 = vrot.slane %v2037_v46, 1  ;;  %v2081_v20 = vcombine.low %v463_v12, %v464_v13  ;;  %v282_v46 = vld [vmem:[%s2731_s12 + $0x38] sm:$0xe]  ;;  %v2088_v12 = vcombine.low %v2899_v29, %v266_v30 }
  0x35   : > { %2319 = vmatprep.subr.bf16.mxu1 %v2491_v21  ;;  %v419_v11 = vrot.slane %v417_v0, 1  ;;  %v2510_v21 = vld [vmem:[%s3189_s1 + $0x150] sm:$0xff]   ;;  %v2028_v55 = vcombine.low %v282_v46, %v274_v33 }
  0x36   : > { %1460 = vmatmul.mubr.bf16.gmra.mxu0 %v2070_v35  ;;  %v2020_v35 = vcombine.low %v266_v30, %v274_v33 }
  0x37   : > { %2280 = vmatpush3.bf16.msra.mxu0 %v2492_v24  ;;  %1525 = vmatmul.mubr.bf16.gmra.mxu1 %v2072_v34  ;;  %v420_v17 = vor.u32 %v419_v11, %v415_v63  ;;  %v2511_v24 = vld [vmem:[%s3189_s1 + $0x1d0] sm:$0xff]   ;;  %v2019_v34 = vcombine.low %v2899_v29, %v273_v31  ;;  %v2524_v63 = vld [vmem:[%s3189_s1 + $0x108] sm:$0xff]   ;;  %v2941_v11 = vld [vmem:[%s2731_s12 + $0x44] sm:$0x1] }
  0x38   : > { %2320 = vmatpush3.bf16.msra.mxu1 %v2493_v28  ;;  %2281 = vmatprep.subr.bf16.mxu0 %v2494_v36  ;;  %v2513_v28 = vld [vmem:[%s3189_s1 + $0x190] sm:$0xff]   ;;  %v1971_v36 = vld [vmem:[%s2731_s12 + $0x38] sm:$0xf]  ;;  %v429_v49 = vshrl.u32 %v2020_v35, 16  ;;  %v431_v52 = vshll.u32 %v2020_v35, 16  ;;  %v2981_v30 = vcombine.low %v1972_v40, %v2941_v11 }
  0x39   : > { %2321 = vmatprep.subr.bf16.mxu1 %v2495_v37  ;;  %1532 = vmatprep.mubr.bf16.mxu1 %v2082_v58  ;;  %v2080_v8 = vcombine.low %v413_v7, %v420_v17  ;;  %v522_v37 = vshrl.u32 %v2865_v9, 16  ;;  %v2091_v44 = vcombine.low %v1971_v36, %v1972_v40  ;;  %v422_v47 = vshrl.u32 %v2019_v34, 16  ;;  %v2522_v58 = vld [vmem:[%s3189_s1 + $0x148] sm:$0xff]   ;;  %v2978_v29 = vld [vmem:[%s2731_s12 + $0x14] sm:$0x1] }
  0x3a   : > { %v424_v48 = vshll.u32 %v2019_v34, 16  ;;  %v433_v61 = vrot.slane %v431_v52, 1  ;;  %v1983_v34 = vld [vmem:[%s2731_s12 + $0x18] sm:$0xe]  ;;  %v2040_v52 = vcombine.low %v1984_v45, %v2847_v57  ;;  %v1988_v45 = vld [vmem:[%s2731_s12 + $0x40] sm:$0xe] }
  0x3b   : > { %2282 = vmatpush3.bf16.msra.mxu0 %v2496_v42  ;;  %1467 = vmatprep.mubr.bf16.mxu0 %v2080_v8  ;;  %v2908_v42 = vrot.slane %v524_v22, 1  ;;  %v2958_v8 = vcombine.low %v1971_v36, %v2935_v3  ;;  %v2039_v46 = vcombine.low %v1983_v34, %v2841_v53  ;;  %v3021_v53 = vld [vmem:[%s3189_s1 + $0x230] sm:$0xff]  }
  0x3c   : > { %2322 = vmatpush3.bf16.msra.mxu1 %v2497_v43  ;;  %2283 = vmatprep.subr.bf16.mxu0 %v2506_v5  ;;  %v2915_v43 = vcombine.low %v2836_v50, %v2884_v23  ;;  %v2925_v50 = vcombine.low %v2844_v56, %v2911_v38  ;;  %v426_v60 = vrot.slane %v424_v48, 1  ;;  %v466_v5 = vrot.slane %v2028_v55, 1  ;;  %v2525_v56 = vld [vmem:[%s3189_s1 + $0x188] sm:$0xff]   ;;  %v3013_v55 = vld [vmem:[%s2731_s12 + $0x24] sm:$0x1] }
  0x3d   : > { %2323 = vmatprep.subr.bf16.mxu1 %v2507_v6  ;;  %v434_v10 = vor.u32 %v433_v61, %v429_v49  ;;  %v559_v48 = vshll.u32 %v2981_v30, 16  ;;  %v589_v61 = vrot.slane %v2039_v46, 1 }
  0x3e   : > { %1468 = vmatmul.mubr.bf16.gmra.mxu0 %v2079_v19  ;;  %v538_v0 = vshll.u32 %v2915_v43, 16  ;;  %v427_v6 = vor.u32 %v426_v60, %v422_v47  ;;  %v2090_v13 = vcombine.low %v465_v4, %v466_v5  ;;  %v545_v7 = vshll.u32 %v2925_v50, 16  ;;  %v2527_v19 = vld [vmem:[%s3189_s1 + $0x1c0] sm:$0xff]  }
  0x3f   : > { %2284 = vmatpush3.bf16.msra.mxu0 %v2508_v14  ;;  %1533 = vmatmul.mubr.bf16.gmra.mxu1 %v2081_v20  ;;  %v2526_v14 = vld [vmem:[%s3189_s1 + $0x140] sm:$0xff]   ;;  %v536_v22 = vshrl.u32 %v2915_v43, 16  ;;  %v590_v4 = vrot.slane %v2040_v52, 1 }
  0x40   : > { %2324 = vmatpush3.bf16.msra.mxu1 %v2509_v15  ;;  %2285 = vmatprep.subr.bf16.mxu0 %v2510_v21  ;;  %v533_v15 = vrot.slane %v531_v27, 1  ;;  %v2089_v17 = vcombine.low %v427_v6, %v434_v10  ;;  %v2528_v20 = vld [vmem:[%s3189_s1 + $0x100] sm:$0xff]   ;;  %v2066_v21 = vcombine.low %v2853_v1, %v2855_v2  ;;  %v513_v27 = vor.u32 %v2877_v18, %v508_v41  ;;  %v2972_v2 = vld [vmem:[%s2731_s12 + $0x10] sm:$0xf] }
  0x41   : > { %2325 = vmatprep.subr.bf16.mxu1 %v2511_v24  ;;  %1540 = vmatprep.mubr.bf16.mxu1 %v2091_v44  ;;  %v2529_v24 = vld [vmem:[%s3189_s1 + $0x180] sm:$0xff]   ;;  %v520_v1 = vor.u32 %v2889_v25, %v515_v51  ;;  %v2045_v39 = vcombine.low %v2972_v2, %v2978_v29  ;;  %v2993_v51 = vld [vmem:[%s3189_s1 + $0x238] sm:$0xff]   ;;  %v543_v18 = vshrl.u32 %v2925_v50, 16  ;;  %v552_v25 = vshll.u32 %v2958_v8, 16 }
  0x42   : > { %1475 = vmatprep.mubr.bf16.mxu0 %v2089_v17  ;;  %v2998_v35 = vrot.slane %v545_v7, 1  ;;  %v3005_v47 = vld [vmem:[%s2731_s12 + $0x20] sm:$0xf]  ;;  %v534_v6 = vor.u32 %v533_v15, %v529_v59  ;;  %v1985_v59 = vld [vmem:[%s2731_s12 + $0x28] sm:$0xe] }
  0x43   : > { %2286 = vmatpush3.bf16.msra.mxu0 %v2512_v26  ;;  %v2963_v26 = vrot.slane %v538_v0, 1  ;;  %v636_v31 = vshrl.u32 %v2045_v39, 16  ;;  %v638_v33 = vshll.u32 %v2045_v39, 16  ;;  %v2065_v36 = vcombine.low %v513_v27, %v520_v1  ;;  %v1986_v15 = vld [vmem:[%s2731_s12 + $0x30] sm:$0xe]  ;;  %v3058_v39 = vld [vmem:[%s3189_s1 + $0x220] sm:$0xff]  }
  0x44   : > { %2326 = vmatpush3.bf16.msra.mxu1 %v2513_v28  ;;  %2287 = vmatprep.subr.bf16.mxu0 %v2522_v58  ;;  %v2975_v28 = vld [vmem:[%s2731_s12 + $0x18] sm:$0xf]  ;;  %v527_v58 = vor.u32 %v2908_v42, %v522_v37  ;;  %v2047_v57 = vcombine.low %v3005_v47, %v3013_v55  ;;  %v3031_v37 = vrot.slane %v552_v25, 1  ;;  %v557_v1 = vshrl.u32 %v2981_v30, 16 }
  0x45   : > { %2327 = vmatprep.subr.bf16.mxu1 %v2523_v62  ;;  %v2046_v41 = vcombine.low %v2975_v28, %v2984_v32  ;;  %v640_v49 = vrot.slane %v638_v33, 1  ;;  %v3024_v62 = vld [vmem:[%s2731_s12 + $0x2c] sm:$0x1]  ;;  %v2067_v10 = vcombine.low %v2972_v2, %v2975_v28  ;;  %v3052_v27 = vld [vmem:[%s2731_s12 + $0x38] sm:$0xf] }
  0x46   : > { %1476 = vmatmul.mubr.bf16.gmra.mxu0 %v2088_v12  ;;  %v2048_v9 = vcombine.low %v3010_v54, %v3024_v62  ;;  %v650_v5 = vshrl.u32 %v2047_v57, 16  ;;  %v2075_v12 = vcombine.low %v589_v61, %v590_v4  ;;  %v2074_v28 = vcombine.low %v527_v58, %v534_v6  ;;  %v3083_v58 = vld [vmem:[%s2731_s12 + $0x40] sm:$0xf] }
  0x47   : > { %2288 = vmatpush3.bf16.msra.mxu0 %v2524_v63  ;;  %1541 = vmatmul.mubr.bf16.gmra.mxu1 %v2090_v13  ;;  %v643_v40 = vshrl.u32 %v2046_v41, 16  ;;  %v645_v44 = vshll.u32 %v2046_v41, 16  ;;  %v550_v63 = vshrl.u32 %v2958_v8, 16  ;;  %v641_v0 = vor.u32 %v640_v49, %v636_v31  ;;  %v3061_v41 = vld [vmem:[%s2731_s12 + $0x34] sm:$0x1] }
  0x48   : > { %2328 = vmatpush3.bf16.msra.mxu1 %v2525_v56  ;;  %2289 = vmatprep.subr.bf16.mxu0 %v2526_v14  ;;  %v652_v56 = vshll.u32 %v2047_v57, 16  ;;  %v657_v13 = vshrl.u32 %v2048_v9, 16  ;;  %v659_v14 = vshll.u32 %v2048_v9, 16  ;;  %v2076_v61 = vcombine.low %v3005_v47, %v3010_v54 }
  0x49   : > { %2329 = vmatprep.subr.bf16.mxu1 %v2527_v19  ;;  %1581 = vmatprep.mubr.bf16.mxu0 %v2066_v21  ;;  %v647_v60 = vrot.slane %v645_v44, 1  ;;  %v2042_v21 = vcombine.low %v1986_v15, %v2911_v38  ;;  %v1987_v44 = vld [vmem:[%s2731_s12 + $0x38] sm:$0xe] }
  0x4a   : > { %v654_v17 = vrot.slane %v652_v56, 1  ;;  %v661_v19 = vrot.slane %v659_v14, 1  ;;  %v2043_v50 = vcombine.low %v1987_v44, %v2935_v3 }
  0x4b   : > { %2290 = vmatpush3.bf16.msra.mxu0 %v2528_v20  ;;  %v648_v42 = vor.u32 %v647_v60, %v643_v40  ;;  %v2041_v20 = vcombine.low %v1985_v59, %v2884_v23  ;;  %v3064_v23 = vld [vmem:[%s2731_s12 + $0x3c] sm:$0x1]  ;;  %v592_v31 = vrot.slane %v2042_v21, 1  ;;  %v548_v40 = vor.u32 %v2998_v35, %v543_v18  ;;  %v3086_v60 = vld [vmem:[%s2731_s12 + $0x48] sm:$0xf] }
  0x4c   : > { %2330 = vmatpush3.bf16.msra.mxu1 %v2529_v24  ;;  %2367 = vmatprep.subr.bf16.mxu0 %v2993_v51  ;;  %v3049_v24 = vld [vmem:[%s2731_s12 + $0x30] sm:$0xf]  ;;  %v655_v2 = vor.u32 %v654_v17, %v650_v5  ;;  %v662_v38 = vor.u32 %v661_v19, %v657_v13  ;;  %v2050_v34 = vcombine.low %v3052_v27, %v3064_v23  ;;  %v3091_v18 = vld [vmem:[%s2731_s12 + $0x44] sm:$0x1]  ;;  %v3094_v35 = vld [vmem:[%s2731_s12 + $0x4c] sm:$0x1] }
  0x4d   : > { %2391 = vmatprep.subr.bf16.mxu1 %v2993_v51  ;;  %v2068_v7 = vcombine.low %v641_v0, %v648_v42  ;;  %v591_v25 = vrot.slane %v2041_v20, 1  ;;  %v2049_v33 = vcombine.low %v3049_v24, %v3061_v41  ;;  %v2051_v0 = vcombine.low %v3083_v58, %v3091_v18  ;;  %v2006_v17 = vld [vmem:[%s2731_s12 + $0x18] sm:$0xe] }
  0x4e   : > { %1582 = vmatmul.mubr.bf16.vlgmr.msra.gmra.mxu0 %v2065_v36  ;;  %v541_v36 = vor.u32 %v2963_v26, %v536_v22  ;;  %v671_v43 = vshrl.u32 %v2050_v34, 16  ;;  %v673_v22 = vshll.u32 %v2050_v34, 16  ;;  %v2044_v26 = vcombine.low %v1988_v45, %v2941_v11  ;;  %v2549_v11 = vld [vmem:[%s3189_s1 + $0x218] sm:$0xff]  }
  0x4f   : > { %2368 = vmatpush3.bf16.msra.mxu0 %v2993_v51  ;;  %1589 = vmatprep.mubr.bf16.mxu0 %v2075_v12  ;;  %v2084_v46 = vcombine.low %v591_v25, %v592_v31  ;;  %v664_v49 = vshrl.u32 %v2049_v33, 16  ;;  %v666_v52 = vshll.u32 %v2049_v33, 16  ;;  %v2052_v4 = vcombine.low %v3086_v60, %v3094_v35  ;;  %v2007_v31 = vld [vmem:[%s2731_s12 + $0x20] sm:$0xe]  ;;  %v2008_v33 = vld [vmem:[%s2731_s12 + $0x28] sm:$0xe] }
  0x50   : > { %2369 = vmatprep.subr.bf16.mxu0 %v3021_v53  ;;  %1646 = vmatprep.mubr.bf16.mxu1 %v2068_v7  ;;  %v675_v3 = vrot.slane %v673_v22, 1  ;;  %v593_v9 = vrot.slane %v2043_v50, 1  ;;  %v594_v47 = vrot.slane %v2044_v26, 1  ;;  %v678_v42 = vshrl.u32 %v2051_v0, 16  ;;  %v2005_v7 = vld [vmem:[%s2731_s12 + $0x10] sm:$0xe] }
  0x51   : > { %1647 = vmatmul.mubr.bf16.vlgmr.msra.gmra.mxu1 %v2067_v10  ;;  %v668_v57 = vrot.slane %v666_v52, 1  ;;  %v680_v5 = vshll.u32 %v2051_v0, 16  ;;  %v2083_v6 = vcombine.low %v541_v36, %v548_v40  ;;  %v685_v10 = vshrl.u32 %v2052_v4, 16  ;;  %v2011_v36 = vld [vmem:[%s2731_s12 + $0x40] sm:$0xe] }
  0x52   : > { %2399 = vmatpush3.bf16.msra.mxu1 %v2993_v51  ;;  %v2077_v51 = vcombine.low %v655_v2, %v662_v38  ;;  %v676_v56 = vor.u32 %v675_v3, %v671_v43  ;;  %v687_v12 = vshll.u32 %v2052_v4, 16  ;;  %v2093_v13 = vcombine.low %v593_v9, %v594_v47  ;;  %v2009_v2 = vld [vmem:[%s2731_s12 + $0x30] sm:$0xe]  ;;  %v2012_v40 = vld [vmem:[%s2731_s12 + $0x48] sm:$0xe] }
  0x53   : > { %2370 = vmatpush3.bf16.msra.mxu0 %v3021_v53  ;;  %2392 = vmatprep.subr.bf16.mxu1 %v3021_v53  ;;  %v669_v54 = vor.u32 %v668_v57, %v664_v49  ;;  %v682_v14 = vrot.slane %v680_v5, 1  ;;  %v2053_v19 = vcombine.low %v2005_v7, %v2978_v29  ;;  %v2054_v21 = vcombine.low %v2006_v17, %v2984_v32 }
  0x54   : > { %2371 = vmatprep.subr.bf16.mxu0 %v3042_v16  ;;  %1654 = vmatprep.mubr.bf16.mxu1 %v2077_v51  ;;  %v689_v15 = vrot.slane %v687_v12, 1  ;;  %v555_v38 = vor.u32 %v3031_v37, %v550_v63  ;;  %v2085_v29 = vcombine.low %v3049_v24, %v3052_v27  ;;  %v2057_v63 = vcombine.low %v2009_v2, %v3061_v41  ;;  %v2558_v37 = vld [vmem:[%s3189_s1 + $0x208] sm:$0xff]   ;;  %v2559_v41 = vld [vmem:[%s3189_s1 + $0x200] sm:$0xff]  }
  0x55   : > { %v2086_v59 = vcombine.low %v669_v54, %v676_v56  ;;  %v683_v20 = vor.u32 %v682_v14, %v678_v42  ;;  %v715_v32 = vrot.slane %v2053_v19, 1  ;;  %v716_v34 = vrot.slane %v2054_v21, 1 }
  0x56   : > { %1590 = vmatmul.mubr.bf16.gmra.mxu0 %v2074_v28  ;;  %2400 = vmatpush3.bf16.msra.mxu1 %v3021_v53  ;;  %v561_v53 = vrot.slane %v559_v48, 1  ;;  %v2550_v48 = vld [vmem:[%s3189_s1 + $0x210] sm:$0xff]   ;;  %v2010_v28 = vld [vmem:[%s2731_s12 + $0x38] sm:$0xe]  ;;  %v2055_v24 = vcombine.low %v2007_v31, %v3013_v55  ;;  %v2056_v27 = vcombine.low %v2008_v33, %v3024_v62  ;;  %v2059_v62 = vcombine.low %v2011_v36, %v3091_v18  ;;  %s2171_s12 = sshll.u32 %s3206_s15, 5 }
  0x57   : > { %2372 = vmatpush3.bf16.msra.mxu0 %v3042_v16  ;;  %2393 = vmatprep.subr.bf16.mxu1 %v3042_v16  ;;  %v2058_v30 = vcombine.low %v2010_v28, %v3064_v23  ;;  %v719_v23 = vrot.slane %v2057_v63, 1  ;;  %v2060_v51 = vcombine.low %v2012_v40, %v3094_v35  ;;  %s3165_s19 = scalar_lea.vmem %s3190_s2, %s2171_s12 }
  0x58   : > { %2373 = vmatprep.subr.bf16.mxu0 %v3058_v39  ;;  %1597 = vmatprep.mubr.bf16.mxu0 %v2084_v46  ;;  %v562_v25 = vor.u32 %v561_v53, %v557_v1  ;;  %v717_v45 = vrot.slane %v2055_v24, 1  ;;  %v718_v55 = vrot.slane %v2056_v27, 1  ;;  %v2094_v46 = vcombine.low %v3083_v58, %v3086_v60 }
  0x59   : > { %1655 = vmatmul.mubr.bf16.gmra.mxu1 %v2076_v61  ;;  %v720_v44 = vrot.slane %v2058_v30, 1  ;;  %v721_v43 = vrot.slane %v2059_v62, 1  ;;  %v722_v22 = vrot.slane %v2060_v51, 1 }
  0x5a   : > { %2401 = vmatpush3.bf16.msra.mxu1 %v3042_v16  ;;  %1662 = vmatprep.mubr.bf16.mxu1 %v2086_v59  ;;  %v690_v16 = vor.u32 %v689_v15, %v685_v10  ;;  %v2092_v1 = vcombine.low %v555_v38, %v562_v25  ;;  %v2078_v52 = vcombine.low %v717_v45, %v718_v55 }
  0x5b   : > { %2374 = vmatpush3.bf16.msra.mxu0 %v3058_v39  ;;  %2394 = vmatprep.subr.bf16.mxu1 %v3058_v39  ;;  %v2087_v49 = vcombine.low %v719_v23, %v720_v44  ;;  %v2096_v50 = vcombine.low %v721_v43, %v722_v22 }
  0x5c   : > { %2375 = vmatprep.subr.bf16.mxu0 %v2549_v11  ;;  %v2095_v8 = vcombine.low %v683_v20, %v690_v16 }
  0x5e   : > { %1598 = vmatmul.mubr.bf16.gmra.mxu0 %v2083_v6  ;;  %2402 = vmatpush3.bf16.msra.mxu1 %v3058_v39  ;;  %v2069_v39 = vcombine.low %v715_v32, %v716_v34 }
  0x5f   : > { %2376 = vmatpush3.bf16.msra.mxu0 %v2549_v11  ;;  %1605 = vmatprep.mubr.bf16.mxu0 %v2093_v13 }
  0x60   : > { %2377 = vmatprep.subr.bf16.mxu0 %v2550_v48  ;;  %2395 = vmatprep.subr.bf16.mxu1 %v2549_v11 }
  0x61   : > { %1663 = vmatmul.mubr.bf16.gmra.mxu1 %v2085_v29 }
  0x62   : > { %2403 = vmatpush3.bf16.msra.mxu1 %v2549_v11  ;;  %1670 = vmatprep.mubr.bf16.mxu1 %v2095_v8 }
  0x63   : > { %2378 = vmatpush3.bf16.msra.mxu0 %v2550_v48  ;;  %2396 = vmatprep.subr.bf16.mxu1 %v2550_v48 }
  0x64   : > { %2379 = vmatprep.subr.bf16.mxu0 %v2558_v37 }
  0x66   : > { %1606 = vmatmul.mubr.bf16.gmra.mxu0 %v2092_v1  ;;  %2404 = vmatpush3.bf16.msra.mxu1 %v2550_v48 }
  0x67   : > { %2380 = vmatpush3.bf16.msra.mxu0 %v2558_v37  ;;  %2383 = vmatprep.mubr.bf16.mxu0 %v2069_v39 }
  0x68   : > { %2381 = vmatprep.subr.bf16.mxu0 %v2559_v41  ;;  %2397 = vmatprep.subr.bf16.mxu1 %v2558_v37 }
  0x69   : > { %1671 = vmatmul.mubr.bf16.gmra.mxu1 %v2094_v46 }
  0x6a   : > { %2405 = vmatpush3.bf16.msra.mxu1 %v2558_v37  ;;  %2387 = vmatprep.mubr.bf16.mxu1 %v2087_v49 }
  0x6b   : > { %2382 = vmatpush3.bf16.msra.mxu0 %v2559_v41  ;;  %2398 = vmatprep.subr.bf16.mxu1 %v2559_v41 }
  0x6e   : > { %2384 = vmatmul.mubr.bf16.vlgmr.msra.gmra.mxu0 %v2078_v52  ;;  %2406 = vmatpush3.bf16.msra.mxu1 %v2559_v41 }
  0x71   : > { %2388 = vmatmul.mubr.bf16.vlgmr.msra.gmra.mxu1 %v2096_v50 }
  0xee   : > { %v2211_v26 = vpop.f32.mrf.mxu0 }
  0xef   : > { %v2251_v58 = vpop.f32.mrf.mxu1 }
  0xf0   : > { %v2212_v60 = vpop.f32.mrf.mxu0 }
  0xf1   : > { %v2252_v18 = vpop.f32.mrf.mxu1  ;;  %v2213_v23 = vadd.f32 %v2212_v60, %v2211_v26 }
  0xf2   : > { %v2214_v61 = vpop.f32.mrf.mxu0  ;;  %v2253_v44 = vadd.f32 %v2252_v18, %v2251_v58 }
  0xf3   : > { %v2254_v35 = vpop.f32.mrf.mxu1 }
  0xf4   : > { %v2215_v0 = vpop.f32.mrf.mxu0 }
  0xf5   : > { %v2255_v57 = vpop.f32.mrf.mxu1  ;;  %v2216_v45 = vadd.f32 %v2215_v0, %v2214_v61 }
  0xf6   : > { %v2217_v11 = vpop.f32.mrf.mxu0  ;;  %v2256_v55 = vadd.f32 %v2255_v57, %v2254_v35 }
  0xf7   : > { %v2257_v4 = vpop.f32.mrf.mxu1 }
  0xf8   : > { %v2218_v9 = vpop.f32.mrf.mxu0  ;;  %v1522_v26 = vadd.f32 %v2256_v55, %v2216_v45 }
  0xf9   : > { %v2258_v3 = vpop.f32.mrf.mxu1  ;;  %v2219_v51 = vadd.f32 %v2218_v9, %v2217_v11 }
  0xfa   : > { %v2220_v54 = vpop.f32.mrf.mxu0  ;;  %v2259_v46 = vadd.f32 %v2258_v3, %v2257_v4 }
  0xfb   : > { %v2260_v47 = vpop.f32.mrf.mxu1 }
  0xfc   : > { %v2221_v5 = vpop.f32.mrf.mxu0  ;;  %v1527_v60 = vadd.f32 %v2259_v46, %v2219_v51 }
  0xfd   : > { %v2261_v42 = vpop.f32.mrf.mxu1  ;;  %v2222_v49 = vadd.f32 %v2221_v5, %v2220_v54 }
  0xfe   : > { %v2223_v56 = vpop.f32.mrf.mxu0  ;;  %v2262_v52 = vadd.f32 %v2261_v42, %v2260_v47 }
  0xff   : > { %v3149_v53 = vpop.f32.mrf.mxu1 }
 0x100   : > { %3193 = vst [vmem:[#allocation2_spill] sm:$0xff] %v3149_v53  ;;  %v2224_v10 = vpop.f32.mrf.mxu0  ;;  %v1530_v18 = vadd.f32 %v2262_v52, %v2222_v49 }
 0x101   : > { %v2264_v6 = vpop.f32.mrf.mxu1  ;;  %v2225_v4 = vadd.f32 %v2224_v10, %v2223_v56 }
 0x102   : > { %v3151_v13 = vpop.f32.mrf.mxu0 }
 0x103   : > { %v2266_v12 = vpop.f32.mrf.mxu1  ;;  %3194 = vst [vmem:[#allocation3_spill] sm:$0xff] %v3151_v13 }
 0x104   : > { %v3153_v7 = vpop.f32.mrf.mxu0 }
 0x105   : > { %v2267_v14 = vpop.f32.mrf.mxu1  ;;  %3195 = vst [vmem:[#allocation4_spill] sm:$0xff] %v3153_v7  ;;  %v1519_v7 = vadd.f32 %v2253_v44, %v2213_v23 }
 0x106   : > { %v2229_v59 = vpop.f32.mrf.mxu0  ;;  %v2268_v54 = vadd.f32 %v2267_v14, %v2266_v12 }
 0x107   : > { %v2269_v17 = vpop.f32.mrf.mxu1  ;;  %v3197_v3 = vld [vmem:[#allocation2_spill] sm:$0xff] }
 0x108   : > { %v2230_v15 = vpop.f32.mrf.mxu0  ;;  %v2265_v47 = vadd.f32 %v2264_v6, %v3197_v3 }
 0x109   : > { %v2270_v48 = vpop.f32.mrf.mxu1  ;;  %v2231_v61 = vadd.f32 %v2230_v15, %v2229_v59 }
 0x10a   : > { %v2232_v19 = vpop.f32.mrf.mxu0  ;;  %v2271_v35 = vadd.f32 %v2270_v48, %v2269_v17  ;;  %v3198_v17 = vld [vmem:[#allocation3_spill] sm:$0xff]  ;;  %v1535_v12 = vadd.f32 %v2265_v47, %v2225_v4 }
 0x10b   : > { %v2272_v20 = vpop.f32.mrf.mxu1 }
 0x10c   : > { %v2233_v21 = vpop.f32.mrf.mxu0  ;;  %v3199_v48 = vld [vmem:[#allocation4_spill] sm:$0xff] }
 0x10d   : > { %v2273_v28 = vpop.f32.mrf.mxu1  ;;  %v2234_v57 = vadd.f32 %v2233_v21, %v2232_v19  ;;  %v2228_v15 = vadd.f32 %v3199_v48, %v3198_v17  ;;  %v1543_v19 = vadd.f32 %v2271_v35, %v2231_v61 }
 0x10e   : > { %v2291_v2 = vpop.f32.mrf.mxu0  ;;  %v2274_v9 = vadd.f32 %v2273_v28, %v2272_v20 }
 0x110   : > { %v2292_v16 = vpop.f32.mrf.mxu0  ;;  %v1546_v56 = vadd.f32 %v2274_v9, %v2234_v57 }
 0x111   : > { %v2331_v25 = vpop.f32.mrf.mxu1  ;;  %v2293_v13 = vadd.f32 %v2292_v16, %v2291_v2 }
 0x112   : > { %v2294_v38 = vpop.f32.mrf.mxu0 }
 0x113   : > { %v2332_v33 = vpop.f32.mrf.mxu1  ;;  %v1584_v23 = vadd.f32 %v2293_v13, %v1519_v7 }
 0x114   : > { %v2295_v31 = vpop.f32.mrf.mxu0  ;;  %v2333_v2 = vadd.f32 %v2332_v33, %v2331_v25 }
 0x115   : > { %v2334_v32 = vpop.f32.mrf.mxu1  ;;  %v2296_v42 = vadd.f32 %v2295_v31, %v2294_v38 }
 0x116   : > { %v2297_v29 = vpop.f32.mrf.mxu0  ;;  %v1649_v33 = vadd.f32 %v2333_v2, %v1584_v23 }
 0x117   : > { %v2335_v8 = vpop.f32.mrf.mxu1  ;;  %v1587_v14 = vadd.f32 %v2296_v42, %v1522_v26 }
 0x118   : > { %v2298_v34 = vpop.f32.mrf.mxu0  ;;  %v2336_v13 = vadd.f32 %v2335_v8, %v2334_v32 }
 0x119   : > { %v2337_v30 = vpop.f32.mrf.mxu1  ;;  %v2299_v53 = vadd.f32 %v2298_v34, %v2297_v29 }
 0x11a   : > { %v2300_v63 = vpop.f32.mrf.mxu0 }
 0x11b   : > { %v2338_v24 = vpop.f32.mrf.mxu1  ;;  %v1592_v16 = vadd.f32 %v2299_v53, %v1527_v60 }
 0x11c   : > { %v2301_v37 = vpop.f32.mrf.mxu0  ;;  %v2339_v44 = vadd.f32 %v2338_v24, %v2337_v30  ;;  %v1538_v24 = vadd.f32 %v2268_v54, %v2228_v15 }
 0x11d   : > { %v2340_v1 = vpop.f32.mrf.mxu1  ;;  %v2302_v58 = vadd.f32 %v2301_v37, %v2300_v63 }
 0x11e   : > { %v2303_v27 = vpop.f32.mrf.mxu0  ;;  %v1657_v31 = vadd.f32 %v2339_v44, %v1592_v16 }
 0x11f   : > { %v2341_v39 = vpop.f32.mrf.mxu1  ;;  %v1595_v45 = vadd.f32 %v2302_v58, %v1530_v18 }
 0x120   : > { %v2304_v36 = vpop.f32.mrf.mxu0  ;;  %v2342_v63 = vadd.f32 %v2341_v39, %v2340_v1 }
 0x121   : > { %v3155_v41 = vpop.f32.mrf.mxu1  ;;  %v2305_v6 = vadd.f32 %v2304_v36, %v2303_v27 }
 0x122   : > { %v2306_v40 = vpop.f32.mrf.mxu0  ;;  %3196 = vst [vmem:[#allocation5_spill] sm:$0xff] %v3155_v41  ;;  %v1660_v30 = vadd.f32 %v2342_v63, %v1595_v45 }
 0x123   : > { %v2344_v43 = vpop.f32.mrf.mxu1  ;;  %v1600_v1 = vadd.f32 %v2305_v6, %v1535_v12 }
 0x124   : > { %v2307_v62 = vpop.f32.mrf.mxu0 }
 0x125   : > { %v2346_v50 = vpop.f32.mrf.mxu1  ;;  %v2308_v53 = vadd.f32 %v2307_v62, %v2306_v40  ;;  %v1652_v40 = vadd.f32 %v2336_v13, %v1587_v14 }
 0x126   : > { %v2309_v22 = vpop.f32.mrf.mxu0 }
 0x127   : > { %v2347_v0 = vpop.f32.mrf.mxu1  ;;  %v1603_v62 = vadd.f32 %v2308_v53, %v1538_v24 }
 0x128   : > { %v2310_v41 = vpop.f32.mrf.mxu0  ;;  %v2348_v46 = vadd.f32 %v2347_v0, %v2346_v50 }
 0x129   : > { %v2349_v5 = vpop.f32.mrf.mxu1  ;;  %v2311_v29 = vadd.f32 %v2310_v41, %v2309_v22  ;;  %v3200_v39 = vld [vmem:[#allocation5_spill] sm:$0xff] }
 0x12a   : > { %v2312_v11 = vpop.f32.mrf.mxu0  ;;  %v2345_v41 = vadd.f32 %v2344_v43, %v3200_v39 }
 0x12b   : > { %v2350_v37 = vpop.f32.mrf.mxu1  ;;  %v1608_v20 = vadd.f32 %v2311_v29, %v1543_v19 }
 0x12c   : > { %v2313_v34 = vpop.f32.mrf.mxu0  ;;  %v2351_v21 = vadd.f32 %v2350_v37, %v2349_v5  ;;  %v1665_v18 = vadd.f32 %v2345_v41, %v1600_v1 }
 0x12d   : > { %v2314_v59 = vadd.f32 %v2313_v34, %v2312_v11  ;;  %v2352_v7 = vpop.f32.mrf.mxu1  ;;  %v1668_v11 = vadd.f32 %v2348_v46, %v1603_v62 }
 0x12e   : > { %v2385_v10 = vpop.f32.mrf.mxu0  ;;  %v1673_v49 = vadd.f32 %v2351_v21, %v1608_v20 }
 0x12f   : > { %v1611_v28 = vadd.f32 %v2314_v59, %v1546_v56  ;;  %v2353_v25 = vpop.f32.mrf.mxu1  ;;  %v1722_v55 = vadd.f32 %v2385_v10, %v1657_v31 }
 0x130   : > { %v1713_v38 = vpop.f32.mrf.mxu0  ;;  %v2354_v27 = vadd.f32 %v2353_v25, %v2352_v7 }
 0x131   : > { %v2389_v51 = vpop.f32.mrf.mxu1  ;;  %v1714_v32 = vadd.f32 %v1713_v38, %v1649_v33  ;;  %v1776_v4 = vmul.f32 %v1722_v55, %v1722_v55 }
 0x132   : > { %v2386_v36 = vpop.f32.mrf.mxu0  ;;  %v1676_v52 = vadd.f32 %v2354_v27, %v1611_v28  ;;  %v1738_v0 = vadd.f32 %v2389_v51, %v1673_v49 }
 0x133   : > { %v1725_v8 = vadd.f32 %v2386_v36, %v1660_v30  ;;  %v1729_v43 = vpop.f32.mrf.mxu1  ;;  %v1774_v58 = vmul.f32 %v1714_v32, %v1714_v32 }
 0x134   : > { %v1716_v22 = vpop.f32.mrf.mxu0  ;;  %v1730_v3 = vadd.f32 %v1729_v43, %v1665_v18  ;;  %v1780_v48 = vmul.f32 %v1738_v0, %v1738_v0 }
 0x135   : > { %v2180_v26 = vpack.c.bf16 %v1725_v8, %v1722_v55  ;;  %v1717_v60 = vadd.f32 %v1716_v22, %v1652_v40  ;;  %v2390_v61 = vpop.f32.mrf.mxu1  ;;  %v1777_v2 = vmul.f32 %v1725_v8, %v1725_v8 }
 0x136   : > { %v1741_v9 = vadd.f32 %v2390_v61, %v1676_v52  ;;  %v1778_v44 = vmul.f32 %v1730_v3, %v1730_v3 }
 0x137   : > { %2192 = vst [vmem:[%s3165_s19 + $0x8] sm:$0xff] %v2180_v26   ;;  %v2175_v35 = vpack.c.bf16 %v1717_v60, %v1714_v32  ;;  %v1760_v57 = vadd.f32 %v1717_v60, %v1714_v32  ;;  %v1775_v50 = vmul.f32 %v1717_v60, %v1717_v60  ;;  %v1732_v42 = vpop.f32.mrf.mxu1 }
 0x138   : > { %v2190_v5 = vpack.c.bf16 %v1741_v9, %v1738_v0  ;;  %v1733_v23 = vadd.f32 %v1732_v42, %v1668_v11  ;;  %v1781_v56 = vmul.f32 %v1741_v9, %v1741_v9 }
 0x139   : > { %2176 = vst [vmem:[%s3165_s19] sm:$0xff] %v2175_v35   ;;  %v1761_v47 = vadd.f32 %v1760_v57, %v1722_v55  ;;  %v1782_v54 = vadd.f32 %v1775_v50, %v1774_v58 }
 0x13a   : > { %2194 = vst [vmem:[%s3165_s19 + $0x18] sm:$0xff] %v2190_v5   ;;  %v2185_v34 = vpack.c.bf16 %v1733_v23, %v1730_v3  ;;  %v1779_v59 = vmul.f32 %v1733_v23, %v1733_v23 }
 0x13b   : > { %v1783_v16 = vadd.f32 %v1782_v54, %v1776_v4  ;;  %v1762_v29 = vadd.f32 %v1761_v47, %v1725_v8 }
 0x13c   : > { %2193 = vst [vmem:[%s3165_s19 + $0x10] sm:$0xff] %v2185_v34  }
 0x13d   : > { %v1763_v45 = vadd.f32 %v1762_v29, %v1730_v3  ;;  %v1784_v63 = vadd.f32 %v1783_v16, %v1777_v2 }
 0x13f   : > { %v1764_v37 = vadd.f32 %v1763_v45, %v1733_v23  ;;  %v1785_v17 = vadd.f32 %v1784_v63, %v1778_v44 }
 0x141   : > { %v1765_v15 = vadd.f32 %v1764_v37, %v1738_v0  ;;  %v1786_v19 = vadd.f32 %v1785_v17, %v1779_v59 }
 0x143   : > { %v1766_v6 = vadd.f32 %v1765_v15, %v1741_v9  ;;  %v1787_v10 = vadd.f32 %v1786_v19, %v1780_v48 }
 0x145   : > { %v1767_v12 = vrot.slane %v1766_v6, 4  ;;  %v1788_v14 = vadd.f32 %v1787_v10, %v1781_v56 }
 0x147   : > { %v1768_v13 = vadd.f32 %v1767_v12, %v1766_v6  ;;  %v1789_v7 = vrot.slane %v1788_v14, 4 }
 0x149   : > { %v1769_v53 = vrot.slane %v1768_v13, 2  ;;  %v1790_v20 = vadd.f32 %v1789_v7, %v1788_v14 }
 0x14b   : > { %v1770_v21 = vadd.f32 %v1769_v53, %v1768_v13  ;;  %v1791_v28 = vrot.slane %v1790_v20, 2 }
 0x14d   : > { %v1771_v38 = vrot.slane %v1770_v21, 1  ;;  %v1792_v25 = vadd.f32 %v1791_v28, %v1790_v20 }
 0x14f   : > { %v1772_v31 = vadd.f32 %v1771_v38, %v1770_v21  ;;  %v1793_v33 = vrot.slane %v1792_v25, 1 }
 0x151   : > { %1773 = vst [vmem:[%s247_s22] sm:$0x1] %v1772_v31  ;;  %v1794_v30 = vadd.f32 %v1793_v33, %v1792_v25 }
 0x153   : > { %1795 = vst [vmem:[%s253_s25] sm:$0x1] %v1794_v30 }
 0x154 PF: > { %s15_s17 = sadd.s32 1, %s2586_s17   ;;  %s3201_s15 = smov %s2582_s16 }
 0x155   : > { %p12_p5 = scmp.ge.s32.totalorder %s15_s17, 18   ;;  %s3202_s16 = smov %s3204_s18 }
 0x157   :  { %14 = sbr.rel (!%p12_p5) target bundleno = 2 (0x2), region = 85 }

</bundles_post_ra>
